<compile_context>
chip_gen: v5e
topology: v5e:2x2
jax: 0.10.0
libtpu: 0.0.40
codegen_flags: <defaults>
</compile_context>

<pallas_src>
import functools
import math

import jax
import jax.numpy as jnp
from jax import lax
from jax.experimental import pallas as pl
from jax.experimental.pallas import tpu as pltpu


# ----------------------------------------------------------------------------
# Generation-aware sizing helpers
# ----------------------------------------------------------------------------

def _round_up(v, k):
    return (v + k - 1) // k * k


def _vmem_limit_bytes():
    """Scoped-VMEM limit derived from the actual chip (v5e/v6e 128 MiB, v7x 64 MiB)."""
    cap = None
    try:
        cap = getattr(pltpu.get_tpu_info(), "vmem_capacity_bytes", None)
    except Exception:
        cap = None
    if not cap:
        cap = 64 * 1024 * 1024  # conservative: correct for v7x, under-uses v5e/v6e
    return int(max(32 * 1024 * 1024, min(cap * 3 // 4, 112 * 1024 * 1024)))


def _per_sample_vmem_bytes(c_in, c_out, m):
    """Padded VMEM footprint of one batch sample inside the fused kernel."""
    plane = _round_up(m, 8) * _round_up(m, 128) * 4        # padded f32 (m, m) slab
    # x + out double-buffered by the pipeline; h1/h2/mult (+ slack) resident.
    return plane * (2 * c_in + 2 * c_out + 4 * c_out)


def _choose_batch_tile(n, per_sample_bytes, vmem_budget):
    """Largest divisor of n fitting the budget; prefer an even step count
    (v7x has 2 TensorCores) and at least 2 grid steps. Worst case TN=1."""
    divisors = [d for d in range(1, n + 1) if n % d == 0]
    fitting = [d for d in divisors if d * per_sample_bytes <= vmem_budget] or [1]

    def pref(d):
        steps = n // d
        return (steps % 2 == 0, steps >= 2, d)

    return max(fitting, key=pref)


# ----------------------------------------------------------------------------
# Fused Pallas kernel
# ----------------------------------------------------------------------------

def _regular_block_kernel(x_ref, *rest, depth):
    """Fused RegularBlock forward on one batch tile.

    x_ref : (TN, C_in, m, m) VMEM tile of the NCHW input.
    rest  : w1_0..w1_{d-1}, w2_0..w2_{d-1}, w_skip  (SMEM, scalar-indexed),
            then o_ref : (TN, C_out, m, m) VMEM output tile.
    """
    *w_refs, o_ref = rest
    w1_refs = w_refs[:depth]
    w2_refs = w_refs[depth:2 * depth]
    ws_ref = w_refs[2 * depth]

    c_in = x_ref.shape[1]
    c_out = o_ref.shape[1]

    # Per-channel (TN, m, m) slabs. Everything below is either elementwise on
    # these slabs (VPU, scalar weights from SMEM) or a batched (m, m) matmul
    # (MXU) -- no reshapes, no transposes, no HBM round trips of intermediates.
    x_ch = [x_ref[:, c] for c in range(c_in)]

    def mlp(w_list):
        h = x_ch
        for w_ref in w_list:
            co, ci = w_ref.shape
            h = [jnp.maximum(sum(w_ref[o, c] * h[c] for c in range(ci)), 0.0)
                 for o in range(co)]
        return h

    h1 = mlp(w1_refs)      # list of C_out slabs (TN, m, m)
    h2 = mlp(w2_refs)

    # Per-channel spatial matmul mult[c] = h1[c] @ h2[c], batched over TN.
    # Explicit dot_general (batch (0,0), contract (2,1)) to guarantee a clean
    # batched MXU lowering with no inserted transposes.
    mult = [lax.dot_general(h1[c], h2[c],
                            dimension_numbers=(((2,), (1,)), ((0,), (0,))),
                            preferred_element_type=jnp.float32)
            for c in range(c_out)]

    # Skip 1x1 conv with the channel concat folded away: x columns first,
    # then mult columns -- matches torch.cat((inputs, mult), dim=1).
    for o in range(c_out):
        acc = sum(ws_ref[o, c] * x_ch[c] for c in range(c_in))
        acc = acc + sum(ws_ref[o, c_in + c] * mult[c] for c in range(c_out))
        o_ref[:, o] = acc.astype(o_ref.dtype)


# ----------------------------------------------------------------------------
# Forward wrapper (single pallas_call, grid over batch)
# ----------------------------------------------------------------------------

@jax.jit
def regular_block_forward(x, w1_list, w2_list, w_skip):
    """x: (N, C_in, m, m) float32 NCHW -> (N, C_out, m, m). residual=False."""
    n, c_in, m, m2 = x.shape
    assert m == m2
    c_out = w_skip.shape[0]
    depth = len(w1_list)
    assert len(w2_list) == depth
    assert w_skip.shape[1] == c_in + c_out

    vmem_limit = _vmem_limit_bytes()
    tn = _choose_batch_tile(n, _per_sample_vmem_bytes(c_in, c_out, m),
                            vmem_limit // 2)

    x_spec = pl.BlockSpec((tn, c_in, m, m), lambda i: (i, 0, 0, 0))
    w_spec = pl.BlockSpec(memory_space=pltpu.MemorySpace.SMEM)
    out_spec = pl.BlockSpec((tn, c_out, m, m), lambda i: (i, 0, 0, 0))

    return pl.pallas_call(
        functools.partial(_regular_block_kernel, depth=depth),
        out_shape=jax.ShapeDtypeStruct((n, c_out, m, m), x.dtype),
        grid=(n // tn,),
        in_specs=[x_spec] + [w_spec] * (2 * depth + 1),
        out_specs=out_spec,
        compiler_params=pltpu.CompilerParams(
            dimension_semantics=("parallel",),
            vmem_limit_bytes=vmem_limit),
    )(x, *w1_list, *w2_list, w_skip)


# ----------------------------------------------------------------------------
# Deterministic parameter init (Xavier uniform, conv bias=False)
# ----------------------------------------------------------------------------

def xavier_uniform(key, out_f, in_f, dtype=jnp.float32):
    # torch Conv2d(kernel=1) weight is (out, in, 1, 1); fan_in=in, fan_out=out.
    bound = math.sqrt(6.0 / (in_f + out_f))
    return jax.random.uniform(key, (out_f, in_f), dtype, minval=-bound, maxval=bound)


def init_regular_block_params(key, depth_of_mlp, in_features, out_features):
    keys = jax.random.split(key, 2 * depth_of_mlp + 1)
    w1_list, w2_list = [], []
    fin = in_features
    for d in range(depth_of_mlp):
        w1_list.append(xavier_uniform(keys[d], out_features, fin))
        fin = out_features
    fin = in_features
    for d in range(depth_of_mlp):
        w2_list.append(xavier_uniform(keys[depth_of_mlp + d], out_features, fin))
        fin = out_features
    w_skip = xavier_uniform(keys[-1], out_features, in_features + out_features)
    return w1_list, w2_list, w_skip


# ----------------------------------------------------------------------------
# Pure-JAX reference (mirrors the PyTorch forward) for verification
# ----------------------------------------------------------------------------

def reference_forward(x, w1_list, w2_list, w_skip):
    def mlp(h, ws):
        for w in ws:
            h = jax.nn.relu(jnp.einsum('oc,nchw->nohw', w, h))
        return h

    a = mlp(x, w1_list)
    b = mlp(x, w2_list)
    mult = jnp.einsum('ncik,nckj->ncij', a, b)         # torch.matmul over last 2 dims
    cat = jnp.concatenate([x, mult], axis=1)
    return jnp.einsum('oc,nchw->nohw', w_skip, cat)


# ----------------------------------------------------------------------------
# Main
# ----------------------------------------------------------------------------

if __name__ == "__main__":
    N, IN_F, OUT_F, M, DEPTH = 2, 4, 8, 16, 2

    key = jax.random.PRNGKey(0)
    k_x, k_p = jax.random.split(key)
    x = jax.random.normal(k_x, (N, IN_F, M, M), dtype=jnp.float32)

    w1_list, w2_list, w_skip = init_regular_block_params(k_p, DEPTH, IN_F, OUT_F)

    out = regular_block_forward(x, tuple(w1_list), tuple(w2_list), w_skip)
    out = jax.block_until_ready(out)

    ref = reference_forward(x, w1_list, w2_list, w_skip)
    assert out.shape == (N, OUT_F, M, M), out.shape
    max_err = float(jnp.max(jnp.abs(out - ref)))
    assert jnp.allclose(out, ref, rtol=1e-4, atol=1e-5), max_err

    print("KERNEL_OK")
</pallas_src>

<mosaic_0001>
module attributes {stable_mosaic.version = 11 : i64} {
  func.func @_regular_block_kernel(%arg0: i32, %arg1: memref<1x4x16x16xf32, #tpu.memory_space<vmem>>, %arg2: memref<8x4xf32, #tpu.memory_space<smem>>, %arg3: memref<8x8xf32, #tpu.memory_space<smem>>, %arg4: memref<8x4xf32, #tpu.memory_space<smem>>, %arg5: memref<8x8xf32, #tpu.memory_space<smem>>, %arg6: memref<8x12xf32, #tpu.memory_space<smem>>, %arg7: memref<1x8x16x16xf32, #tpu.memory_space<vmem>>) attributes {dimension_semantics = [#tpu.dimension_semantics<parallel>], iteration_bounds = array<i64: 2>, scalar_prefetch = 0 : i64, scratch_operands = 0 : i64, tpu.core_type = #tpu.core_type<tc>, window_params = [{transform_indices = @transform_0, window_bounds = array<i64: 1, 4, 16, 16>}, {transform_indices = @transform_1, window_bounds = array<i64: 8, 4>}, {transform_indices = @transform_2, window_bounds = array<i64: 8, 8>}, {transform_indices = @transform_3, window_bounds = array<i64: 8, 4>}, {transform_indices = @transform_4, window_bounds = array<i64: 8, 8>}, {transform_indices = @transform_5, window_bounds = array<i64: 8, 12>}, {transform_indices = @transform_6, window_bounds = array<i64: 1, 8, 16, 16>}]} {
    %c0 = arith.constant 0 : index
    %c0_0 = arith.constant 0 : index
    %c0_1 = arith.constant 0 : index
    %c0_2 = arith.constant 0 : index
    %0 = vector.load %arg1[%c0, %c0_0, %c0_1, %c0_2] : memref<1x4x16x16xf32, #tpu.memory_space<vmem>>, vector<1x1x16x16xf32>
    %1 = vector.shape_cast %0 : vector<1x1x16x16xf32> to vector<1x16x16xf32>
    %c0_3 = arith.constant 0 : index
    %c1 = arith.constant 1 : index
    %c0_4 = arith.constant 0 : index
    %c0_5 = arith.constant 0 : index
    %2 = vector.load %arg1[%c0_3, %c1, %c0_4, %c0_5] : memref<1x4x16x16xf32, #tpu.memory_space<vmem>>, vector<1x1x16x16xf32>
    %3 = vector.shape_cast %2 : vector<1x1x16x16xf32> to vector<1x16x16xf32>
    %c0_6 = arith.constant 0 : index
    %c2 = arith.constant 2 : index
    %c0_7 = arith.constant 0 : index
    %c0_8 = arith.constant 0 : index
    %4 = vector.load %arg1[%c0_6, %c2, %c0_7, %c0_8] : memref<1x4x16x16xf32, #tpu.memory_space<vmem>>, vector<1x1x16x16xf32>
    %5 = vector.shape_cast %4 : vector<1x1x16x16xf32> to vector<1x16x16xf32>
    %c0_9 = arith.constant 0 : index
    %c3 = arith.constant 3 : index
    %c0_10 = arith.constant 0 : index
    %c0_11 = arith.constant 0 : index
    %6 = vector.load %arg1[%c0_9, %c3, %c0_10, %c0_11] : memref<1x4x16x16xf32, #tpu.memory_space<vmem>>, vector<1x1x16x16xf32>
    %7 = vector.shape_cast %6 : vector<1x1x16x16xf32> to vector<1x16x16xf32>
    %c0_12 = arith.constant 0 : index
    %c0_13 = arith.constant 0 : index
    %8 = memref.load %arg2[%c0_12, %c0_13] : memref<8x4xf32, #tpu.memory_space<smem>>
    %9 = vector.broadcast %8 : f32 to vector<1x16x16xf32>
    %10 = arith.mulf %9, %1 : vector<1x16x16xf32>
    %cst = arith.constant 0.000000e+00 : f32
    %11 = vector.broadcast %cst : f32 to vector<1x16x16xf32>
    %12 = arith.addf %11, %10 : vector<1x16x16xf32>
    %c0_14 = arith.constant 0 : index
    %c1_15 = arith.constant 1 : index
    %13 = memref.load %arg2[%c0_14, %c1_15] : memref<8x4xf32, #tpu.memory_space<smem>>
    %14 = vector.broadcast %13 : f32 to vector<1x16x16xf32>
    %15 = arith.mulf %14, %3 : vector<1x16x16xf32>
    %16 = arith.addf %12, %15 : vector<1x16x16xf32>
    %c0_16 = arith.constant 0 : index
    %c2_17 = arith.constant 2 : index
    %17 = memref.load %arg2[%c0_16, %c2_17] : memref<8x4xf32, #tpu.memory_space<smem>>
    %18 = vector.broadcast %17 : f32 to vector<1x16x16xf32>
    %19 = arith.mulf %18, %5 : vector<1x16x16xf32>
    %20 = arith.addf %16, %19 : vector<1x16x16xf32>
    %c0_18 = arith.constant 0 : index
    %c3_19 = arith.constant 3 : index
    %21 = memref.load %arg2[%c0_18, %c3_19] : memref<8x4xf32, #tpu.memory_space<smem>>
    %22 = vector.broadcast %21 : f32 to vector<1x16x16xf32>
    %23 = arith.mulf %22, %7 : vector<1x16x16xf32>
    %24 = arith.addf %20, %23 : vector<1x16x16xf32>
    %cst_20 = arith.constant 0.000000e+00 : f32
    %25 = vector.broadcast %cst_20 : f32 to vector<1x16x16xf32>
    %26 = arith.maximumf %24, %25 : vector<1x16x16xf32>
    %c1_21 = arith.constant 1 : index
    %c0_22 = arith.constant 0 : index
    %27 = memref.load %arg2[%c1_21, %c0_22] : memref<8x4xf32, #tpu.memory_space<smem>>
    %28 = vector.broadcast %27 : f32 to vector<1x16x16xf32>
    %29 = arith.mulf %28, %1 : vector<1x16x16xf32>
    %cst_23 = arith.constant 0.000000e+00 : f32
    %30 = vector.broadcast %cst_23 : f32 to vector<1x16x16xf32>
    %31 = arith.addf %30, %29 : vector<1x16x16xf32>
    %c1_24 = arith.constant 1 : index
    %c1_25 = arith.constant 1 : index
    %32 = memref.load %arg2[%c1_24, %c1_25] : memref<8x4xf32, #tpu.memory_space<smem>>
    %33 = vector.broadcast %32 : f32 to vector<1x16x16xf32>
    %34 = arith.mulf %33, %3 : vector<1x16x16xf32>
    %35 = arith.addf %31, %34 : vector<1x16x16xf32>
    %c1_26 = arith.constant 1 : index
    %c2_27 = arith.constant 2 : index
    %36 = memref.load %arg2[%c1_26, %c2_27] : memref<8x4xf32, #tpu.memory_space<smem>>
    %37 = vector.broadcast %36 : f32 to vector<1x16x16xf32>
    %38 = arith.mulf %37, %5 : vector<1x16x16xf32>
    %39 = arith.addf %35, %38 : vector<1x16x16xf32>
    %c1_28 = arith.constant 1 : index
    %c3_29 = arith.constant 3 : index
    %40 = memref.load %arg2[%c1_28, %c3_29] : memref<8x4xf32, #tpu.memory_space<smem>>
    %41 = vector.broadcast %40 : f32 to vector<1x16x16xf32>
    %42 = arith.mulf %41, %7 : vector<1x16x16xf32>
    %43 = arith.addf %39, %42 : vector<1x16x16xf32>
    %cst_30 = arith.constant 0.000000e+00 : f32
    %44 = vector.broadcast %cst_30 : f32 to vector<1x16x16xf32>
    %45 = arith.maximumf %43, %44 : vector<1x16x16xf32>
    %c2_31 = arith.constant 2 : index
    %c0_32 = arith.constant 0 : index
    %46 = memref.load %arg2[%c2_31, %c0_32] : memref<8x4xf32, #tpu.memory_space<smem>>
    %47 = vector.broadcast %46 : f32 to vector<1x16x16xf32>
    %48 = arith.mulf %47, %1 : vector<1x16x16xf32>
    %cst_33 = arith.constant 0.000000e+00 : f32
    %49 = vector.broadcast %cst_33 : f32 to vector<1x16x16xf32>
    %50 = arith.addf %49, %48 : vector<1x16x16xf32>
    %c2_34 = arith.constant 2 : index
    %c1_35 = arith.constant 1 : index
    %51 = memref.load %arg2[%c2_34, %c1_35] : memref<8x4xf32, #tpu.memory_space<smem>>
    %52 = vector.broadcast %51 : f32 to vector<1x16x16xf32>
    %53 = arith.mulf %52, %3 : vector<1x16x16xf32>
    %54 = arith.addf %50, %53 : vector<1x16x16xf32>
    %c2_36 = arith.constant 2 : index
    %c2_37 = arith.constant 2 : index
    %55 = memref.load %arg2[%c2_36, %c2_37] : memref<8x4xf32, #tpu.memory_space<smem>>
    %56 = vector.broadcast %55 : f32 to vector<1x16x16xf32>
    %57 = arith.mulf %56, %5 : vector<1x16x16xf32>
    %58 = arith.addf %54, %57 : vector<1x16x16xf32>
    %c2_38 = arith.constant 2 : index
    %c3_39 = arith.constant 3 : index
    %59 = memref.load %arg2[%c2_38, %c3_39] : memref<8x4xf32, #tpu.memory_space<smem>>
    %60 = vector.broadcast %59 : f32 to vector<1x16x16xf32>
    %61 = arith.mulf %60, %7 : vector<1x16x16xf32>
    %62 = arith.addf %58, %61 : vector<1x16x16xf32>
    %cst_40 = arith.constant 0.000000e+00 : f32
    %63 = vector.broadcast %cst_40 : f32 to vector<1x16x16xf32>
    %64 = arith.maximumf %62, %63 : vector<1x16x16xf32>
    %c3_41 = arith.constant 3 : index
    %c0_42 = arith.constant 0 : index
    %65 = memref.load %arg2[%c3_41, %c0_42] : memref<8x4xf32, #tpu.memory_space<smem>>
    %66 = vector.broadcast %65 : f32 to vector<1x16x16xf32>
    %67 = arith.mulf %66, %1 : vector<1x16x16xf32>
    %cst_43 = arith.constant 0.000000e+00 : f32
    %68 = vector.broadcast %cst_43 : f32 to vector<1x16x16xf32>
    %69 = arith.addf %68, %67 : vector<1x16x16xf32>
    %c3_44 = arith.constant 3 : index
    %c1_45 = arith.constant 1 : index
    %70 = memref.load %arg2[%c3_44, %c1_45] : memref<8x4xf32, #tpu.memory_space<smem>>
    %71 = vector.broadcast %70 : f32 to vector<1x16x16xf32>
    %72 = arith.mulf %71, %3 : vector<1x16x16xf32>
    %73 = arith.addf %69, %72 : vector<1x16x16xf32>
    %c3_46 = arith.constant 3 : index
    %c2_47 = arith.constant 2 : index
    %74 = memref.load %arg2[%c3_46, %c2_47] : memref<8x4xf32, #tpu.memory_space<smem>>
    %75 = vector.broadcast %74 : f32 to vector<1x16x16xf32>
    %76 = arith.mulf %75, %5 : vector<1x16x16xf32>
    %77 = arith.addf %73, %76 : vector<1x16x16xf32>
    %c3_48 = arith.constant 3 : index
    %c3_49 = arith.constant 3 : index
    %78 = memref.load %arg2[%c3_48, %c3_49] : memref<8x4xf32, #tpu.memory_space<smem>>
    %79 = vector.broadcast %78 : f32 to vector<1x16x16xf32>
    %80 = arith.mulf %79, %7 : vector<1x16x16xf32>
    %81 = arith.addf %77, %80 : vector<1x16x16xf32>
    %cst_50 = arith.constant 0.000000e+00 : f32
    %82 = vector.broadcast %cst_50 : f32 to vector<1x16x16xf32>
    %83 = arith.maximumf %81, %82 : vector<1x16x16xf32>
    %c4 = arith.constant 4 : index
    %c0_51 = arith.constant 0 : index
    %84 = memref.load %arg2[%c4, %c0_51] : memref<8x4xf32, #tpu.memory_space<smem>>
    %85 = vector.broadcast %84 : f32 to vector<1x16x16xf32>
    %86 = arith.mulf %85, %1 : vector<1x16x16xf32>
    %cst_52 = arith.constant 0.000000e+00 : f32
    %87 = vector.broadcast %cst_52 : f32 to vector<1x16x16xf32>
    %88 = arith.addf %87, %86 : vector<1x16x16xf32>
    %c4_53 = arith.constant 4 : index
    %c1_54 = arith.constant 1 : index
    %89 = memref.load %arg2[%c4_53, %c1_54] : memref<8x4xf32, #tpu.memory_space<smem>>
    %90 = vector.broadcast %89 : f32 to vector<1x16x16xf32>
    %91 = arith.mulf %90, %3 : vector<1x16x16xf32>
    %92 = arith.addf %88, %91 : vector<1x16x16xf32>
    %c4_55 = arith.constant 4 : index
    %c2_56 = arith.constant 2 : index
    %93 = memref.load %arg2[%c4_55, %c2_56] : memref<8x4xf32, #tpu.memory_space<smem>>
    %94 = vector.broadcast %93 : f32 to vector<1x16x16xf32>
    %95 = arith.mulf %94, %5 : vector<1x16x16xf32>
    %96 = arith.addf %92, %95 : vector<1x16x16xf32>
    %c4_57 = arith.constant 4 : index
    %c3_58 = arith.constant 3 : index
    %97 = memref.load %arg2[%c4_57, %c3_58] : memref<8x4xf32, #tpu.memory_space<smem>>
    %98 = vector.broadcast %97 : f32 to vector<1x16x16xf32>
    %99 = arith.mulf %98, %7 : vector<1x16x16xf32>
    %100 = arith.addf %96, %99 : vector<1x16x16xf32>
    %cst_59 = arith.constant 0.000000e+00 : f32
    %101 = vector.broadcast %cst_59 : f32 to vector<1x16x16xf32>
    %102 = arith.maximumf %100, %101 : vector<1x16x16xf32>
    %c5 = arith.constant 5 : index
    %c0_60 = arith.constant 0 : index
    %103 = memref.load %arg2[%c5, %c0_60] : memref<8x4xf32, #tpu.memory_space<smem>>
    %104 = vector.broadcast %103 : f32 to vector<1x16x16xf32>
    %105 = arith.mulf %104, %1 : vector<1x16x16xf32>
    %cst_61 = arith.constant 0.000000e+00 : f32
    %106 = vector.broadcast %cst_61 : f32 to vector<1x16x16xf32>
    %107 = arith.addf %106, %105 : vector<1x16x16xf32>
    %c5_62 = arith.constant 5 : index
    %c1_63 = arith.constant 1 : index
    %108 = memref.load %arg2[%c5_62, %c1_63] : memref<8x4xf32, #tpu.memory_space<smem>>
    %109 = vector.broadcast %108 : f32 to vector<1x16x16xf32>
    %110 = arith.mulf %109, %3 : vector<1x16x16xf32>
    %111 = arith.addf %107, %110 : vector<1x16x16xf32>
    %c5_64 = arith.constant 5 : index
    %c2_65 = arith.constant 2 : index
    %112 = memref.load %arg2[%c5_64, %c2_65] : memref<8x4xf32, #tpu.memory_space<smem>>
    %113 = vector.broadcast %112 : f32 to vector<1x16x16xf32>
    %114 = arith.mulf %113, %5 : vector<1x16x16xf32>
    %115 = arith.addf %111, %114 : vector<1x16x16xf32>
    %c5_66 = arith.constant 5 : index
    %c3_67 = arith.constant 3 : index
    %116 = memref.load %arg2[%c5_66, %c3_67] : memref<8x4xf32, #tpu.memory_space<smem>>
    %117 = vector.broadcast %116 : f32 to vector<1x16x16xf32>
    %118 = arith.mulf %117, %7 : vector<1x16x16xf32>
    %119 = arith.addf %115, %118 : vector<1x16x16xf32>
    %cst_68 = arith.constant 0.000000e+00 : f32
    %120 = vector.broadcast %cst_68 : f32 to vector<1x16x16xf32>
    %121 = arith.maximumf %119, %120 : vector<1x16x16xf32>
    %c6 = arith.constant 6 : index
    %c0_69 = arith.constant 0 : index
    %122 = memref.load %arg2[%c6, %c0_69] : memref<8x4xf32, #tpu.memory_space<smem>>
    %123 = vector.broadcast %122 : f32 to vector<1x16x16xf32>
    %124 = arith.mulf %123, %1 : vector<1x16x16xf32>
    %cst_70 = arith.constant 0.000000e+00 : f32
    %125 = vector.broadcast %cst_70 : f32 to vector<1x16x16xf32>
    %126 = arith.addf %125, %124 : vector<1x16x16xf32>
    %c6_71 = arith.constant 6 : index
    %c1_72 = arith.constant 1 : index
    %127 = memref.load %arg2[%c6_71, %c1_72] : memref<8x4xf32, #tpu.memory_space<smem>>
    %128 = vector.broadcast %127 : f32 to vector<1x16x16xf32>
    %129 = arith.mulf %128, %3 : vector<1x16x16xf32>
    %130 = arith.addf %126, %129 : vector<1x16x16xf32>
    %c6_73 = arith.constant 6 : index
    %c2_74 = arith.constant 2 : index
    %131 = memref.load %arg2[%c6_73, %c2_74] : memref<8x4xf32, #tpu.memory_space<smem>>
    %132 = vector.broadcast %131 : f32 to vector<1x16x16xf32>
    %133 = arith.mulf %132, %5 : vector<1x16x16xf32>
    %134 = arith.addf %130, %133 : vector<1x16x16xf32>
    %c6_75 = arith.constant 6 : index
    %c3_76 = arith.constant 3 : index
    %135 = memref.load %arg2[%c6_75, %c3_76] : memref<8x4xf32, #tpu.memory_space<smem>>
    %136 = vector.broadcast %135 : f32 to vector<1x16x16xf32>
    %137 = arith.mulf %136, %7 : vector<1x16x16xf32>
    %138 = arith.addf %134, %137 : vector<1x16x16xf32>
    %cst_77 = arith.constant 0.000000e+00 : f32
    %139 = vector.broadcast %cst_77 : f32 to vector<1x16x16xf32>
    %140 = arith.maximumf %138, %139 : vector<1x16x16xf32>
    %c7 = arith.constant 7 : index
    %c0_78 = arith.constant 0 : index
    %141 = memref.load %arg2[%c7, %c0_78] : memref<8x4xf32, #tpu.memory_space<smem>>
    %142 = vector.broadcast %141 : f32 to vector<1x16x16xf32>
    %143 = arith.mulf %142, %1 : vector<1x16x16xf32>
    %cst_79 = arith.constant 0.000000e+00 : f32
    %144 = vector.broadcast %cst_79 : f32 to vector<1x16x16xf32>
    %145 = arith.addf %144, %143 : vector<1x16x16xf32>
    %c7_80 = arith.constant 7 : index
    %c1_81 = arith.constant 1 : index
    %146 = memref.load %arg2[%c7_80, %c1_81] : memref<8x4xf32, #tpu.memory_space<smem>>
    %147 = vector.broadcast %146 : f32 to vector<1x16x16xf32>
    %148 = arith.mulf %147, %3 : vector<1x16x16xf32>
    %149 = arith.addf %145, %148 : vector<1x16x16xf32>
    %c7_82 = arith.constant 7 : index
    %c2_83 = arith.constant 2 : index
    %150 = memref.load %arg2[%c7_82, %c2_83] : memref<8x4xf32, #tpu.memory_space<smem>>
    %151 = vector.broadcast %150 : f32 to vector<1x16x16xf32>
    %152 = arith.mulf %151, %5 : vector<1x16x16xf32>
    %153 = arith.addf %149, %152 : vector<1x16x16xf32>
    %c7_84 = arith.constant 7 : index
    %c3_85 = arith.constant 3 : index
    %154 = memref.load %arg2[%c7_84, %c3_85] : memref<8x4xf32, #tpu.memory_space<smem>>
    %155 = vector.broadcast %154 : f32 to vector<1x16x16xf32>
    %156 = arith.mulf %155, %7 : vector<1x16x16xf32>
    %157 = arith.addf %153, %156 : vector<1x16x16xf32>
    %cst_86 = arith.constant 0.000000e+00 : f32
    %158 = vector.broadcast %cst_86 : f32 to vector<1x16x16xf32>
    %159 = arith.maximumf %157, %158 : vector<1x16x16xf32>
    %c0_87 = arith.constant 0 : index
    %c0_88 = arith.constant 0 : index
    %160 = memref.load %arg3[%c0_87, %c0_88] : memref<8x8xf32, #tpu.memory_space<smem>>
    %161 = vector.broadcast %160 : f32 to vector<1x16x16xf32>
    %162 = arith.mulf %161, %26 : vector<1x16x16xf32>
    %cst_89 = arith.constant 0.000000e+00 : f32
    %163 = vector.broadcast %cst_89 : f32 to vector<1x16x16xf32>
    %164 = arith.addf %163, %162 : vector<1x16x16xf32>
    %c0_90 = arith.constant 0 : index
    %c1_91 = arith.constant 1 : index
    %165 = memref.load %arg3[%c0_90, %c1_91] : memref<8x8xf32, #tpu.memory_space<smem>>
    %166 = vector.broadcast %165 : f32 to vector<1x16x16xf32>
    %167 = arith.mulf %166, %45 : vector<1x16x16xf32>
    %168 = arith.addf %164, %167 : vector<1x16x16xf32>
    %c0_92 = arith.constant 0 : index
    %c2_93 = arith.constant 2 : index
    %169 = memref.load %arg3[%c0_92, %c2_93] : memref<8x8xf32, #tpu.memory_space<smem>>
    %170 = vector.broadcast %169 : f32 to vector<1x16x16xf32>
    %171 = arith.mulf %170, %64 : vector<1x16x16xf32>
    %172 = arith.addf %168, %171 : vector<1x16x16xf32>
    %c0_94 = arith.constant 0 : index
    %c3_95 = arith.constant 3 : index
    %173 = memref.load %arg3[%c0_94, %c3_95] : memref<8x8xf32, #tpu.memory_space<smem>>
    %174 = vector.broadcast %173 : f32 to vector<1x16x16xf32>
    %175 = arith.mulf %174, %83 : vector<1x16x16xf32>
    %176 = arith.addf %172, %175 : vector<1x16x16xf32>
    %c0_96 = arith.constant 0 : index
    %c4_97 = arith.constant 4 : index
    %177 = memref.load %arg3[%c0_96, %c4_97] : memref<8x8xf32, #tpu.memory_space<smem>>
    %178 = vector.broadcast %177 : f32 to vector<1x16x16xf32>
    %179 = arith.mulf %178, %102 : vector<1x16x16xf32>
    %180 = arith.addf %176, %179 : vector<1x16x16xf32>
    %c0_98 = arith.constant 0 : index
    %c5_99 = arith.constant 5 : index
    %181 = memref.load %arg3[%c0_98, %c5_99] : memref<8x8xf32, #tpu.memory_space<smem>>
    %182 = vector.broadcast %181 : f32 to vector<1x16x16xf32>
    %183 = arith.mulf %182, %121 : vector<1x16x16xf32>
    %184 = arith.addf %180, %183 : vector<1x16x16xf32>
    %c0_100 = arith.constant 0 : index
    %c6_101 = arith.constant 6 : index
    %185 = memref.load %arg3[%c0_100, %c6_101] : memref<8x8xf32, #tpu.memory_space<smem>>
    %186 = vector.broadcast %185 : f32 to vector<1x16x16xf32>
    %187 = arith.mulf %186, %140 : vector<1x16x16xf32>
    %188 = arith.addf %184, %187 : vector<1x16x16xf32>
    %c0_102 = arith.constant 0 : index
    %c7_103 = arith.constant 7 : index
    %189 = memref.load %arg3[%c0_102, %c7_103] : memref<8x8xf32, #tpu.memory_space<smem>>
    %190 = vector.broadcast %189 : f32 to vector<1x16x16xf32>
    %191 = arith.mulf %190, %159 : vector<1x16x16xf32>
    %192 = arith.addf %188, %191 : vector<1x16x16xf32>
    %cst_104 = arith.constant 0.000000e+00 : f32
    %193 = vector.broadcast %cst_104 : f32 to vector<1x16x16xf32>
    %194 = arith.maximumf %192, %193 : vector<1x16x16xf32>
    %c1_105 = arith.constant 1 : index
    %c0_106 = arith.constant 0 : index
    %195 = memref.load %arg3[%c1_105, %c0_106] : memref<8x8xf32, #tpu.memory_space<smem>>
    %196 = vector.broadcast %195 : f32 to vector<1x16x16xf32>
    %197 = arith.mulf %196, %26 : vector<1x16x16xf32>
    %cst_107 = arith.constant 0.000000e+00 : f32
    %198 = vector.broadcast %cst_107 : f32 to vector<1x16x16xf32>
    %199 = arith.addf %198, %197 : vector<1x16x16xf32>
    %c1_108 = arith.constant 1 : index
    %c1_109 = arith.constant 1 : index
    %200 = memref.load %arg3[%c1_108, %c1_109] : memref<8x8xf32, #tpu.memory_space<smem>>
    %201 = vector.broadcast %200 : f32 to vector<1x16x16xf32>
    %202 = arith.mulf %201, %45 : vector<1x16x16xf32>
    %203 = arith.addf %199, %202 : vector<1x16x16xf32>
    %c1_110 = arith.constant 1 : index
    %c2_111 = arith.constant 2 : index
    %204 = memref.load %arg3[%c1_110, %c2_111] : memref<8x8xf32, #tpu.memory_space<smem>>
    %205 = vector.broadcast %204 : f32 to vector<1x16x16xf32>
    %206 = arith.mulf %205, %64 : vector<1x16x16xf32>
    %207 = arith.addf %203, %206 : vector<1x16x16xf32>
    %c1_112 = arith.constant 1 : index
    %c3_113 = arith.constant 3 : index
    %208 = memref.load %arg3[%c1_112, %c3_113] : memref<8x8xf32, #tpu.memory_space<smem>>
    %209 = vector.broadcast %208 : f32 to vector<1x16x16xf32>
    %210 = arith.mulf %209, %83 : vector<1x16x16xf32>
    %211 = arith.addf %207, %210 : vector<1x16x16xf32>
    %c1_114 = arith.constant 1 : index
    %c4_115 = arith.constant 4 : index
    %212 = memref.load %arg3[%c1_114, %c4_115] : memref<8x8xf32, #tpu.memory_space<smem>>
    %213 = vector.broadcast %212 : f32 to vector<1x16x16xf32>
    %214 = arith.mulf %213, %102 : vector<1x16x16xf32>
    %215 = arith.addf %211, %214 : vector<1x16x16xf32>
    %c1_116 = arith.constant 1 : index
    %c5_117 = arith.constant 5 : index
    %216 = memref.load %arg3[%c1_116, %c5_117] : memref<8x8xf32, #tpu.memory_space<smem>>
    %217 = vector.broadcast %216 : f32 to vector<1x16x16xf32>
    %218 = arith.mulf %217, %121 : vector<1x16x16xf32>
    %219 = arith.addf %215, %218 : vector<1x16x16xf32>
    %c1_118 = arith.constant 1 : index
    %c6_119 = arith.constant 6 : index
    %220 = memref.load %arg3[%c1_118, %c6_119] : memref<8x8xf32, #tpu.memory_space<smem>>
    %221 = vector.broadcast %220 : f32 to vector<1x16x16xf32>
    %222 = arith.mulf %221, %140 : vector<1x16x16xf32>
    %223 = arith.addf %219, %222 : vector<1x16x16xf32>
    %c1_120 = arith.constant 1 : index
    %c7_121 = arith.constant 7 : index
    %224 = memref.load %arg3[%c1_120, %c7_121] : memref<8x8xf32, #tpu.memory_space<smem>>
    %225 = vector.broadcast %224 : f32 to vector<1x16x16xf32>
    %226 = arith.mulf %225, %159 : vector<1x16x16xf32>
    %227 = arith.addf %223, %226 : vector<1x16x16xf32>
    %cst_122 = arith.constant 0.000000e+00 : f32
    %228 = vector.broadcast %cst_122 : f32 to vector<1x16x16xf32>
    %229 = arith.maximumf %227, %228 : vector<1x16x16xf32>
    %c2_123 = arith.constant 2 : index
    %c0_124 = arith.constant 0 : index
    %230 = memref.load %arg3[%c2_123, %c0_124] : memref<8x8xf32, #tpu.memory_space<smem>>
    %231 = vector.broadcast %230 : f32 to vector<1x16x16xf32>
    %232 = arith.mulf %231, %26 : vector<1x16x16xf32>
    %cst_125 = arith.constant 0.000000e+00 : f32
    %233 = vector.broadcast %cst_125 : f32 to vector<1x16x16xf32>
    %234 = arith.addf %233, %232 : vector<1x16x16xf32>
    %c2_126 = arith.constant 2 : index
    %c1_127 = arith.constant 1 : index
    %235 = memref.load %arg3[%c2_126, %c1_127] : memref<8x8xf32, #tpu.memory_space<smem>>
    %236 = vector.broadcast %235 : f32 to vector<1x16x16xf32>
    %237 = arith.mulf %236, %45 : vector<1x16x16xf32>
    %238 = arith.addf %234, %237 : vector<1x16x16xf32>
    %c2_128 = arith.constant 2 : index
    %c2_129 = arith.constant 2 : index
    %239 = memref.load %arg3[%c2_128, %c2_129] : memref<8x8xf32, #tpu.memory_space<smem>>
    %240 = vector.broadcast %239 : f32 to vector<1x16x16xf32>
    %241 = arith.mulf %240, %64 : vector<1x16x16xf32>
    %242 = arith.addf %238, %241 : vector<1x16x16xf32>
    %c2_130 = arith.constant 2 : index
    %c3_131 = arith.constant 3 : index
    %243 = memref.load %arg3[%c2_130, %c3_131] : memref<8x8xf32, #tpu.memory_space<smem>>
    %244 = vector.broadcast %243 : f32 to vector<1x16x16xf32>
    %245 = arith.mulf %244, %83 : vector<1x16x16xf32>
    %246 = arith.addf %242, %245 : vector<1x16x16xf32>
    %c2_132 = arith.constant 2 : index
    %c4_133 = arith.constant 4 : index
    %247 = memref.load %arg3[%c2_132, %c4_133] : memref<8x8xf32, #tpu.memory_space<smem>>
    %248 = vector.broadcast %247 : f32 to vector<1x16x16xf32>
    %249 = arith.mulf %248, %102 : vector<1x16x16xf32>
    %250 = arith.addf %246, %249 : vector<1x16x16xf32>
    %c2_134 = arith.constant 2 : index
    %c5_135 = arith.constant 5 : index
    %251 = memref.load %arg3[%c2_134, %c5_135] : memref<8x8xf32, #tpu.memory_space<smem>>
    %252 = vector.broadcast %251 : f32 to vector<1x16x16xf32>
    %253 = arith.mulf %252, %121 : vector<1x16x16xf32>
    %254 = arith.addf %250, %253 : vector<1x16x16xf32>
    %c2_136 = arith.constant 2 : index
    %c6_137 = arith.constant 6 : index
    %255 = memref.load %arg3[%c2_136, %c6_137] : memref<8x8xf32, #tpu.memory_space<smem>>
    %256 = vector.broadcast %255 : f32 to vector<1x16x16xf32>
    %257 = arith.mulf %256, %140 : vector<1x16x16xf32>
    %258 = arith.addf %254, %257 : vector<1x16x16xf32>
    %c2_138 = arith.constant 2 : index
    %c7_139 = arith.constant 7 : index
    %259 = memref.load %arg3[%c2_138, %c7_139] : memref<8x8xf32, #tpu.memory_space<smem>>
    %260 = vector.broadcast %259 : f32 to vector<1x16x16xf32>
    %261 = arith.mulf %260, %159 : vector<1x16x16xf32>
    %262 = arith.addf %258, %261 : vector<1x16x16xf32>
    %cst_140 = arith.constant 0.000000e+00 : f32
    %263 = vector.broadcast %cst_140 : f32 to vector<1x16x16xf32>
    %264 = arith.maximumf %262, %263 : vector<1x16x16xf32>
    %c3_141 = arith.constant 3 : index
    %c0_142 = arith.constant 0 : index
    %265 = memref.load %arg3[%c3_141, %c0_142] : memref<8x8xf32, #tpu.memory_space<smem>>
    %266 = vector.broadcast %265 : f32 to vector<1x16x16xf32>
    %267 = arith.mulf %266, %26 : vector<1x16x16xf32>
    %cst_143 = arith.constant 0.000000e+00 : f32
    %268 = vector.broadcast %cst_143 : f32 to vector<1x16x16xf32>
    %269 = arith.addf %268, %267 : vector<1x16x16xf32>
    %c3_144 = arith.constant 3 : index
    %c1_145 = arith.constant 1 : index
    %270 = memref.load %arg3[%c3_144, %c1_145] : memref<8x8xf32, #tpu.memory_space<smem>>
    %271 = vector.broadcast %270 : f32 to vector<1x16x16xf32>
    %272 = arith.mulf %271, %45 : vector<1x16x16xf32>
    %273 = arith.addf %269, %272 : vector<1x16x16xf32>
    %c3_146 = arith.constant 3 : index
    %c2_147 = arith.constant 2 : index
    %274 = memref.load %arg3[%c3_146, %c2_147] : memref<8x8xf32, #tpu.memory_space<smem>>
    %275 = vector.broadcast %274 : f32 to vector<1x16x16xf32>
    %276 = arith.mulf %275, %64 : vector<1x16x16xf32>
    %277 = arith.addf %273, %276 : vector<1x16x16xf32>
    %c3_148 = arith.constant 3 : index
    %c3_149 = arith.constant 3 : index
    %278 = memref.load %arg3[%c3_148, %c3_149] : memref<8x8xf32, #tpu.memory_space<smem>>
    %279 = vector.broadcast %278 : f32 to vector<1x16x16xf32>
    %280 = arith.mulf %279, %83 : vector<1x16x16xf32>
    %281 = arith.addf %277, %280 : vector<1x16x16xf32>
    %c3_150 = arith.constant 3 : index
    %c4_151 = arith.constant 4 : index
    %282 = memref.load %arg3[%c3_150, %c4_151] : memref<8x8xf32, #tpu.memory_space<smem>>
    %283 = vector.broadcast %282 : f32 to vector<1x16x16xf32>
    %284 = arith.mulf %283, %102 : vector<1x16x16xf32>
    %285 = arith.addf %281, %284 : vector<1x16x16xf32>
    %c3_152 = arith.constant 3 : index
    %c5_153 = arith.constant 5 : index
    %286 = memref.load %arg3[%c3_152, %c5_153] : memref<8x8xf32, #tpu.memory_space<smem>>
    %287 = vector.broadcast %286 : f32 to vector<1x16x16xf32>
    %288 = arith.mulf %287, %121 : vector<1x16x16xf32>
    %289 = arith.addf %285, %288 : vector<1x16x16xf32>
    %c3_154 = arith.constant 3 : index
    %c6_155 = arith.constant 6 : index
    %290 = memref.load %arg3[%c3_154, %c6_155] : memref<8x8xf32, #tpu.memory_space<smem>>
    %291 = vector.broadcast %290 : f32 to vector<1x16x16xf32>
    %292 = arith.mulf %291, %140 : vector<1x16x16xf32>
    %293 = arith.addf %289, %292 : vector<1x16x16xf32>
    %c3_156 = arith.constant 3 : index
    %c7_157 = arith.constant 7 : index
    %294 = memref.load %arg3[%c3_156, %c7_157] : memref<8x8xf32, #tpu.memory_space<smem>>
    %295 = vector.broadcast %294 : f32 to vector<1x16x16xf32>
    %296 = arith.mulf %295, %159 : vector<1x16x16xf32>
    %297 = arith.addf %293, %296 : vector<1x16x16xf32>
    %cst_158 = arith.constant 0.000000e+00 : f32
    %298 = vector.broadcast %cst_158 : f32 to vector<1x16x16xf32>
    %299 = arith.maximumf %297, %298 : vector<1x16x16xf32>
    %c4_159 = arith.constant 4 : index
    %c0_160 = arith.constant 0 : index
    %300 = memref.load %arg3[%c4_159, %c0_160] : memref<8x8xf32, #tpu.memory_space<smem>>
    %301 = vector.broadcast %300 : f32 to vector<1x16x16xf32>
    %302 = arith.mulf %301, %26 : vector<1x16x16xf32>
    %cst_161 = arith.constant 0.000000e+00 : f32
    %303 = vector.broadcast %cst_161 : f32 to vector<1x16x16xf32>
    %304 = arith.addf %303, %302 : vector<1x16x16xf32>
    %c4_162 = arith.constant 4 : index
    %c1_163 = arith.constant 1 : index
    %305 = memref.load %arg3[%c4_162, %c1_163] : memref<8x8xf32, #tpu.memory_space<smem>>
    %306 = vector.broadcast %305 : f32 to vector<1x16x16xf32>
    %307 = arith.mulf %306, %45 : vector<1x16x16xf32>
    %308 = arith.addf %304, %307 : vector<1x16x16xf32>
    %c4_164 = arith.constant 4 : index
    %c2_165 = arith.constant 2 : index
    %309 = memref.load %arg3[%c4_164, %c2_165] : memref<8x8xf32, #tpu.memory_space<smem>>
    %310 = vector.broadcast %309 : f32 to vector<1x16x16xf32>
    %311 = arith.mulf %310, %64 : vector<1x16x16xf32>
    %312 = arith.addf %308, %311 : vector<1x16x16xf32>
    %c4_166 = arith.constant 4 : index
    %c3_167 = arith.constant 3 : index
    %313 = memref.load %arg3[%c4_166, %c3_167] : memref<8x8xf32, #tpu.memory_space<smem>>
    %314 = vector.broadcast %313 : f32 to vector<1x16x16xf32>
    %315 = arith.mulf %314, %83 : vector<1x16x16xf32>
    %316 = arith.addf %312, %315 : vector<1x16x16xf32>
    %c4_168 = arith.constant 4 : index
    %c4_169 = arith.constant 4 : index
    %317 = memref.load %arg3[%c4_168, %c4_169] : memref<8x8xf32, #tpu.memory_space<smem>>
    %318 = vector.broadcast %317 : f32 to vector<1x16x16xf32>
    %319 = arith.mulf %318, %102 : vector<1x16x16xf32>
    %320 = arith.addf %316, %319 : vector<1x16x16xf32>
    %c4_170 = arith.constant 4 : index
    %c5_171 = arith.constant 5 : index
    %321 = memref.load %arg3[%c4_170, %c5_171] : memref<8x8xf32, #tpu.memory_space<smem>>
    %322 = vector.broadcast %321 : f32 to vector<1x16x16xf32>
    %323 = arith.mulf %322, %121 : vector<1x16x16xf32>
    %324 = arith.addf %320, %323 : vector<1x16x16xf32>
    %c4_172 = arith.constant 4 : index
    %c6_173 = arith.constant 6 : index
    %325 = memref.load %arg3[%c4_172, %c6_173] : memref<8x8xf32, #tpu.memory_space<smem>>
    %326 = vector.broadcast %325 : f32 to vector<1x16x16xf32>
    %327 = arith.mulf %326, %140 : vector<1x16x16xf32>
    %328 = arith.addf %324, %327 : vector<1x16x16xf32>
    %c4_174 = arith.constant 4 : index
    %c7_175 = arith.constant 7 : index
    %329 = memref.load %arg3[%c4_174, %c7_175] : memref<8x8xf32, #tpu.memory_space<smem>>
    %330 = vector.broadcast %329 : f32 to vector<1x16x16xf32>
    %331 = arith.mulf %330, %159 : vector<1x16x16xf32>
    %332 = arith.addf %328, %331 : vector<1x16x16xf32>
    %cst_176 = arith.constant 0.000000e+00 : f32
    %333 = vector.broadcast %cst_176 : f32 to vector<1x16x16xf32>
    %334 = arith.maximumf %332, %333 : vector<1x16x16xf32>
    %c5_177 = arith.constant 5 : index
    %c0_178 = arith.constant 0 : index
    %335 = memref.load %arg3[%c5_177, %c0_178] : memref<8x8xf32, #tpu.memory_space<smem>>
    %336 = vector.broadcast %335 : f32 to vector<1x16x16xf32>
    %337 = arith.mulf %336, %26 : vector<1x16x16xf32>
    %cst_179 = arith.constant 0.000000e+00 : f32
    %338 = vector.broadcast %cst_179 : f32 to vector<1x16x16xf32>
    %339 = arith.addf %338, %337 : vector<1x16x16xf32>
    %c5_180 = arith.constant 5 : index
    %c1_181 = arith.constant 1 : index
    %340 = memref.load %arg3[%c5_180, %c1_181] : memref<8x8xf32, #tpu.memory_space<smem>>
    %341 = vector.broadcast %340 : f32 to vector<1x16x16xf32>
    %342 = arith.mulf %341, %45 : vector<1x16x16xf32>
    %343 = arith.addf %339, %342 : vector<1x16x16xf32>
    %c5_182 = arith.constant 5 : index
    %c2_183 = arith.constant 2 : index
    %344 = memref.load %arg3[%c5_182, %c2_183] : memref<8x8xf32, #tpu.memory_space<smem>>
    %345 = vector.broadcast %344 : f32 to vector<1x16x16xf32>
    %346 = arith.mulf %345, %64 : vector<1x16x16xf32>
    %347 = arith.addf %343, %346 : vector<1x16x16xf32>
    %c5_184 = arith.constant 5 : index
    %c3_185 = arith.constant 3 : index
    %348 = memref.load %arg3[%c5_184, %c3_185] : memref<8x8xf32, #tpu.memory_space<smem>>
    %349 = vector.broadcast %348 : f32 to vector<1x16x16xf32>
    %350 = arith.mulf %349, %83 : vector<1x16x16xf32>
    %351 = arith.addf %347, %350 : vector<1x16x16xf32>
    %c5_186 = arith.constant 5 : index
    %c4_187 = arith.constant 4 : index
    %352 = memref.load %arg3[%c5_186, %c4_187] : memref<8x8xf32, #tpu.memory_space<smem>>
    %353 = vector.broadcast %352 : f32 to vector<1x16x16xf32>
    %354 = arith.mulf %353, %102 : vector<1x16x16xf32>
    %355 = arith.addf %351, %354 : vector<1x16x16xf32>
    %c5_188 = arith.constant 5 : index
    %c5_189 = arith.constant 5 : index
    %356 = memref.load %arg3[%c5_188, %c5_189] : memref<8x8xf32, #tpu.memory_space<smem>>
    %357 = vector.broadcast %356 : f32 to vector<1x16x16xf32>
    %358 = arith.mulf %357, %121 : vector<1x16x16xf32>
    %359 = arith.addf %355, %358 : vector<1x16x16xf32>
    %c5_190 = arith.constant 5 : index
    %c6_191 = arith.constant 6 : index
    %360 = memref.load %arg3[%c5_190, %c6_191] : memref<8x8xf32, #tpu.memory_space<smem>>
    %361 = vector.broadcast %360 : f32 to vector<1x16x16xf32>
    %362 = arith.mulf %361, %140 : vector<1x16x16xf32>
    %363 = arith.addf %359, %362 : vector<1x16x16xf32>
    %c5_192 = arith.constant 5 : index
    %c7_193 = arith.constant 7 : index
    %364 = memref.load %arg3[%c5_192, %c7_193] : memref<8x8xf32, #tpu.memory_space<smem>>
    %365 = vector.broadcast %364 : f32 to vector<1x16x16xf32>
    %366 = arith.mulf %365, %159 : vector<1x16x16xf32>
    %367 = arith.addf %363, %366 : vector<1x16x16xf32>
    %cst_194 = arith.constant 0.000000e+00 : f32
    %368 = vector.broadcast %cst_194 : f32 to vector<1x16x16xf32>
    %369 = arith.maximumf %367, %368 : vector<1x16x16xf32>
    %c6_195 = arith.constant 6 : index
    %c0_196 = arith.constant 0 : index
    %370 = memref.load %arg3[%c6_195, %c0_196] : memref<8x8xf32, #tpu.memory_space<smem>>
    %371 = vector.broadcast %370 : f32 to vector<1x16x16xf32>
    %372 = arith.mulf %371, %26 : vector<1x16x16xf32>
    %cst_197 = arith.constant 0.000000e+00 : f32
    %373 = vector.broadcast %cst_197 : f32 to vector<1x16x16xf32>
    %374 = arith.addf %373, %372 : vector<1x16x16xf32>
    %c6_198 = arith.constant 6 : index
    %c1_199 = arith.constant 1 : index
    %375 = memref.load %arg3[%c6_198, %c1_199] : memref<8x8xf32, #tpu.memory_space<smem>>
    %376 = vector.broadcast %375 : f32 to vector<1x16x16xf32>
    %377 = arith.mulf %376, %45 : vector<1x16x16xf32>
    %378 = arith.addf %374, %377 : vector<1x16x16xf32>
    %c6_200 = arith.constant 6 : index
    %c2_201 = arith.constant 2 : index
    %379 = memref.load %arg3[%c6_200, %c2_201] : memref<8x8xf32, #tpu.memory_space<smem>>
    %380 = vector.broadcast %379 : f32 to vector<1x16x16xf32>
    %381 = arith.mulf %380, %64 : vector<1x16x16xf32>
    %382 = arith.addf %378, %381 : vector<1x16x16xf32>
    %c6_202 = arith.constant 6 : index
    %c3_203 = arith.constant 3 : index
    %383 = memref.load %arg3[%c6_202, %c3_203] : memref<8x8xf32, #tpu.memory_space<smem>>
    %384 = vector.broadcast %383 : f32 to vector<1x16x16xf32>
    %385 = arith.mulf %384, %83 : vector<1x16x16xf32>
    %386 = arith.addf %382, %385 : vector<1x16x16xf32>
    %c6_204 = arith.constant 6 : index
    %c4_205 = arith.constant 4 : index
    %387 = memref.load %arg3[%c6_204, %c4_205] : memref<8x8xf32, #tpu.memory_space<smem>>
    %388 = vector.broadcast %387 : f32 to vector<1x16x16xf32>
    %389 = arith.mulf %388, %102 : vector<1x16x16xf32>
    %390 = arith.addf %386, %389 : vector<1x16x16xf32>
    %c6_206 = arith.constant 6 : index
    %c5_207 = arith.constant 5 : index
    %391 = memref.load %arg3[%c6_206, %c5_207] : memref<8x8xf32, #tpu.memory_space<smem>>
    %392 = vector.broadcast %391 : f32 to vector<1x16x16xf32>
    %393 = arith.mulf %392, %121 : vector<1x16x16xf32>
    %394 = arith.addf %390, %393 : vector<1x16x16xf32>
    %c6_208 = arith.constant 6 : index
    %c6_209 = arith.constant 6 : index
    %395 = memref.load %arg3[%c6_208, %c6_209] : memref<8x8xf32, #tpu.memory_space<smem>>
    %396 = vector.broadcast %395 : f32 to vector<1x16x16xf32>
    %397 = arith.mulf %396, %140 : vector<1x16x16xf32>
    %398 = arith.addf %394, %397 : vector<1x16x16xf32>
    %c6_210 = arith.constant 6 : index
    %c7_211 = arith.constant 7 : index
    %399 = memref.load %arg3[%c6_210, %c7_211] : memref<8x8xf32, #tpu.memory_space<smem>>
    %400 = vector.broadcast %399 : f32 to vector<1x16x16xf32>
    %401 = arith.mulf %400, %159 : vector<1x16x16xf32>
    %402 = arith.addf %398, %401 : vector<1x16x16xf32>
    %cst_212 = arith.constant 0.000000e+00 : f32
    %403 = vector.broadcast %cst_212 : f32 to vector<1x16x16xf32>
    %404 = arith.maximumf %402, %403 : vector<1x16x16xf32>
    %c7_213 = arith.constant 7 : index
    %c0_214 = arith.constant 0 : index
    %405 = memref.load %arg3[%c7_213, %c0_214] : memref<8x8xf32, #tpu.memory_space<smem>>
    %406 = vector.broadcast %405 : f32 to vector<1x16x16xf32>
    %407 = arith.mulf %406, %26 : vector<1x16x16xf32>
    %cst_215 = arith.constant 0.000000e+00 : f32
    %408 = vector.broadcast %cst_215 : f32 to vector<1x16x16xf32>
    %409 = arith.addf %408, %407 : vector<1x16x16xf32>
    %c7_216 = arith.constant 7 : index
    %c1_217 = arith.constant 1 : index
    %410 = memref.load %arg3[%c7_216, %c1_217] : memref<8x8xf32, #tpu.memory_space<smem>>
    %411 = vector.broadcast %410 : f32 to vector<1x16x16xf32>
    %412 = arith.mulf %411, %45 : vector<1x16x16xf32>
    %413 = arith.addf %409, %412 : vector<1x16x16xf32>
    %c7_218 = arith.constant 7 : index
    %c2_219 = arith.constant 2 : index
    %414 = memref.load %arg3[%c7_218, %c2_219] : memref<8x8xf32, #tpu.memory_space<smem>>
    %415 = vector.broadcast %414 : f32 to vector<1x16x16xf32>
    %416 = arith.mulf %415, %64 : vector<1x16x16xf32>
    %417 = arith.addf %413, %416 : vector<1x16x16xf32>
    %c7_220 = arith.constant 7 : index
    %c3_221 = arith.constant 3 : index
    %418 = memref.load %arg3[%c7_220, %c3_221] : memref<8x8xf32, #tpu.memory_space<smem>>
    %419 = vector.broadcast %418 : f32 to vector<1x16x16xf32>
    %420 = arith.mulf %419, %83 : vector<1x16x16xf32>
    %421 = arith.addf %417, %420 : vector<1x16x16xf32>
    %c7_222 = arith.constant 7 : index
    %c4_223 = arith.constant 4 : index
    %422 = memref.load %arg3[%c7_222, %c4_223] : memref<8x8xf32, #tpu.memory_space<smem>>
    %423 = vector.broadcast %422 : f32 to vector<1x16x16xf32>
    %424 = arith.mulf %423, %102 : vector<1x16x16xf32>
    %425 = arith.addf %421, %424 : vector<1x16x16xf32>
    %c7_224 = arith.constant 7 : index
    %c5_225 = arith.constant 5 : index
    %426 = memref.load %arg3[%c7_224, %c5_225] : memref<8x8xf32, #tpu.memory_space<smem>>
    %427 = vector.broadcast %426 : f32 to vector<1x16x16xf32>
    %428 = arith.mulf %427, %121 : vector<1x16x16xf32>
    %429 = arith.addf %425, %428 : vector<1x16x16xf32>
    %c7_226 = arith.constant 7 : index
    %c6_227 = arith.constant 6 : index
    %430 = memref.load %arg3[%c7_226, %c6_227] : memref<8x8xf32, #tpu.memory_space<smem>>
    %431 = vector.broadcast %430 : f32 to vector<1x16x16xf32>
    %432 = arith.mulf %431, %140 : vector<1x16x16xf32>
    %433 = arith.addf %429, %432 : vector<1x16x16xf32>
    %c7_228 = arith.constant 7 : index
    %c7_229 = arith.constant 7 : index
    %434 = memref.load %arg3[%c7_228, %c7_229] : memref<8x8xf32, #tpu.memory_space<smem>>
    %435 = vector.broadcast %434 : f32 to vector<1x16x16xf32>
    %436 = arith.mulf %435, %159 : vector<1x16x16xf32>
    %437 = arith.addf %433, %436 : vector<1x16x16xf32>
    %cst_230 = arith.constant 0.000000e+00 : f32
    %438 = vector.broadcast %cst_230 : f32 to vector<1x16x16xf32>
    %439 = arith.maximumf %437, %438 : vector<1x16x16xf32>
    %c0_231 = arith.constant 0 : index
    %c0_232 = arith.constant 0 : index
    %440 = memref.load %arg4[%c0_231, %c0_232] : memref<8x4xf32, #tpu.memory_space<smem>>
    %441 = vector.broadcast %440 : f32 to vector<1x16x16xf32>
    %442 = arith.mulf %441, %1 : vector<1x16x16xf32>
    %cst_233 = arith.constant 0.000000e+00 : f32
    %443 = vector.broadcast %cst_233 : f32 to vector<1x16x16xf32>
    %444 = arith.addf %443, %442 : vector<1x16x16xf32>
    %c0_234 = arith.constant 0 : index
    %c1_235 = arith.constant 1 : index
    %445 = memref.load %arg4[%c0_234, %c1_235] : memref<8x4xf32, #tpu.memory_space<smem>>
    %446 = vector.broadcast %445 : f32 to vector<1x16x16xf32>
    %447 = arith.mulf %446, %3 : vector<1x16x16xf32>
    %448 = arith.addf %444, %447 : vector<1x16x16xf32>
    %c0_236 = arith.constant 0 : index
    %c2_237 = arith.constant 2 : index
    %449 = memref.load %arg4[%c0_236, %c2_237] : memref<8x4xf32, #tpu.memory_space<smem>>
    %450 = vector.broadcast %449 : f32 to vector<1x16x16xf32>
    %451 = arith.mulf %450, %5 : vector<1x16x16xf32>
    %452 = arith.addf %448, %451 : vector<1x16x16xf32>
    %c0_238 = arith.constant 0 : index
    %c3_239 = arith.constant 3 : index
    %453 = memref.load %arg4[%c0_238, %c3_239] : memref<8x4xf32, #tpu.memory_space<smem>>
    %454 = vector.broadcast %453 : f32 to vector<1x16x16xf32>
    %455 = arith.mulf %454, %7 : vector<1x16x16xf32>
    %456 = arith.addf %452, %455 : vector<1x16x16xf32>
    %cst_240 = arith.constant 0.000000e+00 : f32
    %457 = vector.broadcast %cst_240 : f32 to vector<1x16x16xf32>
    %458 = arith.maximumf %456, %457 : vector<1x16x16xf32>
    %c1_241 = arith.constant 1 : index
    %c0_242 = arith.constant 0 : index
    %459 = memref.load %arg4[%c1_241, %c0_242] : memref<8x4xf32, #tpu.memory_space<smem>>
    %460 = vector.broadcast %459 : f32 to vector<1x16x16xf32>
    %461 = arith.mulf %460, %1 : vector<1x16x16xf32>
    %cst_243 = arith.constant 0.000000e+00 : f32
    %462 = vector.broadcast %cst_243 : f32 to vector<1x16x16xf32>
    %463 = arith.addf %462, %461 : vector<1x16x16xf32>
    %c1_244 = arith.constant 1 : index
    %c1_245 = arith.constant 1 : index
    %464 = memref.load %arg4[%c1_244, %c1_245] : memref<8x4xf32, #tpu.memory_space<smem>>
    %465 = vector.broadcast %464 : f32 to vector<1x16x16xf32>
    %466 = arith.mulf %465, %3 : vector<1x16x16xf32>
    %467 = arith.addf %463, %466 : vector<1x16x16xf32>
    %c1_246 = arith.constant 1 : index
    %c2_247 = arith.constant 2 : index
    %468 = memref.load %arg4[%c1_246, %c2_247] : memref<8x4xf32, #tpu.memory_space<smem>>
    %469 = vector.broadcast %468 : f32 to vector<1x16x16xf32>
    %470 = arith.mulf %469, %5 : vector<1x16x16xf32>
    %471 = arith.addf %467, %470 : vector<1x16x16xf32>
    %c1_248 = arith.constant 1 : index
    %c3_249 = arith.constant 3 : index
    %472 = memref.load %arg4[%c1_248, %c3_249] : memref<8x4xf32, #tpu.memory_space<smem>>
    %473 = vector.broadcast %472 : f32 to vector<1x16x16xf32>
    %474 = arith.mulf %473, %7 : vector<1x16x16xf32>
    %475 = arith.addf %471, %474 : vector<1x16x16xf32>
    %cst_250 = arith.constant 0.000000e+00 : f32
    %476 = vector.broadcast %cst_250 : f32 to vector<1x16x16xf32>
    %477 = arith.maximumf %475, %476 : vector<1x16x16xf32>
    %c2_251 = arith.constant 2 : index
    %c0_252 = arith.constant 0 : index
    %478 = memref.load %arg4[%c2_251, %c0_252] : memref<8x4xf32, #tpu.memory_space<smem>>
    %479 = vector.broadcast %478 : f32 to vector<1x16x16xf32>
    %480 = arith.mulf %479, %1 : vector<1x16x16xf32>
    %cst_253 = arith.constant 0.000000e+00 : f32
    %481 = vector.broadcast %cst_253 : f32 to vector<1x16x16xf32>
    %482 = arith.addf %481, %480 : vector<1x16x16xf32>
    %c2_254 = arith.constant 2 : index
    %c1_255 = arith.constant 1 : index
    %483 = memref.load %arg4[%c2_254, %c1_255] : memref<8x4xf32, #tpu.memory_space<smem>>
    %484 = vector.broadcast %483 : f32 to vector<1x16x16xf32>
    %485 = arith.mulf %484, %3 : vector<1x16x16xf32>
    %486 = arith.addf %482, %485 : vector<1x16x16xf32>
    %c2_256 = arith.constant 2 : index
    %c2_257 = arith.constant 2 : index
    %487 = memref.load %arg4[%c2_256, %c2_257] : memref<8x4xf32, #tpu.memory_space<smem>>
    %488 = vector.broadcast %487 : f32 to vector<1x16x16xf32>
    %489 = arith.mulf %488, %5 : vector<1x16x16xf32>
    %490 = arith.addf %486, %489 : vector<1x16x16xf32>
    %c2_258 = arith.constant 2 : index
    %c3_259 = arith.constant 3 : index
    %491 = memref.load %arg4[%c2_258, %c3_259] : memref<8x4xf32, #tpu.memory_space<smem>>
    %492 = vector.broadcast %491 : f32 to vector<1x16x16xf32>
    %493 = arith.mulf %492, %7 : vector<1x16x16xf32>
    %494 = arith.addf %490, %493 : vector<1x16x16xf32>
    %cst_260 = arith.constant 0.000000e+00 : f32
    %495 = vector.broadcast %cst_260 : f32 to vector<1x16x16xf32>
    %496 = arith.maximumf %494, %495 : vector<1x16x16xf32>
    %c3_261 = arith.constant 3 : index
    %c0_262 = arith.constant 0 : index
    %497 = memref.load %arg4[%c3_261, %c0_262] : memref<8x4xf32, #tpu.memory_space<smem>>
    %498 = vector.broadcast %497 : f32 to vector<1x16x16xf32>
    %499 = arith.mulf %498, %1 : vector<1x16x16xf32>
    %cst_263 = arith.constant 0.000000e+00 : f32
    %500 = vector.broadcast %cst_263 : f32 to vector<1x16x16xf32>
    %501 = arith.addf %500, %499 : vector<1x16x16xf32>
    %c3_264 = arith.constant 3 : index
    %c1_265 = arith.constant 1 : index
    %502 = memref.load %arg4[%c3_264, %c1_265] : memref<8x4xf32, #tpu.memory_space<smem>>
    %503 = vector.broadcast %502 : f32 to vector<1x16x16xf32>
    %504 = arith.mulf %503, %3 : vector<1x16x16xf32>
    %505 = arith.addf %501, %504 : vector<1x16x16xf32>
    %c3_266 = arith.constant 3 : index
    %c2_267 = arith.constant 2 : index
    %506 = memref.load %arg4[%c3_266, %c2_267] : memref<8x4xf32, #tpu.memory_space<smem>>
    %507 = vector.broadcast %506 : f32 to vector<1x16x16xf32>
    %508 = arith.mulf %507, %5 : vector<1x16x16xf32>
    %509 = arith.addf %505, %508 : vector<1x16x16xf32>
    %c3_268 = arith.constant 3 : index
    %c3_269 = arith.constant 3 : index
    %510 = memref.load %arg4[%c3_268, %c3_269] : memref<8x4xf32, #tpu.memory_space<smem>>
    %511 = vector.broadcast %510 : f32 to vector<1x16x16xf32>
    %512 = arith.mulf %511, %7 : vector<1x16x16xf32>
    %513 = arith.addf %509, %512 : vector<1x16x16xf32>
    %cst_270 = arith.constant 0.000000e+00 : f32
    %514 = vector.broadcast %cst_270 : f32 to vector<1x16x16xf32>
    %515 = arith.maximumf %513, %514 : vector<1x16x16xf32>
    %c4_271 = arith.constant 4 : index
    %c0_272 = arith.constant 0 : index
    %516 = memref.load %arg4[%c4_271, %c0_272] : memref<8x4xf32, #tpu.memory_space<smem>>
    %517 = vector.broadcast %516 : f32 to vector<1x16x16xf32>
    %518 = arith.mulf %517, %1 : vector<1x16x16xf32>
    %cst_273 = arith.constant 0.000000e+00 : f32
    %519 = vector.broadcast %cst_273 : f32 to vector<1x16x16xf32>
    %520 = arith.addf %519, %518 : vector<1x16x16xf32>
    %c4_274 = arith.constant 4 : index
    %c1_275 = arith.constant 1 : index
    %521 = memref.load %arg4[%c4_274, %c1_275] : memref<8x4xf32, #tpu.memory_space<smem>>
    %522 = vector.broadcast %521 : f32 to vector<1x16x16xf32>
    %523 = arith.mulf %522, %3 : vector<1x16x16xf32>
    %524 = arith.addf %520, %523 : vector<1x16x16xf32>
    %c4_276 = arith.constant 4 : index
    %c2_277 = arith.constant 2 : index
    %525 = memref.load %arg4[%c4_276, %c2_277] : memref<8x4xf32, #tpu.memory_space<smem>>
    %526 = vector.broadcast %525 : f32 to vector<1x16x16xf32>
    %527 = arith.mulf %526, %5 : vector<1x16x16xf32>
    %528 = arith.addf %524, %527 : vector<1x16x16xf32>
    %c4_278 = arith.constant 4 : index
    %c3_279 = arith.constant 3 : index
    %529 = memref.load %arg4[%c4_278, %c3_279] : memref<8x4xf32, #tpu.memory_space<smem>>
    %530 = vector.broadcast %529 : f32 to vector<1x16x16xf32>
    %531 = arith.mulf %530, %7 : vector<1x16x16xf32>
    %532 = arith.addf %528, %531 : vector<1x16x16xf32>
    %cst_280 = arith.constant 0.000000e+00 : f32
    %533 = vector.broadcast %cst_280 : f32 to vector<1x16x16xf32>
    %534 = arith.maximumf %532, %533 : vector<1x16x16xf32>
    %c5_281 = arith.constant 5 : index
    %c0_282 = arith.constant 0 : index
    %535 = memref.load %arg4[%c5_281, %c0_282] : memref<8x4xf32, #tpu.memory_space<smem>>
    %536 = vector.broadcast %535 : f32 to vector<1x16x16xf32>
    %537 = arith.mulf %536, %1 : vector<1x16x16xf32>
    %cst_283 = arith.constant 0.000000e+00 : f32
    %538 = vector.broadcast %cst_283 : f32 to vector<1x16x16xf32>
    %539 = arith.addf %538, %537 : vector<1x16x16xf32>
    %c5_284 = arith.constant 5 : index
    %c1_285 = arith.constant 1 : index
    %540 = memref.load %arg4[%c5_284, %c1_285] : memref<8x4xf32, #tpu.memory_space<smem>>
    %541 = vector.broadcast %540 : f32 to vector<1x16x16xf32>
    %542 = arith.mulf %541, %3 : vector<1x16x16xf32>
    %543 = arith.addf %539, %542 : vector<1x16x16xf32>
    %c5_286 = arith.constant 5 : index
    %c2_287 = arith.constant 2 : index
    %544 = memref.load %arg4[%c5_286, %c2_287] : memref<8x4xf32, #tpu.memory_space<smem>>
    %545 = vector.broadcast %544 : f32 to vector<1x16x16xf32>
    %546 = arith.mulf %545, %5 : vector<1x16x16xf32>
    %547 = arith.addf %543, %546 : vector<1x16x16xf32>
    %c5_288 = arith.constant 5 : index
    %c3_289 = arith.constant 3 : index
    %548 = memref.load %arg4[%c5_288, %c3_289] : memref<8x4xf32, #tpu.memory_space<smem>>
    %549 = vector.broadcast %548 : f32 to vector<1x16x16xf32>
    %550 = arith.mulf %549, %7 : vector<1x16x16xf32>
    %551 = arith.addf %547, %550 : vector<1x16x16xf32>
    %cst_290 = arith.constant 0.000000e+00 : f32
    %552 = vector.broadcast %cst_290 : f32 to vector<1x16x16xf32>
    %553 = arith.maximumf %551, %552 : vector<1x16x16xf32>
    %c6_291 = arith.constant 6 : index
    %c0_292 = arith.constant 0 : index
    %554 = memref.load %arg4[%c6_291, %c0_292] : memref<8x4xf32, #tpu.memory_space<smem>>
    %555 = vector.broadcast %554 : f32 to vector<1x16x16xf32>
    %556 = arith.mulf %555, %1 : vector<1x16x16xf32>
    %cst_293 = arith.constant 0.000000e+00 : f32
    %557 = vector.broadcast %cst_293 : f32 to vector<1x16x16xf32>
    %558 = arith.addf %557, %556 : vector<1x16x16xf32>
    %c6_294 = arith.constant 6 : index
    %c1_295 = arith.constant 1 : index
    %559 = memref.load %arg4[%c6_294, %c1_295] : memref<8x4xf32, #tpu.memory_space<smem>>
    %560 = vector.broadcast %559 : f32 to vector<1x16x16xf32>
    %561 = arith.mulf %560, %3 : vector<1x16x16xf32>
    %562 = arith.addf %558, %561 : vector<1x16x16xf32>
    %c6_296 = arith.constant 6 : index
    %c2_297 = arith.constant 2 : index
    %563 = memref.load %arg4[%c6_296, %c2_297] : memref<8x4xf32, #tpu.memory_space<smem>>
    %564 = vector.broadcast %563 : f32 to vector<1x16x16xf32>
    %565 = arith.mulf %564, %5 : vector<1x16x16xf32>
    %566 = arith.addf %562, %565 : vector<1x16x16xf32>
    %c6_298 = arith.constant 6 : index
    %c3_299 = arith.constant 3 : index
    %567 = memref.load %arg4[%c6_298, %c3_299] : memref<8x4xf32, #tpu.memory_space<smem>>
    %568 = vector.broadcast %567 : f32 to vector<1x16x16xf32>
    %569 = arith.mulf %568, %7 : vector<1x16x16xf32>
    %570 = arith.addf %566, %569 : vector<1x16x16xf32>
    %cst_300 = arith.constant 0.000000e+00 : f32
    %571 = vector.broadcast %cst_300 : f32 to vector<1x16x16xf32>
    %572 = arith.maximumf %570, %571 : vector<1x16x16xf32>
    %c7_301 = arith.constant 7 : index
    %c0_302 = arith.constant 0 : index
    %573 = memref.load %arg4[%c7_301, %c0_302] : memref<8x4xf32, #tpu.memory_space<smem>>
    %574 = vector.broadcast %573 : f32 to vector<1x16x16xf32>
    %575 = arith.mulf %574, %1 : vector<1x16x16xf32>
    %cst_303 = arith.constant 0.000000e+00 : f32
    %576 = vector.broadcast %cst_303 : f32 to vector<1x16x16xf32>
    %577 = arith.addf %576, %575 : vector<1x16x16xf32>
    %c7_304 = arith.constant 7 : index
    %c1_305 = arith.constant 1 : index
    %578 = memref.load %arg4[%c7_304, %c1_305] : memref<8x4xf32, #tpu.memory_space<smem>>
    %579 = vector.broadcast %578 : f32 to vector<1x16x16xf32>
    %580 = arith.mulf %579, %3 : vector<1x16x16xf32>
    %581 = arith.addf %577, %580 : vector<1x16x16xf32>
    %c7_306 = arith.constant 7 : index
    %c2_307 = arith.constant 2 : index
    %582 = memref.load %arg4[%c7_306, %c2_307] : memref<8x4xf32, #tpu.memory_space<smem>>
    %583 = vector.broadcast %582 : f32 to vector<1x16x16xf32>
    %584 = arith.mulf %583, %5 : vector<1x16x16xf32>
    %585 = arith.addf %581, %584 : vector<1x16x16xf32>
    %c7_308 = arith.constant 7 : index
    %c3_309 = arith.constant 3 : index
    %586 = memref.load %arg4[%c7_308, %c3_309] : memref<8x4xf32, #tpu.memory_space<smem>>
    %587 = vector.broadcast %586 : f32 to vector<1x16x16xf32>
    %588 = arith.mulf %587, %7 : vector<1x16x16xf32>
    %589 = arith.addf %585, %588 : vector<1x16x16xf32>
    %cst_310 = arith.constant 0.000000e+00 : f32
    %590 = vector.broadcast %cst_310 : f32 to vector<1x16x16xf32>
    %591 = arith.maximumf %589, %590 : vector<1x16x16xf32>
    %c0_311 = arith.constant 0 : index
    %c0_312 = arith.constant 0 : index
    %592 = memref.load %arg5[%c0_311, %c0_312] : memref<8x8xf32, #tpu.memory_space<smem>>
    %593 = vector.broadcast %592 : f32 to vector<1x16x16xf32>
    %594 = arith.mulf %593, %458 : vector<1x16x16xf32>
    %cst_313 = arith.constant 0.000000e+00 : f32
    %595 = vector.broadcast %cst_313 : f32 to vector<1x16x16xf32>
    %596 = arith.addf %595, %594 : vector<1x16x16xf32>
    %c0_314 = arith.constant 0 : index
    %c1_315 = arith.constant 1 : index
    %597 = memref.load %arg5[%c0_314, %c1_315] : memref<8x8xf32, #tpu.memory_space<smem>>
    %598 = vector.broadcast %597 : f32 to vector<1x16x16xf32>
    %599 = arith.mulf %598, %477 : vector<1x16x16xf32>
    %600 = arith.addf %596, %599 : vector<1x16x16xf32>
    %c0_316 = arith.constant 0 : index
    %c2_317 = arith.constant 2 : index
    %601 = memref.load %arg5[%c0_316, %c2_317] : memref<8x8xf32, #tpu.memory_space<smem>>
    %602 = vector.broadcast %601 : f32 to vector<1x16x16xf32>
    %603 = arith.mulf %602, %496 : vector<1x16x16xf32>
    %604 = arith.addf %600, %603 : vector<1x16x16xf32>
    %c0_318 = arith.constant 0 : index
    %c3_319 = arith.constant 3 : index
    %605 = memref.load %arg5[%c0_318, %c3_319] : memref<8x8xf32, #tpu.memory_space<smem>>
    %606 = vector.broadcast %605 : f32 to vector<1x16x16xf32>
    %607 = arith.mulf %606, %515 : vector<1x16x16xf32>
    %608 = arith.addf %604, %607 : vector<1x16x16xf32>
    %c0_320 = arith.constant 0 : index
    %c4_321 = arith.constant 4 : index
    %609 = memref.load %arg5[%c0_320, %c4_321] : memref<8x8xf32, #tpu.memory_space<smem>>
    %610 = vector.broadcast %609 : f32 to vector<1x16x16xf32>
    %611 = arith.mulf %610, %534 : vector<1x16x16xf32>
    %612 = arith.addf %608, %611 : vector<1x16x16xf32>
    %c0_322 = arith.constant 0 : index
    %c5_323 = arith.constant 5 : index
    %613 = memref.load %arg5[%c0_322, %c5_323] : memref<8x8xf32, #tpu.memory_space<smem>>
    %614 = vector.broadcast %613 : f32 to vector<1x16x16xf32>
    %615 = arith.mulf %614, %553 : vector<1x16x16xf32>
    %616 = arith.addf %612, %615 : vector<1x16x16xf32>
    %c0_324 = arith.constant 0 : index
    %c6_325 = arith.constant 6 : index
    %617 = memref.load %arg5[%c0_324, %c6_325] : memref<8x8xf32, #tpu.memory_space<smem>>
    %618 = vector.broadcast %617 : f32 to vector<1x16x16xf32>
    %619 = arith.mulf %618, %572 : vector<1x16x16xf32>
    %620 = arith.addf %616, %619 : vector<1x16x16xf32>
    %c0_326 = arith.constant 0 : index
    %c7_327 = arith.constant 7 : index
    %621 = memref.load %arg5[%c0_326, %c7_327] : memref<8x8xf32, #tpu.memory_space<smem>>
    %622 = vector.broadcast %621 : f32 to vector<1x16x16xf32>
    %623 = arith.mulf %622, %591 : vector<1x16x16xf32>
    %624 = arith.addf %620, %623 : vector<1x16x16xf32>
    %cst_328 = arith.constant 0.000000e+00 : f32
    %625 = vector.broadcast %cst_328 : f32 to vector<1x16x16xf32>
    %626 = arith.maximumf %624, %625 : vector<1x16x16xf32>
    %c1_329 = arith.constant 1 : index
    %c0_330 = arith.constant 0 : index
    %627 = memref.load %arg5[%c1_329, %c0_330] : memref<8x8xf32, #tpu.memory_space<smem>>
    %628 = vector.broadcast %627 : f32 to vector<1x16x16xf32>
    %629 = arith.mulf %628, %458 : vector<1x16x16xf32>
    %cst_331 = arith.constant 0.000000e+00 : f32
    %630 = vector.broadcast %cst_331 : f32 to vector<1x16x16xf32>
    %631 = arith.addf %630, %629 : vector<1x16x16xf32>
    %c1_332 = arith.constant 1 : index
    %c1_333 = arith.constant 1 : index
    %632 = memref.load %arg5[%c1_332, %c1_333] : memref<8x8xf32, #tpu.memory_space<smem>>
    %633 = vector.broadcast %632 : f32 to vector<1x16x16xf32>
    %634 = arith.mulf %633, %477 : vector<1x16x16xf32>
    %635 = arith.addf %631, %634 : vector<1x16x16xf32>
    %c1_334 = arith.constant 1 : index
    %c2_335 = arith.constant 2 : index
    %636 = memref.load %arg5[%c1_334, %c2_335] : memref<8x8xf32, #tpu.memory_space<smem>>
    %637 = vector.broadcast %636 : f32 to vector<1x16x16xf32>
    %638 = arith.mulf %637, %496 : vector<1x16x16xf32>
    %639 = arith.addf %635, %638 : vector<1x16x16xf32>
    %c1_336 = arith.constant 1 : index
    %c3_337 = arith.constant 3 : index
    %640 = memref.load %arg5[%c1_336, %c3_337] : memref<8x8xf32, #tpu.memory_space<smem>>
    %641 = vector.broadcast %640 : f32 to vector<1x16x16xf32>
    %642 = arith.mulf %641, %515 : vector<1x16x16xf32>
    %643 = arith.addf %639, %642 : vector<1x16x16xf32>
    %c1_338 = arith.constant 1 : index
    %c4_339 = arith.constant 4 : index
    %644 = memref.load %arg5[%c1_338, %c4_339] : memref<8x8xf32, #tpu.memory_space<smem>>
    %645 = vector.broadcast %644 : f32 to vector<1x16x16xf32>
    %646 = arith.mulf %645, %534 : vector<1x16x16xf32>
    %647 = arith.addf %643, %646 : vector<1x16x16xf32>
    %c1_340 = arith.constant 1 : index
    %c5_341 = arith.constant 5 : index
    %648 = memref.load %arg5[%c1_340, %c5_341] : memref<8x8xf32, #tpu.memory_space<smem>>
    %649 = vector.broadcast %648 : f32 to vector<1x16x16xf32>
    %650 = arith.mulf %649, %553 : vector<1x16x16xf32>
    %651 = arith.addf %647, %650 : vector<1x16x16xf32>
    %c1_342 = arith.constant 1 : index
    %c6_343 = arith.constant 6 : index
    %652 = memref.load %arg5[%c1_342, %c6_343] : memref<8x8xf32, #tpu.memory_space<smem>>
    %653 = vector.broadcast %652 : f32 to vector<1x16x16xf32>
    %654 = arith.mulf %653, %572 : vector<1x16x16xf32>
    %655 = arith.addf %651, %654 : vector<1x16x16xf32>
    %c1_344 = arith.constant 1 : index
    %c7_345 = arith.constant 7 : index
    %656 = memref.load %arg5[%c1_344, %c7_345] : memref<8x8xf32, #tpu.memory_space<smem>>
    %657 = vector.broadcast %656 : f32 to vector<1x16x16xf32>
    %658 = arith.mulf %657, %591 : vector<1x16x16xf32>
    %659 = arith.addf %655, %658 : vector<1x16x16xf32>
    %cst_346 = arith.constant 0.000000e+00 : f32
    %660 = vector.broadcast %cst_346 : f32 to vector<1x16x16xf32>
    %661 = arith.maximumf %659, %660 : vector<1x16x16xf32>
    %c2_347 = arith.constant 2 : index
    %c0_348 = arith.constant 0 : index
    %662 = memref.load %arg5[%c2_347, %c0_348] : memref<8x8xf32, #tpu.memory_space<smem>>
    %663 = vector.broadcast %662 : f32 to vector<1x16x16xf32>
    %664 = arith.mulf %663, %458 : vector<1x16x16xf32>
    %cst_349 = arith.constant 0.000000e+00 : f32
    %665 = vector.broadcast %cst_349 : f32 to vector<1x16x16xf32>
    %666 = arith.addf %665, %664 : vector<1x16x16xf32>
    %c2_350 = arith.constant 2 : index
    %c1_351 = arith.constant 1 : index
    %667 = memref.load %arg5[%c2_350, %c1_351] : memref<8x8xf32, #tpu.memory_space<smem>>
    %668 = vector.broadcast %667 : f32 to vector<1x16x16xf32>
    %669 = arith.mulf %668, %477 : vector<1x16x16xf32>
    %670 = arith.addf %666, %669 : vector<1x16x16xf32>
    %c2_352 = arith.constant 2 : index
    %c2_353 = arith.constant 2 : index
    %671 = memref.load %arg5[%c2_352, %c2_353] : memref<8x8xf32, #tpu.memory_space<smem>>
    %672 = vector.broadcast %671 : f32 to vector<1x16x16xf32>
    %673 = arith.mulf %672, %496 : vector<1x16x16xf32>
    %674 = arith.addf %670, %673 : vector<1x16x16xf32>
    %c2_354 = arith.constant 2 : index
    %c3_355 = arith.constant 3 : index
    %675 = memref.load %arg5[%c2_354, %c3_355] : memref<8x8xf32, #tpu.memory_space<smem>>
    %676 = vector.broadcast %675 : f32 to vector<1x16x16xf32>
    %677 = arith.mulf %676, %515 : vector<1x16x16xf32>
    %678 = arith.addf %674, %677 : vector<1x16x16xf32>
    %c2_356 = arith.constant 2 : index
    %c4_357 = arith.constant 4 : index
    %679 = memref.load %arg5[%c2_356, %c4_357] : memref<8x8xf32, #tpu.memory_space<smem>>
    %680 = vector.broadcast %679 : f32 to vector<1x16x16xf32>
    %681 = arith.mulf %680, %534 : vector<1x16x16xf32>
    %682 = arith.addf %678, %681 : vector<1x16x16xf32>
    %c2_358 = arith.constant 2 : index
    %c5_359 = arith.constant 5 : index
    %683 = memref.load %arg5[%c2_358, %c5_359] : memref<8x8xf32, #tpu.memory_space<smem>>
    %684 = vector.broadcast %683 : f32 to vector<1x16x16xf32>
    %685 = arith.mulf %684, %553 : vector<1x16x16xf32>
    %686 = arith.addf %682, %685 : vector<1x16x16xf32>
    %c2_360 = arith.constant 2 : index
    %c6_361 = arith.constant 6 : index
    %687 = memref.load %arg5[%c2_360, %c6_361] : memref<8x8xf32, #tpu.memory_space<smem>>
    %688 = vector.broadcast %687 : f32 to vector<1x16x16xf32>
    %689 = arith.mulf %688, %572 : vector<1x16x16xf32>
    %690 = arith.addf %686, %689 : vector<1x16x16xf32>
    %c2_362 = arith.constant 2 : index
    %c7_363 = arith.constant 7 : index
    %691 = memref.load %arg5[%c2_362, %c7_363] : memref<8x8xf32, #tpu.memory_space<smem>>
    %692 = vector.broadcast %691 : f32 to vector<1x16x16xf32>
    %693 = arith.mulf %692, %591 : vector<1x16x16xf32>
    %694 = arith.addf %690, %693 : vector<1x16x16xf32>
    %cst_364 = arith.constant 0.000000e+00 : f32
    %695 = vector.broadcast %cst_364 : f32 to vector<1x16x16xf32>
    %696 = arith.maximumf %694, %695 : vector<1x16x16xf32>
    %c3_365 = arith.constant 3 : index
    %c0_366 = arith.constant 0 : index
    %697 = memref.load %arg5[%c3_365, %c0_366] : memref<8x8xf32, #tpu.memory_space<smem>>
    %698 = vector.broadcast %697 : f32 to vector<1x16x16xf32>
    %699 = arith.mulf %698, %458 : vector<1x16x16xf32>
    %cst_367 = arith.constant 0.000000e+00 : f32
    %700 = vector.broadcast %cst_367 : f32 to vector<1x16x16xf32>
    %701 = arith.addf %700, %699 : vector<1x16x16xf32>
    %c3_368 = arith.constant 3 : index
    %c1_369 = arith.constant 1 : index
    %702 = memref.load %arg5[%c3_368, %c1_369] : memref<8x8xf32, #tpu.memory_space<smem>>
    %703 = vector.broadcast %702 : f32 to vector<1x16x16xf32>
    %704 = arith.mulf %703, %477 : vector<1x16x16xf32>
    %705 = arith.addf %701, %704 : vector<1x16x16xf32>
    %c3_370 = arith.constant 3 : index
    %c2_371 = arith.constant 2 : index
    %706 = memref.load %arg5[%c3_370, %c2_371] : memref<8x8xf32, #tpu.memory_space<smem>>
    %707 = vector.broadcast %706 : f32 to vector<1x16x16xf32>
    %708 = arith.mulf %707, %496 : vector<1x16x16xf32>
    %709 = arith.addf %705, %708 : vector<1x16x16xf32>
    %c3_372 = arith.constant 3 : index
    %c3_373 = arith.constant 3 : index
    %710 = memref.load %arg5[%c3_372, %c3_373] : memref<8x8xf32, #tpu.memory_space<smem>>
    %711 = vector.broadcast %710 : f32 to vector<1x16x16xf32>
    %712 = arith.mulf %711, %515 : vector<1x16x16xf32>
    %713 = arith.addf %709, %712 : vector<1x16x16xf32>
    %c3_374 = arith.constant 3 : index
    %c4_375 = arith.constant 4 : index
    %714 = memref.load %arg5[%c3_374, %c4_375] : memref<8x8xf32, #tpu.memory_space<smem>>
    %715 = vector.broadcast %714 : f32 to vector<1x16x16xf32>
    %716 = arith.mulf %715, %534 : vector<1x16x16xf32>
    %717 = arith.addf %713, %716 : vector<1x16x16xf32>
    %c3_376 = arith.constant 3 : index
    %c5_377 = arith.constant 5 : index
    %718 = memref.load %arg5[%c3_376, %c5_377] : memref<8x8xf32, #tpu.memory_space<smem>>
    %719 = vector.broadcast %718 : f32 to vector<1x16x16xf32>
    %720 = arith.mulf %719, %553 : vector<1x16x16xf32>
    %721 = arith.addf %717, %720 : vector<1x16x16xf32>
    %c3_378 = arith.constant 3 : index
    %c6_379 = arith.constant 6 : index
    %722 = memref.load %arg5[%c3_378, %c6_379] : memref<8x8xf32, #tpu.memory_space<smem>>
    %723 = vector.broadcast %722 : f32 to vector<1x16x16xf32>
    %724 = arith.mulf %723, %572 : vector<1x16x16xf32>
    %725 = arith.addf %721, %724 : vector<1x16x16xf32>
    %c3_380 = arith.constant 3 : index
    %c7_381 = arith.constant 7 : index
    %726 = memref.load %arg5[%c3_380, %c7_381] : memref<8x8xf32, #tpu.memory_space<smem>>
    %727 = vector.broadcast %726 : f32 to vector<1x16x16xf32>
    %728 = arith.mulf %727, %591 : vector<1x16x16xf32>
    %729 = arith.addf %725, %728 : vector<1x16x16xf32>
    %cst_382 = arith.constant 0.000000e+00 : f32
    %730 = vector.broadcast %cst_382 : f32 to vector<1x16x16xf32>
    %731 = arith.maximumf %729, %730 : vector<1x16x16xf32>
    %c4_383 = arith.constant 4 : index
    %c0_384 = arith.constant 0 : index
    %732 = memref.load %arg5[%c4_383, %c0_384] : memref<8x8xf32, #tpu.memory_space<smem>>
    %733 = vector.broadcast %732 : f32 to vector<1x16x16xf32>
    %734 = arith.mulf %733, %458 : vector<1x16x16xf32>
    %cst_385 = arith.constant 0.000000e+00 : f32
    %735 = vector.broadcast %cst_385 : f32 to vector<1x16x16xf32>
    %736 = arith.addf %735, %734 : vector<1x16x16xf32>
    %c4_386 = arith.constant 4 : index
    %c1_387 = arith.constant 1 : index
    %737 = memref.load %arg5[%c4_386, %c1_387] : memref<8x8xf32, #tpu.memory_space<smem>>
    %738 = vector.broadcast %737 : f32 to vector<1x16x16xf32>
    %739 = arith.mulf %738, %477 : vector<1x16x16xf32>
    %740 = arith.addf %736, %739 : vector<1x16x16xf32>
    %c4_388 = arith.constant 4 : index
    %c2_389 = arith.constant 2 : index
    %741 = memref.load %arg5[%c4_388, %c2_389] : memref<8x8xf32, #tpu.memory_space<smem>>
    %742 = vector.broadcast %741 : f32 to vector<1x16x16xf32>
    %743 = arith.mulf %742, %496 : vector<1x16x16xf32>
    %744 = arith.addf %740, %743 : vector<1x16x16xf32>
    %c4_390 = arith.constant 4 : index
    %c3_391 = arith.constant 3 : index
    %745 = memref.load %arg5[%c4_390, %c3_391] : memref<8x8xf32, #tpu.memory_space<smem>>
    %746 = vector.broadcast %745 : f32 to vector<1x16x16xf32>
    %747 = arith.mulf %746, %515 : vector<1x16x16xf32>
    %748 = arith.addf %744, %747 : vector<1x16x16xf32>
    %c4_392 = arith.constant 4 : index
    %c4_393 = arith.constant 4 : index
    %749 = memref.load %arg5[%c4_392, %c4_393] : memref<8x8xf32, #tpu.memory_space<smem>>
    %750 = vector.broadcast %749 : f32 to vector<1x16x16xf32>
    %751 = arith.mulf %750, %534 : vector<1x16x16xf32>
    %752 = arith.addf %748, %751 : vector<1x16x16xf32>
    %c4_394 = arith.constant 4 : index
    %c5_395 = arith.constant 5 : index
    %753 = memref.load %arg5[%c4_394, %c5_395] : memref<8x8xf32, #tpu.memory_space<smem>>
    %754 = vector.broadcast %753 : f32 to vector<1x16x16xf32>
    %755 = arith.mulf %754, %553 : vector<1x16x16xf32>
    %756 = arith.addf %752, %755 : vector<1x16x16xf32>
    %c4_396 = arith.constant 4 : index
    %c6_397 = arith.constant 6 : index
    %757 = memref.load %arg5[%c4_396, %c6_397] : memref<8x8xf32, #tpu.memory_space<smem>>
    %758 = vector.broadcast %757 : f32 to vector<1x16x16xf32>
    %759 = arith.mulf %758, %572 : vector<1x16x16xf32>
    %760 = arith.addf %756, %759 : vector<1x16x16xf32>
    %c4_398 = arith.constant 4 : index
    %c7_399 = arith.constant 7 : index
    %761 = memref.load %arg5[%c4_398, %c7_399] : memref<8x8xf32, #tpu.memory_space<smem>>
    %762 = vector.broadcast %761 : f32 to vector<1x16x16xf32>
    %763 = arith.mulf %762, %591 : vector<1x16x16xf32>
    %764 = arith.addf %760, %763 : vector<1x16x16xf32>
    %cst_400 = arith.constant 0.000000e+00 : f32
    %765 = vector.broadcast %cst_400 : f32 to vector<1x16x16xf32>
    %766 = arith.maximumf %764, %765 : vector<1x16x16xf32>
    %c5_401 = arith.constant 5 : index
    %c0_402 = arith.constant 0 : index
    %767 = memref.load %arg5[%c5_401, %c0_402] : memref<8x8xf32, #tpu.memory_space<smem>>
    %768 = vector.broadcast %767 : f32 to vector<1x16x16xf32>
    %769 = arith.mulf %768, %458 : vector<1x16x16xf32>
    %cst_403 = arith.constant 0.000000e+00 : f32
    %770 = vector.broadcast %cst_403 : f32 to vector<1x16x16xf32>
    %771 = arith.addf %770, %769 : vector<1x16x16xf32>
    %c5_404 = arith.constant 5 : index
    %c1_405 = arith.constant 1 : index
    %772 = memref.load %arg5[%c5_404, %c1_405] : memref<8x8xf32, #tpu.memory_space<smem>>
    %773 = vector.broadcast %772 : f32 to vector<1x16x16xf32>
    %774 = arith.mulf %773, %477 : vector<1x16x16xf32>
    %775 = arith.addf %771, %774 : vector<1x16x16xf32>
    %c5_406 = arith.constant 5 : index
    %c2_407 = arith.constant 2 : index
    %776 = memref.load %arg5[%c5_406, %c2_407] : memref<8x8xf32, #tpu.memory_space<smem>>
    %777 = vector.broadcast %776 : f32 to vector<1x16x16xf32>
    %778 = arith.mulf %777, %496 : vector<1x16x16xf32>
    %779 = arith.addf %775, %778 : vector<1x16x16xf32>
    %c5_408 = arith.constant 5 : index
    %c3_409 = arith.constant 3 : index
    %780 = memref.load %arg5[%c5_408, %c3_409] : memref<8x8xf32, #tpu.memory_space<smem>>
    %781 = vector.broadcast %780 : f32 to vector<1x16x16xf32>
    %782 = arith.mulf %781, %515 : vector<1x16x16xf32>
    %783 = arith.addf %779, %782 : vector<1x16x16xf32>
    %c5_410 = arith.constant 5 : index
    %c4_411 = arith.constant 4 : index
    %784 = memref.load %arg5[%c5_410, %c4_411] : memref<8x8xf32, #tpu.memory_space<smem>>
    %785 = vector.broadcast %784 : f32 to vector<1x16x16xf32>
    %786 = arith.mulf %785, %534 : vector<1x16x16xf32>
    %787 = arith.addf %783, %786 : vector<1x16x16xf32>
    %c5_412 = arith.constant 5 : index
    %c5_413 = arith.constant 5 : index
    %788 = memref.load %arg5[%c5_412, %c5_413] : memref<8x8xf32, #tpu.memory_space<smem>>
    %789 = vector.broadcast %788 : f32 to vector<1x16x16xf32>
    %790 = arith.mulf %789, %553 : vector<1x16x16xf32>
    %791 = arith.addf %787, %790 : vector<1x16x16xf32>
    %c5_414 = arith.constant 5 : index
    %c6_415 = arith.constant 6 : index
    %792 = memref.load %arg5[%c5_414, %c6_415] : memref<8x8xf32, #tpu.memory_space<smem>>
    %793 = vector.broadcast %792 : f32 to vector<1x16x16xf32>
    %794 = arith.mulf %793, %572 : vector<1x16x16xf32>
    %795 = arith.addf %791, %794 : vector<1x16x16xf32>
    %c5_416 = arith.constant 5 : index
    %c7_417 = arith.constant 7 : index
    %796 = memref.load %arg5[%c5_416, %c7_417] : memref<8x8xf32, #tpu.memory_space<smem>>
    %797 = vector.broadcast %796 : f32 to vector<1x16x16xf32>
    %798 = arith.mulf %797, %591 : vector<1x16x16xf32>
    %799 = arith.addf %795, %798 : vector<1x16x16xf32>
    %cst_418 = arith.constant 0.000000e+00 : f32
    %800 = vector.broadcast %cst_418 : f32 to vector<1x16x16xf32>
    %801 = arith.maximumf %799, %800 : vector<1x16x16xf32>
    %c6_419 = arith.constant 6 : index
    %c0_420 = arith.constant 0 : index
    %802 = memref.load %arg5[%c6_419, %c0_420] : memref<8x8xf32, #tpu.memory_space<smem>>
    %803 = vector.broadcast %802 : f32 to vector<1x16x16xf32>
    %804 = arith.mulf %803, %458 : vector<1x16x16xf32>
    %cst_421 = arith.constant 0.000000e+00 : f32
    %805 = vector.broadcast %cst_421 : f32 to vector<1x16x16xf32>
    %806 = arith.addf %805, %804 : vector<1x16x16xf32>
    %c6_422 = arith.constant 6 : index
    %c1_423 = arith.constant 1 : index
    %807 = memref.load %arg5[%c6_422, %c1_423] : memref<8x8xf32, #tpu.memory_space<smem>>
    %808 = vector.broadcast %807 : f32 to vector<1x16x16xf32>
    %809 = arith.mulf %808, %477 : vector<1x16x16xf32>
    %810 = arith.addf %806, %809 : vector<1x16x16xf32>
    %c6_424 = arith.constant 6 : index
    %c2_425 = arith.constant 2 : index
    %811 = memref.load %arg5[%c6_424, %c2_425] : memref<8x8xf32, #tpu.memory_space<smem>>
    %812 = vector.broadcast %811 : f32 to vector<1x16x16xf32>
    %813 = arith.mulf %812, %496 : vector<1x16x16xf32>
    %814 = arith.addf %810, %813 : vector<1x16x16xf32>
    %c6_426 = arith.constant 6 : index
    %c3_427 = arith.constant 3 : index
    %815 = memref.load %arg5[%c6_426, %c3_427] : memref<8x8xf32, #tpu.memory_space<smem>>
    %816 = vector.broadcast %815 : f32 to vector<1x16x16xf32>
    %817 = arith.mulf %816, %515 : vector<1x16x16xf32>
    %818 = arith.addf %814, %817 : vector<1x16x16xf32>
    %c6_428 = arith.constant 6 : index
    %c4_429 = arith.constant 4 : index
    %819 = memref.load %arg5[%c6_428, %c4_429] : memref<8x8xf32, #tpu.memory_space<smem>>
    %820 = vector.broadcast %819 : f32 to vector<1x16x16xf32>
    %821 = arith.mulf %820, %534 : vector<1x16x16xf32>
    %822 = arith.addf %818, %821 : vector<1x16x16xf32>
    %c6_430 = arith.constant 6 : index
    %c5_431 = arith.constant 5 : index
    %823 = memref.load %arg5[%c6_430, %c5_431] : memref<8x8xf32, #tpu.memory_space<smem>>
    %824 = vector.broadcast %823 : f32 to vector<1x16x16xf32>
    %825 = arith.mulf %824, %553 : vector<1x16x16xf32>
    %826 = arith.addf %822, %825 : vector<1x16x16xf32>
    %c6_432 = arith.constant 6 : index
    %c6_433 = arith.constant 6 : index
    %827 = memref.load %arg5[%c6_432, %c6_433] : memref<8x8xf32, #tpu.memory_space<smem>>
    %828 = vector.broadcast %827 : f32 to vector<1x16x16xf32>
    %829 = arith.mulf %828, %572 : vector<1x16x16xf32>
    %830 = arith.addf %826, %829 : vector<1x16x16xf32>
    %c6_434 = arith.constant 6 : index
    %c7_435 = arith.constant 7 : index
    %831 = memref.load %arg5[%c6_434, %c7_435] : memref<8x8xf32, #tpu.memory_space<smem>>
    %832 = vector.broadcast %831 : f32 to vector<1x16x16xf32>
    %833 = arith.mulf %832, %591 : vector<1x16x16xf32>
    %834 = arith.addf %830, %833 : vector<1x16x16xf32>
    %cst_436 = arith.constant 0.000000e+00 : f32
    %835 = vector.broadcast %cst_436 : f32 to vector<1x16x16xf32>
    %836 = arith.maximumf %834, %835 : vector<1x16x16xf32>
    %c7_437 = arith.constant 7 : index
    %c0_438 = arith.constant 0 : index
    %837 = memref.load %arg5[%c7_437, %c0_438] : memref<8x8xf32, #tpu.memory_space<smem>>
    %838 = vector.broadcast %837 : f32 to vector<1x16x16xf32>
    %839 = arith.mulf %838, %458 : vector<1x16x16xf32>
    %cst_439 = arith.constant 0.000000e+00 : f32
    %840 = vector.broadcast %cst_439 : f32 to vector<1x16x16xf32>
    %841 = arith.addf %840, %839 : vector<1x16x16xf32>
    %c7_440 = arith.constant 7 : index
    %c1_441 = arith.constant 1 : index
    %842 = memref.load %arg5[%c7_440, %c1_441] : memref<8x8xf32, #tpu.memory_space<smem>>
    %843 = vector.broadcast %842 : f32 to vector<1x16x16xf32>
    %844 = arith.mulf %843, %477 : vector<1x16x16xf32>
    %845 = arith.addf %841, %844 : vector<1x16x16xf32>
    %c7_442 = arith.constant 7 : index
    %c2_443 = arith.constant 2 : index
    %846 = memref.load %arg5[%c7_442, %c2_443] : memref<8x8xf32, #tpu.memory_space<smem>>
    %847 = vector.broadcast %846 : f32 to vector<1x16x16xf32>
    %848 = arith.mulf %847, %496 : vector<1x16x16xf32>
    %849 = arith.addf %845, %848 : vector<1x16x16xf32>
    %c7_444 = arith.constant 7 : index
    %c3_445 = arith.constant 3 : index
    %850 = memref.load %arg5[%c7_444, %c3_445] : memref<8x8xf32, #tpu.memory_space<smem>>
    %851 = vector.broadcast %850 : f32 to vector<1x16x16xf32>
    %852 = arith.mulf %851, %515 : vector<1x16x16xf32>
    %853 = arith.addf %849, %852 : vector<1x16x16xf32>
    %c7_446 = arith.constant 7 : index
    %c4_447 = arith.constant 4 : index
    %854 = memref.load %arg5[%c7_446, %c4_447] : memref<8x8xf32, #tpu.memory_space<smem>>
    %855 = vector.broadcast %854 : f32 to vector<1x16x16xf32>
    %856 = arith.mulf %855, %534 : vector<1x16x16xf32>
    %857 = arith.addf %853, %856 : vector<1x16x16xf32>
    %c7_448 = arith.constant 7 : index
    %c5_449 = arith.constant 5 : index
    %858 = memref.load %arg5[%c7_448, %c5_449] : memref<8x8xf32, #tpu.memory_space<smem>>
    %859 = vector.broadcast %858 : f32 to vector<1x16x16xf32>
    %860 = arith.mulf %859, %553 : vector<1x16x16xf32>
    %861 = arith.addf %857, %860 : vector<1x16x16xf32>
    %c7_450 = arith.constant 7 : index
    %c6_451 = arith.constant 6 : index
    %862 = memref.load %arg5[%c7_450, %c6_451] : memref<8x8xf32, #tpu.memory_space<smem>>
    %863 = vector.broadcast %862 : f32 to vector<1x16x16xf32>
    %864 = arith.mulf %863, %572 : vector<1x16x16xf32>
    %865 = arith.addf %861, %864 : vector<1x16x16xf32>
    %c7_452 = arith.constant 7 : index
    %c7_453 = arith.constant 7 : index
    %866 = memref.load %arg5[%c7_452, %c7_453] : memref<8x8xf32, #tpu.memory_space<smem>>
    %867 = vector.broadcast %866 : f32 to vector<1x16x16xf32>
    %868 = arith.mulf %867, %591 : vector<1x16x16xf32>
    %869 = arith.addf %865, %868 : vector<1x16x16xf32>
    %cst_454 = arith.constant 0.000000e+00 : f32
    %870 = vector.broadcast %cst_454 : f32 to vector<1x16x16xf32>
    %871 = arith.maximumf %869, %870 : vector<1x16x16xf32>
    %cst_455 = arith.constant dense<0.000000e+00> : vector<1x16x16xf32>
    %872 = tpu.matmul %194, %626, %cst_455 {dimension_numbers = #tpu.dot_dimension_numbers<[2], [1], [1], [2], [0, 0, 0, 1, 1, 2], [0], [0]>} : vector<1x16x16xf32>, vector<1x16x16xf32>, vector<1x16x16xf32> -> vector<1x16x16xf32>
    %cst_456 = arith.constant dense<0.000000e+00> : vector<1x16x16xf32>
    %873 = tpu.matmul %229, %661, %cst_456 {dimension_numbers = #tpu.dot_dimension_numbers<[2], [1], [1], [2], [0, 0, 0, 1, 1, 2], [0], [0]>} : vector<1x16x16xf32>, vector<1x16x16xf32>, vector<1x16x16xf32> -> vector<1x16x16xf32>
    %cst_457 = arith.constant dense<0.000000e+00> : vector<1x16x16xf32>
    %874 = tpu.matmul %264, %696, %cst_457 {dimension_numbers = #tpu.dot_dimension_numbers<[2], [1], [1], [2], [0, 0, 0, 1, 1, 2], [0], [0]>} : vector<1x16x16xf32>, vector<1x16x16xf32>, vector<1x16x16xf32> -> vector<1x16x16xf32>
    %cst_458 = arith.constant dense<0.000000e+00> : vector<1x16x16xf32>
    %875 = tpu.matmul %299, %731, %cst_458 {dimension_numbers = #tpu.dot_dimension_numbers<[2], [1], [1], [2], [0, 0, 0, 1, 1, 2], [0], [0]>} : vector<1x16x16xf32>, vector<1x16x16xf32>, vector<1x16x16xf32> -> vector<1x16x16xf32>
    %cst_459 = arith.constant dense<0.000000e+00> : vector<1x16x16xf32>
    %876 = tpu.matmul %334, %766, %cst_459 {dimension_numbers = #tpu.dot_dimension_numbers<[2], [1], [1], [2], [0, 0, 0, 1, 1, 2], [0], [0]>} : vector<1x16x16xf32>, vector<1x16x16xf32>, vector<1x16x16xf32> -> vector<1x16x16xf32>
    %cst_460 = arith.constant dense<0.000000e+00> : vector<1x16x16xf32>
    %877 = tpu.matmul %369, %801, %cst_460 {dimension_numbers = #tpu.dot_dimension_numbers<[2], [1], [1], [2], [0, 0, 0, 1, 1, 2], [0], [0]>} : vector<1x16x16xf32>, vector<1x16x16xf32>, vector<1x16x16xf32> -> vector<1x16x16xf32>
    %cst_461 = arith.constant dense<0.000000e+00> : vector<1x16x16xf32>
    %878 = tpu.matmul %404, %836, %cst_461 {dimension_numbers = #tpu.dot_dimension_numbers<[2], [1], [1], [2], [0, 0, 0, 1, 1, 2], [0], [0]>} : vector<1x16x16xf32>, vector<1x16x16xf32>, vector<1x16x16xf32> -> vector<1x16x16xf32>
    %cst_462 = arith.constant dense<0.000000e+00> : vector<1x16x16xf32>
    %879 = tpu.matmul %439, %871, %cst_462 {dimension_numbers = #tpu.dot_dimension_numbers<[2], [1], [1], [2], [0, 0, 0, 1, 1, 2], [0], [0]>} : vector<1x16x16xf32>, vector<1x16x16xf32>, vector<1x16x16xf32> -> vector<1x16x16xf32>
    %c0_463 = arith.constant 0 : index
    %c0_464 = arith.constant 0 : index
    %880 = memref.load %arg6[%c0_463, %c0_464] : memref<8x12xf32, #tpu.memory_space<smem>>
    %881 = vector.broadcast %880 : f32 to vector<1x16x16xf32>
    %882 = arith.mulf %881, %1 : vector<1x16x16xf32>
    %cst_465 = arith.constant 0.000000e+00 : f32
    %883 = vector.broadcast %cst_465 : f32 to vector<1x16x16xf32>
    %884 = arith.addf %883, %882 : vector<1x16x16xf32>
    %c0_466 = arith.constant 0 : index
    %c1_467 = arith.constant 1 : index
    %885 = memref.load %arg6[%c0_466, %c1_467] : memref<8x12xf32, #tpu.memory_space<smem>>
    %886 = vector.broadcast %885 : f32 to vector<1x16x16xf32>
    %887 = arith.mulf %886, %3 : vector<1x16x16xf32>
    %888 = arith.addf %884, %887 : vector<1x16x16xf32>
    %c0_468 = arith.constant 0 : index
    %c2_469 = arith.constant 2 : index
    %889 = memref.load %arg6[%c0_468, %c2_469] : memref<8x12xf32, #tpu.memory_space<smem>>
    %890 = vector.broadcast %889 : f32 to vector<1x16x16xf32>
    %891 = arith.mulf %890, %5 : vector<1x16x16xf32>
    %892 = arith.addf %888, %891 : vector<1x16x16xf32>
    %c0_470 = arith.constant 0 : index
    %c3_471 = arith.constant 3 : index
    %893 = memref.load %arg6[%c0_470, %c3_471] : memref<8x12xf32, #tpu.memory_space<smem>>
    %894 = vector.broadcast %893 : f32 to vector<1x16x16xf32>
    %895 = arith.mulf %894, %7 : vector<1x16x16xf32>
    %896 = arith.addf %892, %895 : vector<1x16x16xf32>
    %c0_472 = arith.constant 0 : index
    %c4_473 = arith.constant 4 : index
    %897 = memref.load %arg6[%c0_472, %c4_473] : memref<8x12xf32, #tpu.memory_space<smem>>
    %898 = vector.broadcast %897 : f32 to vector<1x16x16xf32>
    %899 = arith.mulf %898, %872 : vector<1x16x16xf32>
    %cst_474 = arith.constant 0.000000e+00 : f32
    %900 = vector.broadcast %cst_474 : f32 to vector<1x16x16xf32>
    %901 = arith.addf %900, %899 : vector<1x16x16xf32>
    %c0_475 = arith.constant 0 : index
    %c5_476 = arith.constant 5 : index
    %902 = memref.load %arg6[%c0_475, %c5_476] : memref<8x12xf32, #tpu.memory_space<smem>>
    %903 = vector.broadcast %902 : f32 to vector<1x16x16xf32>
    %904 = arith.mulf %903, %873 : vector<1x16x16xf32>
    %905 = arith.addf %901, %904 : vector<1x16x16xf32>
    %c0_477 = arith.constant 0 : index
    %c6_478 = arith.constant 6 : index
    %906 = memref.load %arg6[%c0_477, %c6_478] : memref<8x12xf32, #tpu.memory_space<smem>>
    %907 = vector.broadcast %906 : f32 to vector<1x16x16xf32>
    %908 = arith.mulf %907, %874 : vector<1x16x16xf32>
    %909 = arith.addf %905, %908 : vector<1x16x16xf32>
    %c0_479 = arith.constant 0 : index
    %c7_480 = arith.constant 7 : index
    %910 = memref.load %arg6[%c0_479, %c7_480] : memref<8x12xf32, #tpu.memory_space<smem>>
    %911 = vector.broadcast %910 : f32 to vector<1x16x16xf32>
    %912 = arith.mulf %911, %875 : vector<1x16x16xf32>
    %913 = arith.addf %909, %912 : vector<1x16x16xf32>
    %c0_481 = arith.constant 0 : index
    %c8 = arith.constant 8 : index
    %914 = memref.load %arg6[%c0_481, %c8] : memref<8x12xf32, #tpu.memory_space<smem>>
    %915 = vector.broadcast %914 : f32 to vector<1x16x16xf32>
    %916 = arith.mulf %915, %876 : vector<1x16x16xf32>
    %917 = arith.addf %913, %916 : vector<1x16x16xf32>
    %c0_482 = arith.constant 0 : index
    %c9 = arith.constant 9 : index
    %918 = memref.load %arg6[%c0_482, %c9] : memref<8x12xf32, #tpu.memory_space<smem>>
    %919 = vector.broadcast %918 : f32 to vector<1x16x16xf32>
    %920 = arith.mulf %919, %877 : vector<1x16x16xf32>
    %921 = arith.addf %917, %920 : vector<1x16x16xf32>
    %c0_483 = arith.constant 0 : index
    %c10 = arith.constant 10 : index
    %922 = memref.load %arg6[%c0_483, %c10] : memref<8x12xf32, #tpu.memory_space<smem>>
    %923 = vector.broadcast %922 : f32 to vector<1x16x16xf32>
    %924 = arith.mulf %923, %878 : vector<1x16x16xf32>
    %925 = arith.addf %921, %924 : vector<1x16x16xf32>
    %c0_484 = arith.constant 0 : index
    %c11 = arith.constant 11 : index
    %926 = memref.load %arg6[%c0_484, %c11] : memref<8x12xf32, #tpu.memory_space<smem>>
    %927 = vector.broadcast %926 : f32 to vector<1x16x16xf32>
    %928 = arith.mulf %927, %879 : vector<1x16x16xf32>
    %929 = arith.addf %925, %928 : vector<1x16x16xf32>
    %930 = arith.addf %896, %929 : vector<1x16x16xf32>
    %c0_485 = arith.constant 0 : index
    %c0_486 = arith.constant 0 : index
    %c0_487 = arith.constant 0 : index
    %c0_488 = arith.constant 0 : index
    %931 = vector.load %arg7[%c0_485, %c0_486, %c0_487, %c0_488] : memref<1x8x16x16xf32, #tpu.memory_space<vmem>>, vector<1x1x16x16xf32>
    %932 = vector.shape_cast %931 : vector<1x1x16x16xf32> to vector<1x16x16xf32>
    %933 = vector.shape_cast %930 : vector<1x16x16xf32> to vector<1x1x16x16xf32>
    tpu.vector_store %arg7[%c0_485, %c0_486, %c0_487, %c0_488], %933 {strides = array<i32>} : memref<1x8x16x16xf32, #tpu.memory_space<vmem>>, vector<1x1x16x16xf32>,
    %c1_489 = arith.constant 1 : index
    %c0_490 = arith.constant 0 : index
    %934 = memref.load %arg6[%c1_489, %c0_490] : memref<8x12xf32, #tpu.memory_space<smem>>
    %935 = vector.broadcast %934 : f32 to vector<1x16x16xf32>
    %936 = arith.mulf %935, %1 : vector<1x16x16xf32>
    %cst_491 = arith.constant 0.000000e+00 : f32
    %937 = vector.broadcast %cst_491 : f32 to vector<1x16x16xf32>
    %938 = arith.addf %937, %936 : vector<1x16x16xf32>
    %c1_492 = arith.constant 1 : index
    %c1_493 = arith.constant 1 : index
    %939 = memref.load %arg6[%c1_492, %c1_493] : memref<8x12xf32, #tpu.memory_space<smem>>
    %940 = vector.broadcast %939 : f32 to vector<1x16x16xf32>
    %941 = arith.mulf %940, %3 : vector<1x16x16xf32>
    %942 = arith.addf %938, %941 : vector<1x16x16xf32>
    %c1_494 = arith.constant 1 : index
    %c2_495 = arith.constant 2 : index
    %943 = memref.load %arg6[%c1_494, %c2_495] : memref<8x12xf32, #tpu.memory_space<smem>>
    %944 = vector.broadcast %943 : f32 to vector<1x16x16xf32>
    %945 = arith.mulf %944, %5 : vector<1x16x16xf32>
    %946 = arith.addf %942, %945 : vector<1x16x16xf32>
    %c1_496 = arith.constant 1 : index
    %c3_497 = arith.constant 3 : index
    %947 = memref.load %arg6[%c1_496, %c3_497] : memref<8x12xf32, #tpu.memory_space<smem>>
    %948 = vector.broadcast %947 : f32 to vector<1x16x16xf32>
    %949 = arith.mulf %948, %7 : vector<1x16x16xf32>
    %950 = arith.addf %946, %949 : vector<1x16x16xf32>
    %c1_498 = arith.constant 1 : index
    %c4_499 = arith.constant 4 : index
    %951 = memref.load %arg6[%c1_498, %c4_499] : memref<8x12xf32, #tpu.memory_space<smem>>
    %952 = vector.broadcast %951 : f32 to vector<1x16x16xf32>
    %953 = arith.mulf %952, %872 : vector<1x16x16xf32>
    %cst_500 = arith.constant 0.000000e+00 : f32
    %954 = vector.broadcast %cst_500 : f32 to vector<1x16x16xf32>
    %955 = arith.addf %954, %953 : vector<1x16x16xf32>
    %c1_501 = arith.constant 1 : index
    %c5_502 = arith.constant 5 : index
    %956 = memref.load %arg6[%c1_501, %c5_502] : memref<8x12xf32, #tpu.memory_space<smem>>
    %957 = vector.broadcast %956 : f32 to vector<1x16x16xf32>
    %958 = arith.mulf %957, %873 : vector<1x16x16xf32>
    %959 = arith.addf %955, %958 : vector<1x16x16xf32>
    %c1_503 = arith.constant 1 : index
    %c6_504 = arith.constant 6 : index
    %960 = memref.load %arg6[%c1_503, %c6_504] : memref<8x12xf32, #tpu.memory_space<smem>>
    %961 = vector.broadcast %960 : f32 to vector<1x16x16xf32>
    %962 = arith.mulf %961, %874 : vector<1x16x16xf32>
    %963 = arith.addf %959, %962 : vector<1x16x16xf32>
    %c1_505 = arith.constant 1 : index
    %c7_506 = arith.constant 7 : index
    %964 = memref.load %arg6[%c1_505, %c7_506] : memref<8x12xf32, #tpu.memory_space<smem>>
    %965 = vector.broadcast %964 : f32 to vector<1x16x16xf32>
    %966 = arith.mulf %965, %875 : vector<1x16x16xf32>
    %967 = arith.addf %963, %966 : vector<1x16x16xf32>
    %c1_507 = arith.constant 1 : index
    %c8_508 = arith.constant 8 : index
    %968 = memref.load %arg6[%c1_507, %c8_508] : memref<8x12xf32, #tpu.memory_space<smem>>
    %969 = vector.broadcast %968 : f32 to vector<1x16x16xf32>
    %970 = arith.mulf %969, %876 : vector<1x16x16xf32>
    %971 = arith.addf %967, %970 : vector<1x16x16xf32>
    %c1_509 = arith.constant 1 : index
    %c9_510 = arith.constant 9 : index
    %972 = memref.load %arg6[%c1_509, %c9_510] : memref<8x12xf32, #tpu.memory_space<smem>>
    %973 = vector.broadcast %972 : f32 to vector<1x16x16xf32>
    %974 = arith.mulf %973, %877 : vector<1x16x16xf32>
    %975 = arith.addf %971, %974 : vector<1x16x16xf32>
    %c1_511 = arith.constant 1 : index
    %c10_512 = arith.constant 10 : index
    %976 = memref.load %arg6[%c1_511, %c10_512] : memref<8x12xf32, #tpu.memory_space<smem>>
    %977 = vector.broadcast %976 : f32 to vector<1x16x16xf32>
    %978 = arith.mulf %977, %878 : vector<1x16x16xf32>
    %979 = arith.addf %975, %978 : vector<1x16x16xf32>
    %c1_513 = arith.constant 1 : index
    %c11_514 = arith.constant 11 : index
    %980 = memref.load %arg6[%c1_513, %c11_514] : memref<8x12xf32, #tpu.memory_space<smem>>
    %981 = vector.broadcast %980 : f32 to vector<1x16x16xf32>
    %982 = arith.mulf %981, %879 : vector<1x16x16xf32>
    %983 = arith.addf %979, %982 : vector<1x16x16xf32>
    %984 = arith.addf %950, %983 : vector<1x16x16xf32>
    %c0_515 = arith.constant 0 : index
    %c1_516 = arith.constant 1 : index
    %c0_517 = arith.constant 0 : index
    %c0_518 = arith.constant 0 : index
    %985 = vector.load %arg7[%c0_515, %c1_516, %c0_517, %c0_518] : memref<1x8x16x16xf32, #tpu.memory_space<vmem>>, vector<1x1x16x16xf32>
    %986 = vector.shape_cast %985 : vector<1x1x16x16xf32> to vector<1x16x16xf32>
    %987 = vector.shape_cast %984 : vector<1x16x16xf32> to vector<1x1x16x16xf32>
    tpu.vector_store %arg7[%c0_515, %c1_516, %c0_517, %c0_518], %987 {strides = array<i32>} : memref<1x8x16x16xf32, #tpu.memory_space<vmem>>, vector<1x1x16x16xf32>,
    %c2_519 = arith.constant 2 : index
    %c0_520 = arith.constant 0 : index
    %988 = memref.load %arg6[%c2_519, %c0_520] : memref<8x12xf32, #tpu.memory_space<smem>>
    %989 = vector.broadcast %988 : f32 to vector<1x16x16xf32>
    %990 = arith.mulf %989, %1 : vector<1x16x16xf32>
    %cst_521 = arith.constant 0.000000e+00 : f32
    %991 = vector.broadcast %cst_521 : f32 to vector<1x16x16xf32>
    %992 = arith.addf %991, %990 : vector<1x16x16xf32>
    %c2_522 = arith.constant 2 : index
    %c1_523 = arith.constant 1 : index
    %993 = memref.load %arg6[%c2_522, %c1_523] : memref<8x12xf32, #tpu.memory_space<smem>>
    %994 = vector.broadcast %993 : f32 to vector<1x16x16xf32>
    %995 = arith.mulf %994, %3 : vector<1x16x16xf32>
    %996 = arith.addf %992, %995 : vector<1x16x16xf32>
    %c2_524 = arith.constant 2 : index
    %c2_525 = arith.constant 2 : index
    %997 = memref.load %arg6[%c2_524, %c2_525] : memref<8x12xf32, #tpu.memory_space<smem>>
    %998 = vector.broadcast %997 : f32 to vector<1x16x16xf32>
    %999 = arith.mulf %998, %5 : vector<1x16x16xf32>
    %1000 = arith.addf %996, %999 : vector<1x16x16xf32>
    %c2_526 = arith.constant 2 : index
    %c3_527 = arith.constant 3 : index
    %1001 = memref.load %arg6[%c2_526, %c3_527] : memref<8x12xf32, #tpu.memory_space<smem>>
    %1002 = vector.broadcast %1001 : f32 to vector<1x16x16xf32>
    %1003 = arith.mulf %1002, %7 : vector<1x16x16xf32>
    %1004 = arith.addf %1000, %1003 : vector<1x16x16xf32>
    %c2_528 = arith.constant 2 : index
    %c4_529 = arith.constant 4 : index
    %1005 = memref.load %arg6[%c2_528, %c4_529] : memref<8x12xf32, #tpu.memory_space<smem>>
    %1006 = vector.broadcast %1005 : f32 to vector<1x16x16xf32>
    %1007 = arith.mulf %1006, %872 : vector<1x16x16xf32>
    %cst_530 = arith.constant 0.000000e+00 : f32
    %1008 = vector.broadcast %cst_530 : f32 to vector<1x16x16xf32>
    %1009 = arith.addf %1008, %1007 : vector<1x16x16xf32>
    %c2_531 = arith.constant 2 : index
    %c5_532 = arith.constant 5 : index
    %1010 = memref.load %arg6[%c2_531, %c5_532] : memref<8x12xf32, #tpu.memory_space<smem>>
    %1011 = vector.broadcast %1010 : f32 to vector<1x16x16xf32>
    %1012 = arith.mulf %1011, %873 : vector<1x16x16xf32>
    %1013 = arith.addf %1009, %1012 : vector<1x16x16xf32>
    %c2_533 = arith.constant 2 : index
    %c6_534 = arith.constant 6 : index
    %1014 = memref.load %arg6[%c2_533, %c6_534] : memref<8x12xf32, #tpu.memory_space<smem>>
    %1015 = vector.broadcast %1014 : f32 to vector<1x16x16xf32>
    %1016 = arith.mulf %1015, %874 : vector<1x16x16xf32>
    %1017 = arith.addf %1013, %1016 : vector<1x16x16xf32>
    %c2_535 = arith.constant 2 : index
    %c7_536 = arith.constant 7 : index
    %1018 = memref.load %arg6[%c2_535, %c7_536] : memref<8x12xf32, #tpu.memory_space<smem>>
    %1019 = vector.broadcast %1018 : f32 to vector<1x16x16xf32>
    %1020 = arith.mulf %1019, %875 : vector<1x16x16xf32>
    %1021 = arith.addf %1017, %1020 : vector<1x16x16xf32>
    %c2_537 = arith.constant 2 : index
    %c8_538 = arith.constant 8 : index
    %1022 = memref.load %arg6[%c2_537, %c8_538] : memref<8x12xf32, #tpu.memory_space<smem>>
    %1023 = vector.broadcast %1022 : f32 to vector<1x16x16xf32>
    %1024 = arith.mulf %1023, %876 : vector<1x16x16xf32>
    %1025 = arith.addf %1021, %1024 : vector<1x16x16xf32>
    %c2_539 = arith.constant 2 : index
    %c9_540 = arith.constant 9 : index
    %1026 = memref.load %arg6[%c2_539, %c9_540] : memref<8x12xf32, #tpu.memory_space<smem>>
    %1027 = vector.broadcast %1026 : f32 to vector<1x16x16xf32>
    %1028 = arith.mulf %1027, %877 : vector<1x16x16xf32>
    %1029 = arith.addf %1025, %1028 : vector<1x16x16xf32>
    %c2_541 = arith.constant 2 : index
    %c10_542 = arith.constant 10 : index
    %1030 = memref.load %arg6[%c2_541, %c10_542] : memref<8x12xf32, #tpu.memory_space<smem>>
    %1031 = vector.broadcast %1030 : f32 to vector<1x16x16xf32>
    %1032 = arith.mulf %1031, %878 : vector<1x16x16xf32>
    %1033 = arith.addf %1029, %1032 : vector<1x16x16xf32>
    %c2_543 = arith.constant 2 : index
    %c11_544 = arith.constant 11 : index
    %1034 = memref.load %arg6[%c2_543, %c11_544] : memref<8x12xf32, #tpu.memory_space<smem>>
    %1035 = vector.broadcast %1034 : f32 to vector<1x16x16xf32>
    %1036 = arith.mulf %1035, %879 : vector<1x16x16xf32>
    %1037 = arith.addf %1033, %1036 : vector<1x16x16xf32>
    %1038 = arith.addf %1004, %1037 : vector<1x16x16xf32>
    %c0_545 = arith.constant 0 : index
    %c2_546 = arith.constant 2 : index
    %c0_547 = arith.constant 0 : index
    %c0_548 = arith.constant 0 : index
    %1039 = vector.load %arg7[%c0_545, %c2_546, %c0_547, %c0_548] : memref<1x8x16x16xf32, #tpu.memory_space<vmem>>, vector<1x1x16x16xf32>
    %1040 = vector.shape_cast %1039 : vector<1x1x16x16xf32> to vector<1x16x16xf32>
    %1041 = vector.shape_cast %1038 : vector<1x16x16xf32> to vector<1x1x16x16xf32>
    tpu.vector_store %arg7[%c0_545, %c2_546, %c0_547, %c0_548], %1041 {strides = array<i32>} : memref<1x8x16x16xf32, #tpu.memory_space<vmem>>, vector<1x1x16x16xf32>,
    %c3_549 = arith.constant 3 : index
    %c0_550 = arith.constant 0 : index
    %1042 = memref.load %arg6[%c3_549, %c0_550] : memref<8x12xf32, #tpu.memory_space<smem>>
    %1043 = vector.broadcast %1042 : f32 to vector<1x16x16xf32>
    %1044 = arith.mulf %1043, %1 : vector<1x16x16xf32>
    %cst_551 = arith.constant 0.000000e+00 : f32
    %1045 = vector.broadcast %cst_551 : f32 to vector<1x16x16xf32>
    %1046 = arith.addf %1045, %1044 : vector<1x16x16xf32>
    %c3_552 = arith.constant 3 : index
    %c1_553 = arith.constant 1 : index
    %1047 = memref.load %arg6[%c3_552, %c1_553] : memref<8x12xf32, #tpu.memory_space<smem>>
    %1048 = vector.broadcast %1047 : f32 to vector<1x16x16xf32>
    %1049 = arith.mulf %1048, %3 : vector<1x16x16xf32>
    %1050 = arith.addf %1046, %1049 : vector<1x16x16xf32>
    %c3_554 = arith.constant 3 : index
    %c2_555 = arith.constant 2 : index
    %1051 = memref.load %arg6[%c3_554, %c2_555] : memref<8x12xf32, #tpu.memory_space<smem>>
    %1052 = vector.broadcast %1051 : f32 to vector<1x16x16xf32>
    %1053 = arith.mulf %1052, %5 : vector<1x16x16xf32>
    %1054 = arith.addf %1050, %1053 : vector<1x16x16xf32>
    %c3_556 = arith.constant 3 : index
    %c3_557 = arith.constant 3 : index
    %1055 = memref.load %arg6[%c3_556, %c3_557] : memref<8x12xf32, #tpu.memory_space<smem>>
    %1056 = vector.broadcast %1055 : f32 to vector<1x16x16xf32>
    %1057 = arith.mulf %1056, %7 : vector<1x16x16xf32>
    %1058 = arith.addf %1054, %1057 : vector<1x16x16xf32>
    %c3_558 = arith.constant 3 : index
    %c4_559 = arith.constant 4 : index
    %1059 = memref.load %arg6[%c3_558, %c4_559] : memref<8x12xf32, #tpu.memory_space<smem>>
    %1060 = vector.broadcast %1059 : f32 to vector<1x16x16xf32>
    %1061 = arith.mulf %1060, %872 : vector<1x16x16xf32>
    %cst_560 = arith.constant 0.000000e+00 : f32
    %1062 = vector.broadcast %cst_560 : f32 to vector<1x16x16xf32>
    %1063 = arith.addf %1062, %1061 : vector<1x16x16xf32>
    %c3_561 = arith.constant 3 : index
    %c5_562 = arith.constant 5 : index
    %1064 = memref.load %arg6[%c3_561, %c5_562] : memref<8x12xf32, #tpu.memory_space<smem>>
    %1065 = vector.broadcast %1064 : f32 to vector<1x16x16xf32>
    %1066 = arith.mulf %1065, %873 : vector<1x16x16xf32>
    %1067 = arith.addf %1063, %1066 : vector<1x16x16xf32>
    %c3_563 = arith.constant 3 : index
    %c6_564 = arith.constant 6 : index
    %1068 = memref.load %arg6[%c3_563, %c6_564] : memref<8x12xf32, #tpu.memory_space<smem>>
    %1069 = vector.broadcast %1068 : f32 to vector<1x16x16xf32>
    %1070 = arith.mulf %1069, %874 : vector<1x16x16xf32>
    %1071 = arith.addf %1067, %1070 : vector<1x16x16xf32>
    %c3_565 = arith.constant 3 : index
    %c7_566 = arith.constant 7 : index
    %1072 = memref.load %arg6[%c3_565, %c7_566] : memref<8x12xf32, #tpu.memory_space<smem>>
    %1073 = vector.broadcast %1072 : f32 to vector<1x16x16xf32>
    %1074 = arith.mulf %1073, %875 : vector<1x16x16xf32>
    %1075 = arith.addf %1071, %1074 : vector<1x16x16xf32>
    %c3_567 = arith.constant 3 : index
    %c8_568 = arith.constant 8 : index
    %1076 = memref.load %arg6[%c3_567, %c8_568] : memref<8x12xf32, #tpu.memory_space<smem>>
    %1077 = vector.broadcast %1076 : f32 to vector<1x16x16xf32>
    %1078 = arith.mulf %1077, %876 : vector<1x16x16xf32>
    %1079 = arith.addf %1075, %1078 : vector<1x16x16xf32>
    %c3_569 = arith.constant 3 : index
    %c9_570 = arith.constant 9 : index
    %1080 = memref.load %arg6[%c3_569, %c9_570] : memref<8x12xf32, #tpu.memory_space<smem>>
    %1081 = vector.broadcast %1080 : f32 to vector<1x16x16xf32>
    %1082 = arith.mulf %1081, %877 : vector<1x16x16xf32>
    %1083 = arith.addf %1079, %1082 : vector<1x16x16xf32>
    %c3_571 = arith.constant 3 : index
    %c10_572 = arith.constant 10 : index
    %1084 = memref.load %arg6[%c3_571, %c10_572] : memref<8x12xf32, #tpu.memory_space<smem>>
    %1085 = vector.broadcast %1084 : f32 to vector<1x16x16xf32>
    %1086 = arith.mulf %1085, %878 : vector<1x16x16xf32>
    %1087 = arith.addf %1083, %1086 : vector<1x16x16xf32>
    %c3_573 = arith.constant 3 : index
    %c11_574 = arith.constant 11 : index
    %1088 = memref.load %arg6[%c3_573, %c11_574] : memref<8x12xf32, #tpu.memory_space<smem>>
    %1089 = vector.broadcast %1088 : f32 to vector<1x16x16xf32>
    %1090 = arith.mulf %1089, %879 : vector<1x16x16xf32>
    %1091 = arith.addf %1087, %1090 : vector<1x16x16xf32>
    %1092 = arith.addf %1058, %1091 : vector<1x16x16xf32>
    %c0_575 = arith.constant 0 : index
    %c3_576 = arith.constant 3 : index
    %c0_577 = arith.constant 0 : index
    %c0_578 = arith.constant 0 : index
    %1093 = vector.load %arg7[%c0_575, %c3_576, %c0_577, %c0_578] : memref<1x8x16x16xf32, #tpu.memory_space<vmem>>, vector<1x1x16x16xf32>
    %1094 = vector.shape_cast %1093 : vector<1x1x16x16xf32> to vector<1x16x16xf32>
    %1095 = vector.shape_cast %1092 : vector<1x16x16xf32> to vector<1x1x16x16xf32>
    tpu.vector_store %arg7[%c0_575, %c3_576, %c0_577, %c0_578], %1095 {strides = array<i32>} : memref<1x8x16x16xf32, #tpu.memory_space<vmem>>, vector<1x1x16x16xf32>,
    %c4_579 = arith.constant 4 : index
    %c0_580 = arith.constant 0 : index
    %1096 = memref.load %arg6[%c4_579, %c0_580] : memref<8x12xf32, #tpu.memory_space<smem>>
    %1097 = vector.broadcast %1096 : f32 to vector<1x16x16xf32>
    %1098 = arith.mulf %1097, %1 : vector<1x16x16xf32>
    %cst_581 = arith.constant 0.000000e+00 : f32
    %1099 = vector.broadcast %cst_581 : f32 to vector<1x16x16xf32>
    %1100 = arith.addf %1099, %1098 : vector<1x16x16xf32>
    %c4_582 = arith.constant 4 : index
    %c1_583 = arith.constant 1 : index
    %1101 = memref.load %arg6[%c4_582, %c1_583] : memref<8x12xf32, #tpu.memory_space<smem>>
    %1102 = vector.broadcast %1101 : f32 to vector<1x16x16xf32>
    %1103 = arith.mulf %1102, %3 : vector<1x16x16xf32>
    %1104 = arith.addf %1100, %1103 : vector<1x16x16xf32>
    %c4_584 = arith.constant 4 : index
    %c2_585 = arith.constant 2 : index
    %1105 = memref.load %arg6[%c4_584, %c2_585] : memref<8x12xf32, #tpu.memory_space<smem>>
    %1106 = vector.broadcast %1105 : f32 to vector<1x16x16xf32>
    %1107 = arith.mulf %1106, %5 : vector<1x16x16xf32>
    %1108 = arith.addf %1104, %1107 : vector<1x16x16xf32>
    %c4_586 = arith.constant 4 : index
    %c3_587 = arith.constant 3 : index
    %1109 = memref.load %arg6[%c4_586, %c3_587] : memref<8x12xf32, #tpu.memory_space<smem>>
    %1110 = vector.broadcast %1109 : f32 to vector<1x16x16xf32>
    %1111 = arith.mulf %1110, %7 : vector<1x16x16xf32>
    %1112 = arith.addf %1108, %1111 : vector<1x16x16xf32>
    %c4_588 = arith.constant 4 : index
    %c4_589 = arith.constant 4 : index
    %1113 = memref.load %arg6[%c4_588, %c4_589] : memref<8x12xf32, #tpu.memory_space<smem>>
    %1114 = vector.broadcast %1113 : f32 to vector<1x16x16xf32>
    %1115 = arith.mulf %1114, %872 : vector<1x16x16xf32>
    %cst_590 = arith.constant 0.000000e+00 : f32
    %1116 = vector.broadcast %cst_590 : f32 to vector<1x16x16xf32>
    %1117 = arith.addf %1116, %1115 : vector<1x16x16xf32>
    %c4_591 = arith.constant 4 : index
    %c5_592 = arith.constant 5 : index
    %1118 = memref.load %arg6[%c4_591, %c5_592] : memref<8x12xf32, #tpu.memory_space<smem>>
    %1119 = vector.broadcast %1118 : f32 to vector<1x16x16xf32>
    %1120 = arith.mulf %1119, %873 : vector<1x16x16xf32>
    %1121 = arith.addf %1117, %1120 : vector<1x16x16xf32>
    %c4_593 = arith.constant 4 : index
    %c6_594 = arith.constant 6 : index
    %1122 = memref.load %arg6[%c4_593, %c6_594] : memref<8x12xf32, #tpu.memory_space<smem>>
    %1123 = vector.broadcast %1122 : f32 to vector<1x16x16xf32>
    %1124 = arith.mulf %1123, %874 : vector<1x16x16xf32>
    %1125 = arith.addf %1121, %1124 : vector<1x16x16xf32>
    %c4_595 = arith.constant 4 : index
    %c7_596 = arith.constant 7 : index
    %1126 = memref.load %arg6[%c4_595, %c7_596] : memref<8x12xf32, #tpu.memory_space<smem>>
    %1127 = vector.broadcast %1126 : f32 to vector<1x16x16xf32>
    %1128 = arith.mulf %1127, %875 : vector<1x16x16xf32>
    %1129 = arith.addf %1125, %1128 : vector<1x16x16xf32>
    %c4_597 = arith.constant 4 : index
    %c8_598 = arith.constant 8 : index
    %1130 = memref.load %arg6[%c4_597, %c8_598] : memref<8x12xf32, #tpu.memory_space<smem>>
    %1131 = vector.broadcast %1130 : f32 to vector<1x16x16xf32>
    %1132 = arith.mulf %1131, %876 : vector<1x16x16xf32>
    %1133 = arith.addf %1129, %1132 : vector<1x16x16xf32>
    %c4_599 = arith.constant 4 : index
    %c9_600 = arith.constant 9 : index
    %1134 = memref.load %arg6[%c4_599, %c9_600] : memref<8x12xf32, #tpu.memory_space<smem>>
    %1135 = vector.broadcast %1134 : f32 to vector<1x16x16xf32>
    %1136 = arith.mulf %1135, %877 : vector<1x16x16xf32>
    %1137 = arith.addf %1133, %1136 : vector<1x16x16xf32>
    %c4_601 = arith.constant 4 : index
    %c10_602 = arith.constant 10 : index
    %1138 = memref.load %arg6[%c4_601, %c10_602] : memref<8x12xf32, #tpu.memory_space<smem>>
    %1139 = vector.broadcast %1138 : f32 to vector<1x16x16xf32>
    %1140 = arith.mulf %1139, %878 : vector<1x16x16xf32>
    %1141 = arith.addf %1137, %1140 : vector<1x16x16xf32>
    %c4_603 = arith.constant 4 : index
    %c11_604 = arith.constant 11 : index
    %1142 = memref.load %arg6[%c4_603, %c11_604] : memref<8x12xf32, #tpu.memory_space<smem>>
    %1143 = vector.broadcast %1142 : f32 to vector<1x16x16xf32>
    %1144 = arith.mulf %1143, %879 : vector<1x16x16xf32>
    %1145 = arith.addf %1141, %1144 : vector<1x16x16xf32>
    %1146 = arith.addf %1112, %1145 : vector<1x16x16xf32>
    %c0_605 = arith.constant 0 : index
    %c4_606 = arith.constant 4 : index
    %c0_607 = arith.constant 0 : index
    %c0_608 = arith.constant 0 : index
    %1147 = vector.load %arg7[%c0_605, %c4_606, %c0_607, %c0_608] : memref<1x8x16x16xf32, #tpu.memory_space<vmem>>, vector<1x1x16x16xf32>
    %1148 = vector.shape_cast %1147 : vector<1x1x16x16xf32> to vector<1x16x16xf32>
    %1149 = vector.shape_cast %1146 : vector<1x16x16xf32> to vector<1x1x16x16xf32>
    tpu.vector_store %arg7[%c0_605, %c4_606, %c0_607, %c0_608], %1149 {strides = array<i32>} : memref<1x8x16x16xf32, #tpu.memory_space<vmem>>, vector<1x1x16x16xf32>,
    %c5_609 = arith.constant 5 : index
    %c0_610 = arith.constant 0 : index
    %1150 = memref.load %arg6[%c5_609, %c0_610] : memref<8x12xf32, #tpu.memory_space<smem>>
    %1151 = vector.broadcast %1150 : f32 to vector<1x16x16xf32>
    %1152 = arith.mulf %1151, %1 : vector<1x16x16xf32>
    %cst_611 = arith.constant 0.000000e+00 : f32
    %1153 = vector.broadcast %cst_611 : f32 to vector<1x16x16xf32>
    %1154 = arith.addf %1153, %1152 : vector<1x16x16xf32>
    %c5_612 = arith.constant 5 : index
    %c1_613 = arith.constant 1 : index
    %1155 = memref.load %arg6[%c5_612, %c1_613] : memref<8x12xf32, #tpu.memory_space<smem>>
    %1156 = vector.broadcast %1155 : f32 to vector<1x16x16xf32>
    %1157 = arith.mulf %1156, %3 : vector<1x16x16xf32>
    %1158 = arith.addf %1154, %1157 : vector<1x16x16xf32>
    %c5_614 = arith.constant 5 : index
    %c2_615 = arith.constant 2 : index
    %1159 = memref.load %arg6[%c5_614, %c2_615] : memref<8x12xf32, #tpu.memory_space<smem>>
    %1160 = vector.broadcast %1159 : f32 to vector<1x16x16xf32>
    %1161 = arith.mulf %1160, %5 : vector<1x16x16xf32>
    %1162 = arith.addf %1158, %1161 : vector<1x16x16xf32>
    %c5_616 = arith.constant 5 : index
    %c3_617 = arith.constant 3 : index
    %1163 = memref.load %arg6[%c5_616, %c3_617] : memref<8x12xf32, #tpu.memory_space<smem>>
    %1164 = vector.broadcast %1163 : f32 to vector<1x16x16xf32>
    %1165 = arith.mulf %1164, %7 : vector<1x16x16xf32>
    %1166 = arith.addf %1162, %1165 : vector<1x16x16xf32>
    %c5_618 = arith.constant 5 : index
    %c4_619 = arith.constant 4 : index
    %1167 = memref.load %arg6[%c5_618, %c4_619] : memref<8x12xf32, #tpu.memory_space<smem>>
    %1168 = vector.broadcast %1167 : f32 to vector<1x16x16xf32>
    %1169 = arith.mulf %1168, %872 : vector<1x16x16xf32>
    %cst_620 = arith.constant 0.000000e+00 : f32
    %1170 = vector.broadcast %cst_620 : f32 to vector<1x16x16xf32>
    %1171 = arith.addf %1170, %1169 : vector<1x16x16xf32>
    %c5_621 = arith.constant 5 : index
    %c5_622 = arith.constant 5 : index
    %1172 = memref.load %arg6[%c5_621, %c5_622] : memref<8x12xf32, #tpu.memory_space<smem>>
    %1173 = vector.broadcast %1172 : f32 to vector<1x16x16xf32>
    %1174 = arith.mulf %1173, %873 : vector<1x16x16xf32>
    %1175 = arith.addf %1171, %1174 : vector<1x16x16xf32>
    %c5_623 = arith.constant 5 : index
    %c6_624 = arith.constant 6 : index
    %1176 = memref.load %arg6[%c5_623, %c6_624] : memref<8x12xf32, #tpu.memory_space<smem>>
    %1177 = vector.broadcast %1176 : f32 to vector<1x16x16xf32>
    %1178 = arith.mulf %1177, %874 : vector<1x16x16xf32>
    %1179 = arith.addf %1175, %1178 : vector<1x16x16xf32>
    %c5_625 = arith.constant 5 : index
    %c7_626 = arith.constant 7 : index
    %1180 = memref.load %arg6[%c5_625, %c7_626] : memref<8x12xf32, #tpu.memory_space<smem>>
    %1181 = vector.broadcast %1180 : f32 to vector<1x16x16xf32>
    %1182 = arith.mulf %1181, %875 : vector<1x16x16xf32>
    %1183 = arith.addf %1179, %1182 : vector<1x16x16xf32>
    %c5_627 = arith.constant 5 : index
    %c8_628 = arith.constant 8 : index
    %1184 = memref.load %arg6[%c5_627, %c8_628] : memref<8x12xf32, #tpu.memory_space<smem>>
    %1185 = vector.broadcast %1184 : f32 to vector<1x16x16xf32>
    %1186 = arith.mulf %1185, %876 : vector<1x16x16xf32>
    %1187 = arith.addf %1183, %1186 : vector<1x16x16xf32>
    %c5_629 = arith.constant 5 : index
    %c9_630 = arith.constant 9 : index
    %1188 = memref.load %arg6[%c5_629, %c9_630] : memref<8x12xf32, #tpu.memory_space<smem>>
    %1189 = vector.broadcast %1188 : f32 to vector<1x16x16xf32>
    %1190 = arith.mulf %1189, %877 : vector<1x16x16xf32>
    %1191 = arith.addf %1187, %1190 : vector<1x16x16xf32>
    %c5_631 = arith.constant 5 : index
    %c10_632 = arith.constant 10 : index
    %1192 = memref.load %arg6[%c5_631, %c10_632] : memref<8x12xf32, #tpu.memory_space<smem>>
    %1193 = vector.broadcast %1192 : f32 to vector<1x16x16xf32>
    %1194 = arith.mulf %1193, %878 : vector<1x16x16xf32>
    %1195 = arith.addf %1191, %1194 : vector<1x16x16xf32>
    %c5_633 = arith.constant 5 : index
    %c11_634 = arith.constant 11 : index
    %1196 = memref.load %arg6[%c5_633, %c11_634] : memref<8x12xf32, #tpu.memory_space<smem>>
    %1197 = vector.broadcast %1196 : f32 to vector<1x16x16xf32>
    %1198 = arith.mulf %1197, %879 : vector<1x16x16xf32>
    %1199 = arith.addf %1195, %1198 : vector<1x16x16xf32>
    %1200 = arith.addf %1166, %1199 : vector<1x16x16xf32>
    %c0_635 = arith.constant 0 : index
    %c5_636 = arith.constant 5 : index
    %c0_637 = arith.constant 0 : index
    %c0_638 = arith.constant 0 : index
    %1201 = vector.load %arg7[%c0_635, %c5_636, %c0_637, %c0_638] : memref<1x8x16x16xf32, #tpu.memory_space<vmem>>, vector<1x1x16x16xf32>
    %1202 = vector.shape_cast %1201 : vector<1x1x16x16xf32> to vector<1x16x16xf32>
    %1203 = vector.shape_cast %1200 : vector<1x16x16xf32> to vector<1x1x16x16xf32>
    tpu.vector_store %arg7[%c0_635, %c5_636, %c0_637, %c0_638], %1203 {strides = array<i32>} : memref<1x8x16x16xf32, #tpu.memory_space<vmem>>, vector<1x1x16x16xf32>,
    %c6_639 = arith.constant 6 : index
    %c0_640 = arith.constant 0 : index
    %1204 = memref.load %arg6[%c6_639, %c0_640] : memref<8x12xf32, #tpu.memory_space<smem>>
    %1205 = vector.broadcast %1204 : f32 to vector<1x16x16xf32>
    %1206 = arith.mulf %1205, %1 : vector<1x16x16xf32>
    %cst_641 = arith.constant 0.000000e+00 : f32
    %1207 = vector.broadcast %cst_641 : f32 to vector<1x16x16xf32>
    %1208 = arith.addf %1207, %1206 : vector<1x16x16xf32>
    %c6_642 = arith.constant 6 : index
    %c1_643 = arith.constant 1 : index
    %1209 = memref.load %arg6[%c6_642, %c1_643] : memref<8x12xf32, #tpu.memory_space<smem>>
    %1210 = vector.broadcast %1209 : f32 to vector<1x16x16xf32>
    %1211 = arith.mulf %1210, %3 : vector<1x16x16xf32>
    %1212 = arith.addf %1208, %1211 : vector<1x16x16xf32>
    %c6_644 = arith.constant 6 : index
    %c2_645 = arith.constant 2 : index
    %1213 = memref.load %arg6[%c6_644, %c2_645] : memref<8x12xf32, #tpu.memory_space<smem>>
    %1214 = vector.broadcast %1213 : f32 to vector<1x16x16xf32>
    %1215 = arith.mulf %1214, %5 : vector<1x16x16xf32>
    %1216 = arith.addf %1212, %1215 : vector<1x16x16xf32>
    %c6_646 = arith.constant 6 : index
    %c3_647 = arith.constant 3 : index
    %1217 = memref.load %arg6[%c6_646, %c3_647] : memref<8x12xf32, #tpu.memory_space<smem>>
    %1218 = vector.broadcast %1217 : f32 to vector<1x16x16xf32>
    %1219 = arith.mulf %1218, %7 : vector<1x16x16xf32>
    %1220 = arith.addf %1216, %1219 : vector<1x16x16xf32>
    %c6_648 = arith.constant 6 : index
    %c4_649 = arith.constant 4 : index
    %1221 = memref.load %arg6[%c6_648, %c4_649] : memref<8x12xf32, #tpu.memory_space<smem>>
    %1222 = vector.broadcast %1221 : f32 to vector<1x16x16xf32>
    %1223 = arith.mulf %1222, %872 : vector<1x16x16xf32>
    %cst_650 = arith.constant 0.000000e+00 : f32
    %1224 = vector.broadcast %cst_650 : f32 to vector<1x16x16xf32>
    %1225 = arith.addf %1224, %1223 : vector<1x16x16xf32>
    %c6_651 = arith.constant 6 : index
    %c5_652 = arith.constant 5 : index
    %1226 = memref.load %arg6[%c6_651, %c5_652] : memref<8x12xf32, #tpu.memory_space<smem>>
    %1227 = vector.broadcast %1226 : f32 to vector<1x16x16xf32>
    %1228 = arith.mulf %1227, %873 : vector<1x16x16xf32>
    %1229 = arith.addf %1225, %1228 : vector<1x16x16xf32>
    %c6_653 = arith.constant 6 : index
    %c6_654 = arith.constant 6 : index
    %1230 = memref.load %arg6[%c6_653, %c6_654] : memref<8x12xf32, #tpu.memory_space<smem>>
    %1231 = vector.broadcast %1230 : f32 to vector<1x16x16xf32>
    %1232 = arith.mulf %1231, %874 : vector<1x16x16xf32>
    %1233 = arith.addf %1229, %1232 : vector<1x16x16xf32>
    %c6_655 = arith.constant 6 : index
    %c7_656 = arith.constant 7 : index
    %1234 = memref.load %arg6[%c6_655, %c7_656] : memref<8x12xf32, #tpu.memory_space<smem>>
    %1235 = vector.broadcast %1234 : f32 to vector<1x16x16xf32>
    %1236 = arith.mulf %1235, %875 : vector<1x16x16xf32>
    %1237 = arith.addf %1233, %1236 : vector<1x16x16xf32>
    %c6_657 = arith.constant 6 : index
    %c8_658 = arith.constant 8 : index
    %1238 = memref.load %arg6[%c6_657, %c8_658] : memref<8x12xf32, #tpu.memory_space<smem>>
    %1239 = vector.broadcast %1238 : f32 to vector<1x16x16xf32>
    %1240 = arith.mulf %1239, %876 : vector<1x16x16xf32>
    %1241 = arith.addf %1237, %1240 : vector<1x16x16xf32>
    %c6_659 = arith.constant 6 : index
    %c9_660 = arith.constant 9 : index
    %1242 = memref.load %arg6[%c6_659, %c9_660] : memref<8x12xf32, #tpu.memory_space<smem>>
    %1243 = vector.broadcast %1242 : f32 to vector<1x16x16xf32>
    %1244 = arith.mulf %1243, %877 : vector<1x16x16xf32>
    %1245 = arith.addf %1241, %1244 : vector<1x16x16xf32>
    %c6_661 = arith.constant 6 : index
    %c10_662 = arith.constant 10 : index
    %1246 = memref.load %arg6[%c6_661, %c10_662] : memref<8x12xf32, #tpu.memory_space<smem>>
    %1247 = vector.broadcast %1246 : f32 to vector<1x16x16xf32>
    %1248 = arith.mulf %1247, %878 : vector<1x16x16xf32>
    %1249 = arith.addf %1245, %1248 : vector<1x16x16xf32>
    %c6_663 = arith.constant 6 : index
    %c11_664 = arith.constant 11 : index
    %1250 = memref.load %arg6[%c6_663, %c11_664] : memref<8x12xf32, #tpu.memory_space<smem>>
    %1251 = vector.broadcast %1250 : f32 to vector<1x16x16xf32>
    %1252 = arith.mulf %1251, %879 : vector<1x16x16xf32>
    %1253 = arith.addf %1249, %1252 : vector<1x16x16xf32>
    %1254 = arith.addf %1220, %1253 : vector<1x16x16xf32>
    %c0_665 = arith.constant 0 : index
    %c6_666 = arith.constant 6 : index
    %c0_667 = arith.constant 0 : index
    %c0_668 = arith.constant 0 : index
    %1255 = vector.load %arg7[%c0_665, %c6_666, %c0_667, %c0_668] : memref<1x8x16x16xf32, #tpu.memory_space<vmem>>, vector<1x1x16x16xf32>
    %1256 = vector.shape_cast %1255 : vector<1x1x16x16xf32> to vector<1x16x16xf32>
    %1257 = vector.shape_cast %1254 : vector<1x16x16xf32> to vector<1x1x16x16xf32>
    tpu.vector_store %arg7[%c0_665, %c6_666, %c0_667, %c0_668], %1257 {strides = array<i32>} : memref<1x8x16x16xf32, #tpu.memory_space<vmem>>, vector<1x1x16x16xf32>,
    %c7_669 = arith.constant 7 : index
    %c0_670 = arith.constant 0 : index
    %1258 = memref.load %arg6[%c7_669, %c0_670] : memref<8x12xf32, #tpu.memory_space<smem>>
    %1259 = vector.broadcast %1258 : f32 to vector<1x16x16xf32>
    %1260 = arith.mulf %1259, %1 : vector<1x16x16xf32>
    %cst_671 = arith.constant 0.000000e+00 : f32
    %1261 = vector.broadcast %cst_671 : f32 to vector<1x16x16xf32>
    %1262 = arith.addf %1261, %1260 : vector<1x16x16xf32>
    %c7_672 = arith.constant 7 : index
    %c1_673 = arith.constant 1 : index
    %1263 = memref.load %arg6[%c7_672, %c1_673] : memref<8x12xf32, #tpu.memory_space<smem>>
    %1264 = vector.broadcast %1263 : f32 to vector<1x16x16xf32>
    %1265 = arith.mulf %1264, %3 : vector<1x16x16xf32>
    %1266 = arith.addf %1262, %1265 : vector<1x16x16xf32>
    %c7_674 = arith.constant 7 : index
    %c2_675 = arith.constant 2 : index
    %1267 = memref.load %arg6[%c7_674, %c2_675] : memref<8x12xf32, #tpu.memory_space<smem>>
    %1268 = vector.broadcast %1267 : f32 to vector<1x16x16xf32>
    %1269 = arith.mulf %1268, %5 : vector<1x16x16xf32>
    %1270 = arith.addf %1266, %1269 : vector<1x16x16xf32>
    %c7_676 = arith.constant 7 : index
    %c3_677 = arith.constant 3 : index
    %1271 = memref.load %arg6[%c7_676, %c3_677] : memref<8x12xf32, #tpu.memory_space<smem>>
    %1272 = vector.broadcast %1271 : f32 to vector<1x16x16xf32>
    %1273 = arith.mulf %1272, %7 : vector<1x16x16xf32>
    %1274 = arith.addf %1270, %1273 : vector<1x16x16xf32>
    %c7_678 = arith.constant 7 : index
    %c4_679 = arith.constant 4 : index
    %1275 = memref.load %arg6[%c7_678, %c4_679] : memref<8x12xf32, #tpu.memory_space<smem>>
    %1276 = vector.broadcast %1275 : f32 to vector<1x16x16xf32>
    %1277 = arith.mulf %1276, %872 : vector<1x16x16xf32>
    %cst_680 = arith.constant 0.000000e+00 : f32
    %1278 = vector.broadcast %cst_680 : f32 to vector<1x16x16xf32>
    %1279 = arith.addf %1278, %1277 : vector<1x16x16xf32>
    %c7_681 = arith.constant 7 : index
    %c5_682 = arith.constant 5 : index
    %1280 = memref.load %arg6[%c7_681, %c5_682] : memref<8x12xf32, #tpu.memory_space<smem>>
    %1281 = vector.broadcast %1280 : f32 to vector<1x16x16xf32>
    %1282 = arith.mulf %1281, %873 : vector<1x16x16xf32>
    %1283 = arith.addf %1279, %1282 : vector<1x16x16xf32>
    %c7_683 = arith.constant 7 : index
    %c6_684 = arith.constant 6 : index
    %1284 = memref.load %arg6[%c7_683, %c6_684] : memref<8x12xf32, #tpu.memory_space<smem>>
    %1285 = vector.broadcast %1284 : f32 to vector<1x16x16xf32>
    %1286 = arith.mulf %1285, %874 : vector<1x16x16xf32>
    %1287 = arith.addf %1283, %1286 : vector<1x16x16xf32>
    %c7_685 = arith.constant 7 : index
    %c7_686 = arith.constant 7 : index
    %1288 = memref.load %arg6[%c7_685, %c7_686] : memref<8x12xf32, #tpu.memory_space<smem>>
    %1289 = vector.broadcast %1288 : f32 to vector<1x16x16xf32>
    %1290 = arith.mulf %1289, %875 : vector<1x16x16xf32>
    %1291 = arith.addf %1287, %1290 : vector<1x16x16xf32>
    %c7_687 = arith.constant 7 : index
    %c8_688 = arith.constant 8 : index
    %1292 = memref.load %arg6[%c7_687, %c8_688] : memref<8x12xf32, #tpu.memory_space<smem>>
    %1293 = vector.broadcast %1292 : f32 to vector<1x16x16xf32>
    %1294 = arith.mulf %1293, %876 : vector<1x16x16xf32>
    %1295 = arith.addf %1291, %1294 : vector<1x16x16xf32>
    %c7_689 = arith.constant 7 : index
    %c9_690 = arith.constant 9 : index
    %1296 = memref.load %arg6[%c7_689, %c9_690] : memref<8x12xf32, #tpu.memory_space<smem>>
    %1297 = vector.broadcast %1296 : f32 to vector<1x16x16xf32>
    %1298 = arith.mulf %1297, %877 : vector<1x16x16xf32>
    %1299 = arith.addf %1295, %1298 : vector<1x16x16xf32>
    %c7_691 = arith.constant 7 : index
    %c10_692 = arith.constant 10 : index
    %1300 = memref.load %arg6[%c7_691, %c10_692] : memref<8x12xf32, #tpu.memory_space<smem>>
    %1301 = vector.broadcast %1300 : f32 to vector<1x16x16xf32>
    %1302 = arith.mulf %1301, %878 : vector<1x16x16xf32>
    %1303 = arith.addf %1299, %1302 : vector<1x16x16xf32>
    %c7_693 = arith.constant 7 : index
    %c11_694 = arith.constant 11 : index
    %1304 = memref.load %arg6[%c7_693, %c11_694] : memref<8x12xf32, #tpu.memory_space<smem>>
    %1305 = vector.broadcast %1304 : f32 to vector<1x16x16xf32>
    %1306 = arith.mulf %1305, %879 : vector<1x16x16xf32>
    %1307 = arith.addf %1303, %1306 : vector<1x16x16xf32>
    %1308 = arith.addf %1274, %1307 : vector<1x16x16xf32>
    %c0_695 = arith.constant 0 : index
    %c7_696 = arith.constant 7 : index
    %c0_697 = arith.constant 0 : index
    %c0_698 = arith.constant 0 : index
    %1309 = vector.load %arg7[%c0_695, %c7_696, %c0_697, %c0_698] : memref<1x8x16x16xf32, #tpu.memory_space<vmem>>, vector<1x1x16x16xf32>
    %1310 = vector.shape_cast %1309 : vector<1x1x16x16xf32> to vector<1x16x16xf32>
    %1311 = vector.shape_cast %1308 : vector<1x16x16xf32> to vector<1x1x16x16xf32>
    tpu.vector_store %arg7[%c0_695, %c7_696, %c0_697, %c0_698], %1311 {strides = array<i32>} : memref<1x8x16x16xf32, #tpu.memory_space<vmem>>, vector<1x1x16x16xf32>,
    return
  }
  func.func @transform_0(%arg0: i32) -> (i32, i32, i32, i32) {
    %c0_i32 = arith.constant 0 : i32
    %c0_i32_0 = arith.constant 0 : i32
    %c0_i32_1 = arith.constant 0 : i32
    %c0_i32_2 = arith.constant 0 : i32
    return %arg0, %c0_i32, %c0_i32_0, %c0_i32_1 : i32, i32, i32, i32
  }
  func.func @transform_1(%arg0: i32) -> (i32, i32) {
    %c0_i32 = arith.constant 0 : i32
    %c0_i32_0 = arith.constant 0 : i32
    %c0_i32_1 = arith.constant 0 : i32
    return %c0_i32, %c0_i32_0 : i32, i32
  }
  func.func @transform_2(%arg0: i32) -> (i32, i32) {
    %c0_i32 = arith.constant 0 : i32
    %c0_i32_0 = arith.constant 0 : i32
    %c0_i32_1 = arith.constant 0 : i32
    return %c0_i32, %c0_i32_0 : i32, i32
  }
  func.func @transform_3(%arg0: i32) -> (i32, i32) {
    %c0_i32 = arith.constant 0 : i32
    %c0_i32_0 = arith.constant 0 : i32
    %c0_i32_1 = arith.constant 0 : i32
    return %c0_i32, %c0_i32_0 : i32, i32
  }
  func.func @transform_4(%arg0: i32) -> (i32, i32) {
    %c0_i32 = arith.constant 0 : i32
    %c0_i32_0 = arith.constant 0 : i32
    %c0_i32_1 = arith.constant 0 : i32
    return %c0_i32, %c0_i32_0 : i32, i32
  }
  func.func @transform_5(%arg0: i32) -> (i32, i32) {
    %c0_i32 = arith.constant 0 : i32
    %c0_i32_0 = arith.constant 0 : i32
    %c0_i32_1 = arith.constant 0 : i32
    return %c0_i32, %c0_i32_0 : i32, i32
  }
  func.func @transform_6(%arg0: i32) -> (i32, i32, i32, i32) {
    %c0_i32 = arith.constant 0 : i32
    %c0_i32_0 = arith.constant 0 : i32
    %c0_i32_1 = arith.constant 0 : i32
    %c0_i32_2 = arith.constant 0 : i32
    return %arg0, %c0_i32, %c0_i32_0, %c0_i32_1 : i32, i32, i32, i32
  }
}

</mosaic_0001>

<bundles_post_ra>
// kernel: regular_block_forward.1
= control target key start
LH: loop header
LB: loop body
LE: loop exit
PB: predicated region body
PF: predicated region fallthrough
CT: control target
= control target key end

     0   :  { %s6018_s0 = inlined_call_operand.hbm [shape: f32[2,4,16,16], index: 0, kind: input, shape index: {}]   ;;  %s6019_s1 = inlined_call_operand.vmem [shape: f32[8,4], index: 1, kind: input, shape index: {}]   ;;  %s6020_s2 = inlined_call_operand.vmem [shape: f32[8,8], index: 2, kind: input, shape index: {}]   ;;  %s6021_s3 = inlined_call_operand.vmem [shape: f32[8,4], index: 3, kind: input, shape index: {}]   ;;  %s6022_s4 = inlined_call_operand.vmem [shape: f32[8,8], index: 4, kind: input, shape index: {}]   ;;  %s6023_s5 = inlined_call_operand.vmem [shape: f32[8,12], index: 5, kind: input, shape index: {}]   ;;  %s6024_s6 = inlined_call_operand.hbm [shape: f32[2,8,16,16], index: 6, kind: output, shape index: {}]  }
   0x1   :  { %6211 = sst [smem:[#allocation88_spill]] %s6018_s0 }
   0x2   :  { %6212 = sst [smem:[#allocation89_spill]] %s6019_s1 }
   0x3   :  { %6213 = sst [smem:[#allocation90_spill]] %s6020_s2 }
   0x4   :  { %6214 = sst [smem:[#allocation91_spill]] %s6021_s3 }
   0x5   :  { %6215 = sst [smem:[#allocation92_spill]] %s6022_s4 }
   0x6   :  { %6216 = sst [smem:[#allocation93_spill]] %s6023_s5 }
   0x7   :  { %6217 = sst [smem:[#allocation94_spill]] %s6024_s6 }
   0x8   :  { %11 = vsyncpa [#allocation3], 0 }
   0x9   :  { %13 = vsyncpa [#allocation3 + $0x1], 0 }
   0xa   :  { %14 = vsyncpa [#allocation5], 0 }
   0xb   :  { %15 = vsyncpa [#allocation8], 0 }
   0xc   :  { %16 = vsyncpa [#allocation11], 0 }
   0xd   :  { %17 = vsyncpa [#allocation4], 0 }
   0xe   :  { %19 = vsyncpa [#allocation4 + $0x1], 0  ;;  %s3237_s21 = smov 0   ;;  %s3239_s22 = smov 0  }
   0xf   :  { %s3241_s23 = smov 0   ;;  %s3243_s24 = smov 0  }
  0x10 LB: > { %6218 = sst [smem:[#allocation19_spill]] %s3179_s21  ;;  %s3261_s28 = sadd.s32 4294967295, %s3191_s24   ;;  %s3191_s24 = sphi %s3243_s24, %s6508_s24   ;;  %s3187_s23 = sphi %s3241_s23, %s6511_s23   ;;  %s3183_s22 = sphi %s3239_s22, %s6510_s22   ;;  %s3179_s21 = sphi %s3237_s21, %s6509_s21  }
  0x11   : > { %6219 = sst [smem:[#allocation20_spill]] %s3183_s22  ;;  %p2551_p0 = scmp.ge.s32.totalorder %s3191_s24, 1 }
  0x12   : > { %6220 = sst [smem:[#allocation21_spill]] %s3187_s23  ;;  %p46_p1 = scmp.eq.s32.totalorder %s3261_s28, 0 }
  0x13   : > { %6221 = sst [smem:[#allocation22_spill]] %s3191_s24  ;;  %p187_p2 = scmp.lt.s32.totalorder %s3191_s24, 3 }
  0x14   : > { %s6222_s2 = sld [smem:[#allocation90_spill]]  ;;  %s3193_s16 = smov [#allocation7]  }
  0x15   : > { %6223 = sst [smem:[#allocation23_spill]] %s3261_s28  ;;  %p3266_p3 = pnand %p2551_p0, %p187_p2 }
  0x16   : > { %s6225_s4 = sld [smem:[#allocation92_spill]]  ;;  %s3194_s17 = smov [#allocation10]  }
  0x17   : > { %p2919_p5 = pneg %p3266_p3  ;;  %s6226_s1 = sld [smem:[#allocation89_spill]] }
  0x18   : > { %s6228_s3 = sld [smem:[#allocation91_spill]]  ;;  %s3195_s18 = smov [#allocation6]  }
  0x19   : > { %p3281_p6 = pnand %p2919_p5, %p46_p1  ;;  %s3196_s19 = smov [#allocation9]  }
  0x1a   : > { %s209_s27 = sshll.u32 %s6222_s2, 4  ;;  %s6229_s5 = sld [smem:[#allocation93_spill]]  ;;  %s210_s27 = int_to_ptr.vmem [resolvable:$true] %s209_s27 }
  0x1b   : > { %2925 = dma.vmem_to_smem (!%p3281_p6), %s210_s27, 128, %s3193_s16, [#allocation8]  }
  0x1c   : > { %s229_s8 = sshll.u32 %s6225_s4, 4  ;;  %s3197_s27 = smov [#allocation12]   ;;  %s230_s8 = int_to_ptr.vmem [resolvable:$true] %s229_s8 }
  0x1d   : > { %s199_s11 = sshll.u32 %s6226_s1, 4  ;;  %s2550_s30 = sadd.s32 4294967294, %s3191_s24   ;;  %s200_s11 = int_to_ptr.vmem [resolvable:$true] %s199_s11 }
  0x1e   : > { %s219_s15 = sshll.u32 %s6228_s3, 4  ;;  %s3303_s7 = sadd.s32 1, %s3191_s24   ;;  %s220_s15 = int_to_ptr.vmem [resolvable:$true] %s219_s15 }
  0x1f   : > { %2931 = dma.vmem_to_smem (!%p3281_p6), %s230_s8, 128, %s3194_s17, [#allocation11]  }
  0x20   : > { %2922 = dma.vmem_to_smem (!%p3281_p6), %s200_s11, 128, %s3195_s18, [#allocation5]  }
  0x21   : > { %2928 = dma.vmem_to_smem (!%p3281_p6), %s220_s15, 128, %s3196_s19, [#allocation8]  }
  0x22   : > { %s239_s26 = sshll.u32 %s6229_s5, 4  ;;  %6230 = sst [smem:[#allocation24_spill]] %s3303_s7  ;;  %s240_s26 = int_to_ptr.vmem [resolvable:$true] %s239_s26 }
  0x23   : > { %2934 = dma.vmem_to_smem (!%p3281_p6), %s240_s26, 128, %s3197_s27, [#allocation11]  }
  0x24   : > { %s32_s8 = sadd.s32 1, %s3187_s23  ;;  %s29_s9 = ssub.s32 %s3191_s24, %s3303_s7 }
  0x25   : > { %p39_p7 = scmp.ne.s32.totalorder %s3187_s23, %s3183_s22  ;;  %p30_p8 = scmp.eq.s32.totalorder %s29_s9, 0 }
  0x26   : > { %p40_p9 = scmp.eq.s32.totalorder %s3191_s24, 0  ;;  %p45_p10 = scmp.ne.s32.totalorder %s3183_s22, %s3179_s21 }
  0x27   : > { %p174_p11 = scmp.eq.s32.totalorder %s3261_s28, 1  ;;  %p180_p2 = scmp.eq.s32.totalorder %s2550_s30, 1 }
  0x28   : > { %s3315_s10 = scalar_select %p30_p8, %s3187_s23, %s32_s8  }
  0x29   : > { %p3317_p12 = por %p40_p9, %p39_p7  ;;  %p3323_p13 = por %p46_p1, %p45_p10 }
  0x2a   : > { %6231 = sst [smem:[#allocation25_spill]] %s3315_s10  ;;  %p3327_p0 = por %p174_p11, %p39_p7 }
  0x2b   : > { %p2948_p5 = scmp.lt.s32.totalorder %s3191_s24, 2  ;;  %s250_s14 = sand.u32 1, %s3187_s23  }
  0x2c   : > { %s6234_s13 = scalar_select %p3327_p0, 1, 0 }
  0x2d   : > { %p3333_p6 = por %p180_p2, %p45_p10  ;;  %s2558_s16 = sshll.u32 %s250_s14, 6 }
  0x2e   : > { %6235 = sst [smem:[#allocation26_spill]] %s6234_s13  ;;  %s2893_s17 = sshll.u32 %s3191_s24, 6 }
  0x2f   : > { %s6236_s15 = scalar_select %p3333_p6, 1, 0 }
  0x30   : > { %s6238_s0 = sld [smem:[#allocation88_spill]]  ;;  %s254_s26 = scalar_lea.vmem [#allocation2], %s2558_s16 }
  0x31   : > { %6237 = sst [smem:[#allocation27_spill]] %s6236_s15  ;;  %s262_s27 = sshll.u32 %s254_s26, 4  ;;  %s263_s27 = int_to_ptr.vmem [resolvable:$true] %s262_s27 }
  0x32   : > { %p3343_p7 = pnand %p2948_p5, %p3317_p12  ;;  %s251_s8 = scalar_lea.sflag [#allocation3], %s250_s14 }
  0x34   : > { %p3087_p9 = pneg %p3343_p7 }
  0x36   : > { %s259_s20 = scalar_lea.hbm %s6238_s0, %s2893_s17  ;;  %s3090_s18 = scalar_lea.hbm %s6238_s0, 128 }
  0x37   : > { %s260_s25 = sshll.u32 %s259_s20, 4  ;;  %s261_s25 = int_to_ptr.hbm [resolvable:$true] %s260_s25 }
  0x38   : > { %s3083_s9 = sshra.s32 %s261_s25, 4  ;;  %s3084_s9 = int_to_ptr.hbm [resolvable:$true] %s3083_s9 }
  0x39   : > { %s3085_s1 = scalar_lea.hbm %s3084_s9, 64  ;;  %p3091_p12 = scmp.lt.s32.totalorder %s3084_s9, %s6238_s0 }
  0x3a   : > { %p3086_p8 = scmp.ne.s32.totalorder %s3084_s9, %s3085_s1  ;;  %p3092_p2 = scmp.lt.s32.totalorder %s3090_s18, %s3085_s1 }
  0x3c   : > { %p3088_p10 = pnand %p3087_p9, %p3086_p8  ;;  %p3093_p5 = por %p3092_p2, %p3091_p12 }
  0x3e   : > { %p3089_p11 = pneg %p3088_p10 }
  0x40   : > { %p3094_p4 = pnand %p3093_p5, %p3089_p11 }
  0x42   : > { %3097 = shalt.err (!%p3094_p4)
}
  0x43   : > { %s3198_s14 = smov 128   ;;  %s3199_s20 = smov 8  }
  0x44   : > { %2938 = dma.hbm_to_vmem [thread:$0]  (!%p3343_p7), %s261_s25, 1024, %s263_s27, %s251_s8, %s3198_s14, %s3198_s14, %s3199_s20  }
  0x45   : > { %274 = sbr.rel (%p3266_p3) target bundleno = 621 (0x26d), region = 44 }
  0x4a   : > { %s3360_s26 = sand.u32 1, %s3183_s22  }
  0x4b   : > { %6240 = sst [smem:[#allocation28_spill]] %s3360_s26  ;;  %s2562_s17 = sshll.u32 %s3360_s26, 6 }
  0x4c   : > { %s277_s9 = scalar_lea.sflag [#allocation3], %s3360_s26  ;;  %s3364_s1 = scalar_lea.vmem [#allocation2], %s2562_s17 }
  0x4d   : > { %6241 = sst [smem:[#allocation29_spill]] %s3364_s1 }
  0x4e   : > { %3158 = dma.done.wait (%p3323_p13), %s277_s9, 1024  }
  0x4f   : > { %3160 = vsyncadd (%p3323_p13), %s277_s9, 4294966272 }
  0x50   : > { %3162 = dma.done.wait (%p46_p1), [#allocation5], 128  }
  0x51   : > { %3164 = vsyncadd (%p46_p1), [#allocation5], 4294967168 }
  0x52   : > { %3166 = dma.done.wait (%p46_p1), [#allocation8], 256  }
  0x53   : > { %3168 = vsyncadd (%p46_p1), [#allocation8], 4294967040 }
  0x54   : > { %3170 = dma.done.wait (%p46_p1), [#allocation11], 256  }
  0x55   : > { %3172 = vsyncadd (%p46_p1), [#allocation11], 4294967040 }
  0x56   : > { %311 = sfence }
  0x57   : > { %s955_s29 = sld [smem:[#allocation9]]  ;;  %v3387_v0 = vld [vmem:[%s3364_s1 + $0x8] sm:$0xff]  ;;  %v3392_v1 = vld [vmem:[%s3364_s1 + $0x18] sm:$0xff]  ;;  %v3408_v7 = vld [vmem:[%s3364_s1] sm:$0xff]  ;;  %vm1563_vm0 = vcmask 130048  }
  0x58   : > { %s2669_s12 = sld [smem:[#allocation9 + $0x1]]  ;;  %v3397_v2 = vld [vmem:[%s3364_s1 + $0x28] sm:$0xff]  ;;  %v3402_v4 = vld [vmem:[%s3364_s1 + $0x38] sm:$0xff]  ;;  %v3411_v8 = vld [vmem:[%s3364_s1 + $0x10] sm:$0xff] }
  0x59   : > { %s3382_s25 = sld [smem:[#allocation9 + $0x2]]  ;;  %v3424_v15 = vld [vmem:[%s3364_s1 + $0x20] sm:$0xff]  ;;  %v3435_v22 = vld [vmem:[%s3364_s1 + $0x30] sm:$0xff] }
  0x5a   : > { %s3384_s27 = sld [smem:[#allocation9 + $0x3]] }
  0x5b   : > { %s3389_s30 = sld [smem:[#allocation9 + $0x80]] }
  0x5c   : > { %s3394_s8 = sld [smem:[#allocation9 + $0x81]] }
  0x5d   : > { %v956_v3 = vstv %s955_s29  ;;  %s3399_s16 = sld [smem:[#allocation9 + $0x82]] }
  0x5e   : > { %v958_v5 = vmul.f32 %v956_v3, %v3387_v0  ;;  %v962_v6 = vstv %s2669_s12  ;;  %s3405_s18 = sld [smem:[#allocation9 + $0x83]]  ;;  %v957_v11 = vmul.f32 %v956_v3, %v3408_v7 }
  0x5f   : > { %v964_v9 = vmul.f32 %v3392_v1, %v962_v6  ;;  %v968_v10 = vstv %s3382_s25  ;;  %s3415_s19 = sld [smem:[#allocation9 + $0x100]]  ;;  %v963_v12 = vmul.f32 %v3411_v8, %v962_v6 }
  0x60   : > { %v970_v13 = vmul.f32 %v3397_v2, %v968_v10  ;;  %v974_v14 = vstv %s3384_s27  ;;  %s3421_s11 = sld [smem:[#allocation9 + $0x101]]  ;;  %v969_v23 = vmul.f32 %v3424_v15, %v968_v10 }
  0x61   : > { %v966_v16 = vadd.f32 %v964_v9, %v958_v5  ;;  %v976_v17 = vmul.f32 %v3402_v4, %v974_v14  ;;  %v982_v18 = vstv %s3389_s30  ;;  %s3428_s14 = sld [smem:[#allocation9 + $0x102]]  ;;  %v965_v19 = vadd.f32 %v963_v12, %v957_v11 }
  0x62   : > { %v984_v20 = vmul.f32 %v982_v18, %v3387_v0  ;;  %v988_v21 = vstv %s3394_s8  ;;  %s3432_s20 = sld [smem:[#allocation9 + $0x103]]  ;;  %v983_v24 = vmul.f32 %v982_v18, %v3408_v7  ;;  %v975_v28 = vmul.f32 %v3435_v22, %v974_v14 }
  0x63   : > { %v972_v25 = vadd.f32 %v970_v13, %v966_v16  ;;  %v990_v26 = vmul.f32 %v3392_v1, %v988_v21  ;;  %v994_v27 = vstv %s3399_s16  ;;  %s3441_s17 = sld [smem:[#allocation9 + $0x180]]  ;;  %v971_v31 = vadd.f32 %v969_v23, %v965_v19 }
  0x64   : > { %v996_v29 = vmul.f32 %v3397_v2, %v994_v27  ;;  %v1000_v30 = vstv %s3405_s18  ;;  %s3446_s9 = sld [smem:[#allocation9 + $0x181]]  ;;  %v989_v32 = vmul.f32 %v3411_v8, %v988_v21  ;;  %v995_v48 = vmul.f32 %v3424_v15, %v994_v27 }
  0x65   : > { %v978_v33 = vadd.f32 %v976_v17, %v972_v25  ;;  %v992_v34 = vadd.f32 %v990_v26, %v984_v20  ;;  %v1002_v35 = vmul.f32 %v3402_v4, %v1000_v30  ;;  %v1008_v36 = vstv %s3415_s19  ;;  %s3451_s29 = sld [smem:[#allocation9 + $0x182]] }
  0x66   : > { %v1010_v37 = vmul.f32 %v1008_v36, %v3387_v0  ;;  %v1014_v38 = vstv %s3421_s11  ;;  %s3455_s12 = sld [smem:[#allocation9 + $0x183]]  ;;  %v977_v39 = vadd.f32 %v975_v28, %v971_v31  ;;  %v991_v40 = vadd.f32 %v989_v32, %v983_v24 }
  0x67   : > { %v3457_v41 = vmax.f32 %v978_v33, 0.0  ;;  %v998_v42 = vadd.f32 %v996_v29, %v992_v34  ;;  %v1016_v43 = vmul.f32 %v3392_v1, %v1014_v38  ;;  %v1020_v44 = vstv %s3428_s14  ;;  %s3461_s25 = sld [smem:[#allocation9 + $0x200]] }
  0x68   : > { %v1022_v45 = vmul.f32 %v3397_v2, %v1020_v44  ;;  %v1026_v46 = vstv %s3432_s20  ;;  %s3465_s27 = sld [smem:[#allocation9 + $0x201]]  ;;  %v3467_v47 = vmax.f32 %v977_v39, 0.0  ;;  %v997_v55 = vadd.f32 %v995_v48, %v991_v40 }
  0x69   : > { %v1004_v49 = vadd.f32 %v1002_v35, %v998_v42  ;;  %v1018_v50 = vadd.f32 %v1016_v43, %v1010_v37  ;;  %v1028_v51 = vmul.f32 %v3402_v4, %v1026_v46  ;;  %v1034_v52 = vstv %s3441_s17  ;;  %s3472_s30 = sld [smem:[#allocation9 + $0x202]] }
  0x6a   : > { %v1036_v53 = vmul.f32 %v1034_v52, %v3387_v0  ;;  %v1040_v54 = vstv %s3446_s9  ;;  %s3476_s8 = sld [smem:[#allocation9 + $0x203]]  ;;  %v1001_v56 = vmul.f32 %v3435_v22, %v1000_v30  ;;  %v1009_v3 = vmul.f32 %v1008_v36, %v3408_v7 }
  0x6b   : > { %v3479_v57 = vmax.f32 %v1004_v49, 0.0  ;;  %v1024_v58 = vadd.f32 %v1022_v45, %v1018_v50  ;;  %v1042_v59 = vmul.f32 %v3392_v1, %v1040_v54  ;;  %v1046_v60 = vstv %s3451_s29  ;;  %s3485_s16 = sld [smem:[#allocation9 + $0x280]] }
  0x6c   : > { %v1048_v61 = vmul.f32 %v3397_v2, %v1046_v60  ;;  %v1052_v62 = vstv %s3455_s12  ;;  %s3491_s18 = sld [smem:[#allocation9 + $0x281]]  ;;  %v1003_v63 = vadd.f32 %v1001_v56, %v997_v55  ;;  %v1015_v14 = vmul.f32 %v3411_v8, %v1014_v38 }
  0x6d   : > { %v1030_v5 = vadd.f32 %v1028_v51, %v1024_v58  ;;  %v1044_v6 = vadd.f32 %v1042_v59, %v1036_v53  ;;  %v1054_v9 = vmul.f32 %v3402_v4, %v1052_v62  ;;  %v1060_v10 = vstv %s3461_s25  ;;  %s3498_s19 = sld [smem:[#allocation9 + $0x282]] }
  0x6e   : > { %v1062_v11 = vmul.f32 %v1060_v10, %v3387_v0  ;;  %v1066_v12 = vstv %s3465_s27  ;;  %s3504_s11 = sld [smem:[#allocation9 + $0x283]]  ;;  %v3506_v13 = vmax.f32 %v1003_v63, 0.0  ;;  %v1017_v23 = vadd.f32 %v1015_v14, %v1009_v3 }
  0x6f   : > { %v3509_v16 = vmax.f32 %v1030_v5, 0.0  ;;  %v1050_v17 = vadd.f32 %v1048_v61, %v1044_v6  ;;  %v1068_v18 = vmul.f32 %v3392_v1, %v1066_v12  ;;  %v1072_v19 = vstv %s3472_s30  ;;  %s3515_s14 = sld [smem:[#allocation9 + $0x300]] }
  0x70   : > { %v1074_v20 = vmul.f32 %v3397_v2, %v1072_v19  ;;  %v1078_v21 = vstv %s3476_s8  ;;  %s3521_s20 = sld [smem:[#allocation9 + $0x301]]  ;;  %v1021_v24 = vmul.f32 %v3424_v15, %v1020_v44  ;;  %v1027_v32 = vmul.f32 %v3435_v22, %v1026_v46 }
  0x71   : > { %v1056_v25 = vadd.f32 %v1054_v9, %v1050_v17  ;;  %v1070_v26 = vadd.f32 %v1068_v18, %v1062_v11  ;;  %v1080_v27 = vmul.f32 %v3402_v4, %v1078_v21  ;;  %v1086_v28 = vstv %s3485_s16  ;;  %s3528_s17 = sld [smem:[#allocation9 + $0x302]] }
  0x72   : > { %v1088_v29 = vmul.f32 %v1086_v28, %v3387_v0  ;;  %v1092_v30 = vstv %s3491_s18  ;;  %s3534_s0 = sld [smem:[#allocation9 + $0x303]]  ;;  %v1023_v31 = vadd.f32 %v1021_v24, %v1017_v23  ;;  %v1035_v40 = vmul.f32 %v1034_v52, %v3408_v7 }
  0x73   : > { %v3537_v33 = vmax.f32 %v1056_v25, 0.0  ;;  %v1076_v34 = vadd.f32 %v1074_v20, %v1070_v26  ;;  %v1094_v35 = vmul.f32 %v3392_v1, %v1092_v30  ;;  %v1098_v36 = vstv %s3498_s19  ;;  %s3543_s2 = sld [smem:[#allocation9 + $0x380]] }
  0x74   : > { %v1100_v37 = vmul.f32 %v3397_v2, %v1098_v36  ;;  %v1104_v38 = vstv %s3504_s11  ;;  %s3549_s3 = sld [smem:[#allocation9 + $0x381]]  ;;  %v1029_v39 = vadd.f32 %v1027_v32, %v1023_v31  ;;  %v1041_v50 = vmul.f32 %v3411_v8, %v1040_v54 }
  0x75   : > { %v1082_v42 = vadd.f32 %v1080_v27, %v1076_v34  ;;  %v1096_v43 = vadd.f32 %v1094_v35, %v1088_v29  ;;  %v1106_v44 = vmul.f32 %v3402_v4, %v1104_v38  ;;  %v1112_v45 = vstv %s3515_s14  ;;  %s3556_s4 = sld [smem:[#allocation9 + $0x382]] }
  0x76   : > { %v1114_v46 = vmul.f32 %v1112_v45, %v3387_v0  ;;  %v1118_v48 = vstv %s3521_s20  ;;  %s3562_s5 = sld [smem:[#allocation9 + $0x383]]  ;;  %v3564_v49 = vmax.f32 %v1029_v39, 0.0  ;;  %v1043_v54 = vadd.f32 %v1041_v50, %v1035_v40 }
  0x77   : > { %v3569_v51 = vmax.f32 %v1082_v42, 0.0  ;;  %v1102_v52 = vadd.f32 %v1100_v37, %v1096_v43  ;;  %v1120_v53 = vmul.f32 %v3392_v1, %v1118_v48  ;;  %v1124_v55 = vstv %s3528_s17  ;;  %s3575_s10 = sld [smem:[#allocation10]] }
  0x78   : > { %v1126_v56 = vmul.f32 %v3397_v2, %v1124_v55  ;;  %v1130_v58 = vstv %s3534_s0  ;;  %s3581_s9 = sld [smem:[#allocation10 + $0x1]]  ;;  %v1047_v59 = vmul.f32 %v3424_v15, %v1046_v60  ;;  %v1053_v11 = vmul.f32 %v3435_v22, %v1052_v62 }
  0x79   : > { %v1108_v61 = vadd.f32 %v1106_v44, %v1102_v52  ;;  %v1122_v63 = vadd.f32 %v1120_v53, %v1114_v46  ;;  %v1132_v3 = vmul.f32 %v3402_v4, %v1130_v58  ;;  %v1138_v5 = vstv %s3543_s2  ;;  %s3590_s23 = sld [smem:[#allocation10 + $0x2]] }
  0x7a   : > { %v1140_v6 = vmul.f32 %v1138_v5, %v3387_v0  ;;  %v1144_v9 = vstv %s3549_s3  ;;  %s3596_s22 = sld [smem:[#allocation10 + $0x3]]  ;;  %v1049_v60 = vadd.f32 %v1047_v59, %v1043_v54  ;;  %v1061_v24 = vmul.f32 %v1060_v10, %v3408_v7 }
  0x7b   : > { %v3601_v14 = vmax.f32 %v1108_v61, 0.0  ;;  %v1128_v17 = vadd.f32 %v1126_v56, %v1122_v63  ;;  %v1146_v18 = vmul.f32 %v3392_v1, %v1144_v9  ;;  %v1150_v20 = vstv %s3556_s4  ;;  %s3607_s29 = sld [smem:[#allocation10 + $0x4]] }
  0x7c   : > { %v1152_v0 = vmul.f32 %v3397_v2, %v1150_v20  ;;  %v1156_v23 = vstv %s3562_s5  ;;  %s3613_s12 = sld [smem:[#allocation10 + $0x5]]  ;;  %v1055_v62 = vadd.f32 %v1053_v11, %v1049_v60  ;;  %v1067_v31 = vmul.f32 %v3411_v8, %v1066_v12 }
  0x7d   : > { %v1134_v25 = vadd.f32 %v1132_v3, %v1128_v17  ;;  %v1148_v1 = vadd.f32 %v1146_v18, %v1140_v6  ;;  %v1158_v26 = vmul.f32 %v3402_v4, %v1156_v23  ;;  %v1164_v27 = vstv %s3575_s10  ;;  %s3622_s7 = sld [smem:[#allocation10 + $0x6]] }
  0x7e   : > { %v1166_v2 = vmul.f32 %v1164_v27, %v3457_v41  ;;  %v1170_v29 = vstv %s3581_s9  ;;  %s3628_s24 = sld [smem:[#allocation10 + $0x7]]  ;;  %v3630_v10 = vmax.f32 %v1055_v62, 0.0  ;;  %v1069_v12 = vadd.f32 %v1067_v31, %v1061_v24 }
  0x7f   : > { %v3635_v32 = vmax.f32 %v1134_v25, 0.0  ;;  %v1154_v4 = vadd.f32 %v1152_v0, %v1148_v1  ;;  %v1172_v34 = vmul.f32 %v1170_v29, %v3479_v57  ;;  %v1176_v35 = vstv %s3590_s23  ;;  %s3641_s25 = sld [smem:[#allocation10 + $0x100]] }
  0x80   : > { %v1178_v37 = vmul.f32 %v1176_v35, %v3509_v16  ;;  %v1182_v39 = vstv %s3596_s22  ;;  %s3647_s27 = sld [smem:[#allocation10 + $0x101]]  ;;  %v1073_v40 = vmul.f32 %v3424_v15, %v1072_v19  ;;  %v1079_v53 = vmul.f32 %v3435_v22, %v1078_v21 }
  0x81   : > { %v1160_v42 = vadd.f32 %v1158_v26, %v1154_v4  ;;  %v1174_v43 = vadd.f32 %v1172_v34, %v1166_v2  ;;  %v1184_v44 = vmul.f32 %v1182_v39, %v3537_v33  ;;  %v1188_v46 = vstv %s3607_s29  ;;  %s3656_s15 = sld [smem:[#allocation10 + $0x102]] }
  0x82   : > { %v1190_v50 = vmul.f32 %v1188_v46, %v3569_v51  ;;  %v1194_v52 = vstv %s3613_s12  ;;  %s3662_s30 = sld [smem:[#allocation10 + $0x103]]  ;;  %v1075_v19 = vadd.f32 %v1073_v40, %v1069_v12  ;;  %v1087_v6 = vmul.f32 %v1086_v28, %v3408_v7 }
  0x83   : > { %v3667_v56 = vmax.f32 %v1160_v42, 0.0  ;;  %v1180_v54 = vadd.f32 %v1178_v37, %v1174_v43  ;;  %v1196_v59 = vmul.f32 %v1194_v52, %v3601_v14  ;;  %v1200_v61 = vstv %s3622_s7  ;;  %s3673_s21 = sld [smem:[#allocation10 + $0x104]] }
  0x84   : > { %v1202_v63 = vmul.f32 %v1200_v61, %v3635_v32  ;;  %v1206_v3 = vstv %s3628_s24  ;;  %s3679_s8 = sld [smem:[#allocation10 + $0x105]]  ;;  %v1081_v21 = vadd.f32 %v1079_v53, %v1075_v19  ;;  %v1093_v18 = vmul.f32 %v3411_v8, %v1092_v30 }
  0x85   : > { %v1186_v60 = vadd.f32 %v1184_v44, %v1180_v54  ;;  %v1208_v11 = vmul.f32 %v1206_v3, %v3667_v56  ;;  %v1264_v17 = vstv %s3641_s25  ;;  %s3688_s13 = sld [smem:[#allocation10 + $0x106]]  ;;  %v1099_v24 = vmul.f32 %v3424_v15, %v1098_v36 }
  0x86   : > { %v1266_v0 = vmul.f32 %v1264_v17, %v3457_v41  ;;  %v1270_v62 = vstv %s3647_s27  ;;  %s3697_s16 = sld [smem:[#allocation10 + $0x107]]  ;;  %v3699_v28 = vmax.f32 %v1081_v21, 0.0  ;;  %v1095_v26 = vadd.f32 %v1093_v18, %v1087_v6 }
  0x87   : > { %v1192_v25 = vadd.f32 %v1190_v50, %v1186_v60  ;;  %v1272_v1 = vmul.f32 %v1270_v62, %v3479_v57  ;;  %v1276_v30 = vstv %s3656_s15  ;;  %s3708_s18 = sld [smem:[#allocation10 + $0x80]]  ;;  %v1105_v4 = vmul.f32 %v3435_v22, %v1104_v38 }
  0x88   : > { %v1278_v2 = vmul.f32 %v1276_v30, %v3509_v16  ;;  %v1282_v31 = vstv %s3662_s30  ;;  %v1113_v36 = vmul.f32 %v1112_v45, %v3408_v7  ;;  %s3720_s19 = sld [smem:[#allocation10 + $0x81]]  ;;  %v1101_v43 = vadd.f32 %v1099_v24, %v1095_v26 }
  0x89   : > { %v1198_v34 = vadd.f32 %v1196_v59, %v1192_v25  ;;  %v1274_v37 = vadd.f32 %v1272_v1, %v1266_v0  ;;  %v1284_v12 = vmul.f32 %v1282_v31, %v3537_v33  ;;  %v1288_v40 = vstv %s3673_s21  ;;  %s3726_s6 = sld [smem:[#allocation10 + $0x82]] }
  0x8a   : > { %v1290_v42 = vmul.f32 %v1288_v40, %v3569_v51  ;;  %v1294_v38 = vstv %s3679_s8  ;;  %v1119_v45 = vmul.f32 %v3411_v8, %v1118_v48  ;;  %s3735_s11 = sld [smem:[#allocation10 + $0x83]]  ;;  %v1107_v21 = vadd.f32 %v1105_v4, %v1101_v43 }
  0x8b   : > { %v1204_v44 = vadd.f32 %v1202_v63, %v1198_v34  ;;  %v1280_v50 = vadd.f32 %v1278_v2, %v1274_v37  ;;  %v1296_v19 = vmul.f32 %v1294_v38, %v3601_v14  ;;  %v1300_v53 = vstv %s3688_s13  ;;  %s3741_s14 = sld [smem:[#allocation10 + $0x84]] }
  0x8c   : > { %v1302_v54 = vmul.f32 %v1300_v53, %v3635_v32  ;;  %v1306_v59 = vstv %s3697_s16  ;;  %v1121_v48 = vadd.f32 %v1119_v45, %v1113_v36  ;;  %s3747_s20 = sld [smem:[#allocation10 + $0x85]]  ;;  %v1125_v18 = vmul.f32 %v3424_v15, %v1124_v55 }
  0x8d   : > { %v1210_v63 = vadd.f32 %v1208_v11, %v1204_v44  ;;  %v1286_v6 = vadd.f32 %v1284_v12, %v1280_v50  ;;  %v1308_v60 = vmul.f32 %v1306_v59, %v3667_v56  ;;  %s3755_s28 = sld [smem:[#allocation10 + $0x86]]  ;;  %v3757_v0 = vmax.f32 %v1107_v21, 0.0 }
  0x8e   : > { %v1131_v24 = vmul.f32 %v3435_v22, %v1130_v58  ;;  %v1139_v11 = vmul.f32 %v1138_v5, %v3408_v7  ;;  %v1145_v25 = vmul.f32 %v3411_v8, %v1144_v9  ;;  %s3768_s26 = sld [smem:[#allocation10 + $0x87]]  ;;  %v1127_v55 = vadd.f32 %v1125_v18, %v1121_v48 }
  0x8f   : > { %v1212_v1 = vmax.f32 %v1210_v63, 0.0  ;;  %v1292_v26 = vadd.f32 %v1290_v42, %v1286_v6  ;;  %v1151_v2 = vmul.f32 %v3424_v15, %v1150_v20  ;;  %s3773_s0 = sld [smem:[#allocation10 + $0x180]]  ;;  %v1157_v5 = vmul.f32 %v3435_v22, %v1156_v23 }
  0x90   : > { %v1147_v58 = vadd.f32 %v1145_v25, %v1139_v11  ;;  %v1165_v9 = vmul.f32 %v1164_v27, %v3467_v47  ;;  %v1171_v4 = vmul.f32 %v1170_v29, %v3506_v13  ;;  %s3784_s2 = sld [smem:[#allocation10 + $0x181]]  ;;  %v1133_v20 = vadd.f32 %v1131_v24, %v1127_v55 }
  0x91   : > { %1584 = vmatpush.msra.mxu0 %v1212_v1  ;;  %v1298_v36 = vadd.f32 %v1296_v19, %v1292_v26  ;;  %v1177_v34 = vmul.f32 %v1176_v35, %v3564_v49  ;;  %v1183_v23 = vmul.f32 %v1182_v39, %v3630_v10  ;;  %s3792_s3 = sld [smem:[#allocation10 + $0x182]]  ;;  %v1189_v29 = vmul.f32 %v1188_v46, %v3699_v28 }
  0x92   : > { %v1153_v27 = vadd.f32 %v1151_v2, %v1147_v58  ;;  %v1173_v37 = vadd.f32 %v1171_v4, %v1165_v9  ;;  %v1195_v12 = vmul.f32 %v1194_v52, %v3757_v0  ;;  %s3800_s4 = sld [smem:[#allocation10 + $0x183]]  ;;  %v3802_v42 = vmax.f32 %v1133_v20, 0.0 }
  0x93   : > { %v1304_v35 = vadd.f32 %v1302_v54, %v1298_v36  ;;  %v1214_v43 = vstv %s3708_s18  ;;  %v1220_v39 = vstv %s3720_s19  ;;  %s3806_s5 = sld [smem:[#allocation10 + $0x184]]  ;;  %v1226_v54 = vstv %s3726_s6 }
  0x94   : > { %v1159_v45 = vadd.f32 %v1157_v5, %v1153_v27  ;;  %v1179_v44 = vadd.f32 %v1177_v34, %v1173_v37  ;;  %v1216_v46 = vmul.f32 %v1214_v43, %v3457_v41  ;;  %v1222_v52 = vmul.f32 %v1220_v39, %v3479_v57  ;;  %s3814_s22 = sld [smem:[#allocation10 + $0x185]] }
  0x95   : > { %v1310_v50 = vadd.f32 %v1308_v60, %v1304_v35  ;;  %v1201_v19 = vmul.f32 %v1200_v61, %v3802_v42  ;;  %v1232_v21 = vstv %s3735_s11  ;;  %s3821_s23 = sld [smem:[#allocation10 + $0x186]]  ;;  %v1228_v18 = vmul.f32 %v1226_v54, %v3509_v16 }
  0x96   : > { %v3823_v48 = vmax.f32 %v1159_v45, 0.0  ;;  %v1185_v63 = vadd.f32 %v1183_v23, %v1179_v44  ;;  %v1224_v6 = vadd.f32 %v1222_v52, %v1216_v46  ;;  %s3828_s10 = sld [smem:[#allocation10 + $0x187]]  ;;  %v1234_v61 = vmul.f32 %v1232_v21, %v3537_v33 }
  0x97   : > { %v1312_v60 = vmax.f32 %v1310_v50, 0.0  ;;  %v1238_v24 = vstv %s3741_s14  ;;  %v1244_v11 = vstv %s3747_s20  ;;  %s3835_s7 = sld [smem:[#allocation6]]  ;;  %v1250_v58 = vstv %s3755_s28 }
  0x98   : > { %v1191_v25 = vadd.f32 %v1189_v29, %v1185_v63  ;;  %v1207_v1 = vmul.f32 %v1206_v3, %v3823_v48  ;;  %v1230_v26 = vadd.f32 %v1228_v18, %v1224_v6  ;;  %v1240_v55 = vmul.f32 %v1238_v24, %v3569_v51  ;;  %s3843_s17 = sld [smem:[#allocation6 + $0x1]] }
  0x99   : > { %1642 = vmatpush.msra.mxu2 %v1312_v60  ;;  %v1246_v2 = vmul.f32 %v1244_v11, %v3601_v14  ;;  %v1256_v5 = vstv %s3768_s26  ;;  %v1265_v3 = vmul.f32 %v1264_v17, %v3467_v47  ;;  %s3853_s24 = sld [smem:[#allocation6 + $0x2]]  ;;  %v1252_v36 = vmul.f32 %v1250_v58, %v3635_v32 }
  0x9a   : > { %v1197_v9 = vadd.f32 %v1195_v12, %v1191_v25  ;;  %v1236_v4 = vadd.f32 %v1234_v61, %v1230_v26  ;;  %v1258_v20 = vmul.f32 %v1256_v5, %v3667_v56  ;;  %s3861_s9 = sld [smem:[#allocation6 + $0x3]]  ;;  %v1271_v34 = vmul.f32 %v1270_v62, %v3506_v13 }
  0x9b   : > { %v1277_v17 = vmul.f32 %v1276_v30, %v3564_v49  ;;  %v1283_v23 = vmul.f32 %v1282_v31, %v3630_v10  ;;  %v1289_v27 = vmul.f32 %v1288_v40, %v3699_v28  ;;  %s3875_s29 = sld [smem:[#allocation6 + $0x80]]  ;;  %v1295_v62 = vmul.f32 %v1294_v38, %v3757_v0 }
  0x9c   : > { %6242 = sst [smem:[#allocation30_spill]] %s3828_s10  ;;  %v1203_v37 = vadd.f32 %v1201_v19, %v1197_v9  ;;  %v1242_v29 = vadd.f32 %v1240_v55, %v1236_v4  ;;  %v1301_v30 = vmul.f32 %v1300_v53, %v3802_v42  ;;  %v1273_v31 = vadd.f32 %v1271_v34, %v1265_v3 }
  0x9d   : > { %6243 = sst [smem:[#allocation31_spill]] %s3835_s7  ;;  %v1307_v12 = vmul.f32 %v1306_v59, %v3823_v48  ;;  %v1314_v40 = vstv %s3773_s0  ;;  %v1320_v35 = vstv %s3784_s2  ;;  %v1326_v59 = vstv %s3792_s3 }
  0x9e   : > { %s3883_s15 = sld [smem:[#allocation6 + $0x81]]  ;;  %v1209_v45 = vadd.f32 %v1207_v1, %v1203_v37  ;;  %v1248_v44 = vadd.f32 %v1246_v2, %v1242_v29  ;;  %v1316_v38 = vmul.f32 %v1314_v40, %v3457_v41  ;;  %v1322_v53 = vmul.f32 %v1320_v35, %v3479_v57 }
  0x9f   : > { %6244 = sst [smem:[#allocation32_spill]] %s3853_s24  ;;  %v1279_v46 = vadd.f32 %v1277_v17, %v1273_v31  ;;  %v1332_v52 = vstv %s3800_s4  ;;  %v1338_v50 = vstv %s3806_s5  ;;  %v1328_v18 = vmul.f32 %v1326_v59, %v3509_v16 }
  0xa0   : > { %6245 = sst [smem:[#allocation33_spill]] %s3861_s9  ;;  %v1211_v19 = vmax.f32 %v1209_v45, 0.0  ;;  %v1254_v63 = vadd.f32 %v1252_v36, %v1248_v44  ;;  %v1324_v6 = vadd.f32 %v1322_v53, %v1316_v38  ;;  %v1334_v61 = vmul.f32 %v1332_v52, %v3537_v33 }
  0xa1   : > { %s3890_s21 = sld [smem:[#allocation6 + $0x82]]  ;;  %v1285_v60 = vadd.f32 %v1283_v23, %v1279_v46  ;;  %v1340_v25 = vmul.f32 %v1338_v50, %v3569_v51  ;;  %v1344_v1 = vstv %s3814_s22  ;;  %v1350_v3 = vstv %s3821_s23 }
  0xa2   : > { %s3898_s13 = sld [smem:[#allocation6 + $0x83]]  ;;  %1585 = vmatpush.msra.mxu0 %v1211_v19  ;;  %v1260_v26 = vadd.f32 %v1258_v20, %v1254_v63  ;;  %v1330_v55 = vadd.f32 %v1328_v18, %v1324_v6  ;;  %v1346_v2 = vmul.f32 %v1344_v1, %v3601_v14  ;;  %v1352_v4 = vmul.f32 %v1350_v3, %v3635_v32 }
  0xa3   : > { %s3903_s12 = sld [smem:[#allocation6 + $0x100]]  ;;  %v1291_v9 = vadd.f32 %v1289_v27, %v1285_v60  ;;  %v1356_v36 = vstv %s3828_s10  ;;  %v348_v34 = vstv %s3835_s7  ;;  %v354_v29 = vstv %s3843_s17 }
  0xa4   : > { %6246 = sst [smem:[#allocation34_spill]] %s3883_s15  ;;  %v1262_v20 = vmax.f32 %v1260_v26, 0.0  ;;  %v1336_v17 = vadd.f32 %v1334_v61, %v1330_v55  ;;  %v1358_v23 = vmul.f32 %v1356_v36, %v3667_v56  ;;  %v349_v27 = vmul.f32 %v348_v34, %v3408_v7 }
  0xa5   : > { %s3908_s25 = sld [smem:[#allocation6 + $0x101]]  ;;  %v1297_v37 = vadd.f32 %v1295_v62, %v1291_v9  ;;  %v360_v31 = vstv %s3853_s24  ;;  %v366_v45 = vstv %s3861_s9  ;;  %v355_v38 = vmul.f32 %v3411_v8, %v354_v29 }
  0xa6   : > { %s3917_s27 = sld [smem:[#allocation6 + $0x102]]  ;;  %1613 = vmatpush.msra.mxu1 %v1262_v20  ;;  %v1342_v44 = vadd.f32 %v1340_v25, %v1336_v17  ;;  %v361_v53 = vmul.f32 %v3424_v15, %v360_v31  ;;  %v367_v62 = vmul.f32 %v3435_v22, %v366_v45  ;;  %v374_v19 = vstv %s3875_s29 }
  0xa7   : > { %6247 = sst [smem:[#allocation35_spill]] %s3890_s21  ;;  %v1303_v46 = vadd.f32 %v1301_v30, %v1297_v37  ;;  %v380_v63 = vstv %s3883_s15  ;;  %v386_v6 = vstv %s3890_s21  ;;  %v357_v60 = vadd.f32 %v355_v38, %v349_v27 }
  0xa8   : > { %6248 = sst [smem:[#allocation36_spill]] %s3898_s13  ;;  %v1348_v18 = vadd.f32 %v1346_v2, %v1342_v44  ;;  %v375_v61 = vmul.f32 %v374_v19, %v3408_v7  ;;  %v381_v25 = vmul.f32 %v3411_v8, %v380_v63  ;;  %v387_v26 = vmul.f32 %v3424_v15, %v386_v6 }
  0xa9   : > { %6249 = sst [smem:[#allocation37_spill]] %s3903_s12  ;;  %v1309_v30 = vadd.f32 %v1307_v12, %v1303_v46  ;;  %v392_v55 = vstv %s3898_s13  ;;  %v6074_v9 = vstv %s3903_s12  ;;  %v363_v20 = vadd.f32 %v361_v53, %v357_v60 }
  0xaa   : > { %s3923_s30 = sld [smem:[#allocation6 + $0x103]]  ;;  %v1354_v2 = vadd.f32 %v1352_v4, %v1348_v18  ;;  %v383_v17 = vadd.f32 %v381_v25, %v375_v61  ;;  %v393_v27 = vmul.f32 %v3435_v22, %v392_v55  ;;  %v401_v37 = vmul.f32 %v6074_v9, %v3408_v7 }
  0xab   : > { %6250 = sst [smem:[#allocation38_spill]] %s3908_s25  ;;  %v1311_v12 = vmax.f32 %v1309_v30, 0.0  ;;  %v6073_v44 = vstv %s3908_s25  ;;  %v369_v53 = vadd.f32 %v367_v62, %v363_v20 }
  0xac   : > { %6251 = sst [smem:[#allocation39_spill]] %s3917_s27  ;;  %v6054_v38 = vstv %s3917_s27  ;;  %v1360_v4 = vadd.f32 %v1358_v23, %v1354_v2  ;;  %v389_v46 = vadd.f32 %v387_v26, %v383_v17  ;;  %v407_v18 = vmul.f32 %v3411_v8, %v6073_v44 }
  0xad   : > { %s3930_s8 = sld [smem:[#allocation6 + $0x180]]  ;;  %1643 = vmatpush.msra.mxu2 %v1311_v12  ;;  %v413_v60 = vmul.f32 %v3424_v15, %v6054_v38  ;;  %v4001_v62 = vmax.f32 %v369_v53, 0.0 }
  0xae   : > { %s3938_s16 = sld [smem:[#allocation6 + $0x181]]  ;;  %v1362_v23 = vmax.f32 %v1360_v4, 0.0  ;;  %v409_v26 = vadd.f32 %v407_v18, %v401_v37  ;;  %v395_v37 = vadd.f32 %v393_v27, %v389_v46 }
  0xaf   : > { %s3943_s1 = sld [smem:[#allocation6 + $0x182]] }
  0xb0   : > { %s3954_s7 = sld [smem:[#allocation6 + $0x183]]  ;;  %v6053_v61 = vstv %s3923_s30  ;;  %1671 = vmatpush.msra.mxu3 %v1362_v23  ;;  %v415_v4 = vadd.f32 %v413_v60, %v409_v26 }
  0xb1   : > { %s3959_s10 = sld [smem:[#allocation6 + $0x200]]  ;;  %v419_v2 = vmul.f32 %v3435_v22, %v6053_v61 }
  0xb2   : > { %s3967_s9 = sld [smem:[#allocation6 + $0x201]] }
  0xb3   : > { %6252 = sst [smem:[#allocation40_spill]] %s3930_s8  ;;  %v6051_v25 = vstv %s3930_s8  ;;  %v421_v27 = vadd.f32 %v419_v2, %v415_v4  ;;  %v4046_v4 = vmax.f32 %v395_v37, 0.0 }
  0xb4   : > { %6253 = sst [smem:[#allocation41_spill]] %s3938_s16  ;;  %v6052_v30 = vstv %s3938_s16  ;;  %v427_v20 = vmul.f32 %v6051_v25, %v3408_v7 }
  0xb5   : > { %6254 = sst [smem:[#allocation42_spill]] %s3943_s1  ;;  %v433_v17 = vmul.f32 %v3411_v8, %v6052_v30  ;;  %v6063_v12 = vstv %s3943_s1  ;;  %v4061_v37 = vmax.f32 %v421_v27, 0.0 }
  0xb6   : > { %6255 = sst [smem:[#allocation43_spill]] %s3954_s7  ;;  %v439_v53 = vmul.f32 %v3424_v15, %v6063_v12  ;;  %v6062_v18 = vstv %s3954_s7 }
  0xb7   : > { %s3974_s24 = sld [smem:[#allocation6 + $0x202]]  ;;  %v435_v25 = vadd.f32 %v433_v17, %v427_v20  ;;  %v445_v30 = vmul.f32 %v3435_v22, %v6062_v18  ;;  %v6058_v61 = vstv %s3959_s10 }
  0xb8   : > { %6256 = sst [smem:[#allocation44_spill]] %s3967_s9  ;;  %v6059_v38 = vstv %s3967_s9  ;;  %v453_v46 = vmul.f32 %v6058_v61, %v3408_v7 }
  0xb9   : > { %s3979_s15 = sld [smem:[#allocation6 + $0x203]]  ;;  %v459_v60 = vmul.f32 %v3411_v8, %v6059_v38  ;;  %v441_v26 = vadd.f32 %v439_v53, %v435_v25 }
  0xba   : > { %s3986_s21 = sld [smem:[#allocation6 + $0x280]] }
  0xbb   : > { %s3991_s13 = sld [smem:[#allocation6 + $0x281]]  ;;  %v461_v61 = vadd.f32 %v459_v60, %v453_v46  ;;  %v447_v53 = vadd.f32 %v445_v30, %v441_v26 }
  0xbc   : > { %s3999_s12 = sld [smem:[#allocation6 + $0x282]] }
  0xbd   : > { %6257 = sst [smem:[#allocation45_spill]] %s3974_s24  ;;  %v6061_v23 = vstv %s3974_s24 }
  0xbe   : > { %s4003_s25 = sld [smem:[#allocation6 + $0x283]]  ;;  %v465_v20 = vmul.f32 %v3424_v15, %v6061_v23 }
  0xbf   : > { %6258 = sst [smem:[#allocation46_spill]] %s3979_s15  ;;  %v6067_v17 = vstv %s3979_s15 }
  0xc0   : > { %6259 = sst [smem:[#allocation47_spill]] %s3986_s21  ;;  %v6065_v2 = vstv %s3986_s21  ;;  %v471_v38 = vmul.f32 %v3435_v22, %v6067_v17  ;;  %v467_v46 = vadd.f32 %v465_v20, %v461_v61 }
  0xc1   : > { %s4015_s27 = sld [smem:[#allocation6 + $0x300]]  ;;  %v479_v25 = vmul.f32 %v6065_v2, %v3408_v7  ;;  %v6069_v23 = vstv %s3991_s13 }
  0xc2   : > { %6260 = sst [smem:[#allocation48_spill]] %s3999_s12  ;;  %v6070_v18 = vstv %s3999_s12  ;;  %v485_v60 = vmul.f32 %v3411_v8, %v6069_v23  ;;  %v473_v61 = vadd.f32 %v471_v38, %v467_v46 }
  0xc3   : > { %s4021_s8 = sld [smem:[#allocation6 + $0x301]]  ;;  %v491_v2 = vmul.f32 %v3424_v15, %v6070_v18 }
  0xc4   : > { %6261 = sst [smem:[#allocation49_spill]] %s4003_s25  ;;  %v6072_v12 = vstv %s4003_s25  ;;  %v487_v20 = vadd.f32 %v485_v60, %v479_v25  ;;  %v4096_v25 = vmax.f32 %v473_v61, 0.0  ;;  %v1215_v61 = vmul.f32 %v1214_v43, %v3467_v47 }
  0xc5   : > { %s4028_s16 = sld [smem:[#allocation6 + $0x302]]  ;;  %v497_v30 = vmul.f32 %v3435_v22, %v6072_v12  ;;  %v4087_v12 = vmax.f32 %v447_v53, 0.0  ;;  %v1221_v43 = vmul.f32 %v1220_v39, %v3506_v13 }
  0xc6   : > { %s4037_s7 = sld [smem:[#allocation6 + $0x303]]  ;;  %v493_v46 = vadd.f32 %v491_v2, %v487_v20 }
  0xc7   : > { %s4044_s1 = sld [smem:[#allocation6 + $0x380]]  ;;  %v6079_v26 = vstv %s4015_s27 }
  0xc8   : > { %s4054_s24 = sld [smem:[#allocation6 + $0x381]]  ;;  %v505_v23 = vmul.f32 %v6079_v26, %v3408_v7 }
  0xc9   : > { %6262 = sst [smem:[#allocation50_spill]] %s4021_s8  ;;  %v6078_v17 = vstv %s4021_s8 }
  0xca   : > { %s4059_s9 = sld [smem:[#allocation6 + $0x382]]  ;;  %v511_v18 = vmul.f32 %v3411_v8, %v6078_v17 }
  0xcb   : > { %6263 = sst [smem:[#allocation51_spill]] %s4028_s16  ;;  %v6077_v27 = vstv %s4028_s16 }
  0xcc   : > { %6264 = sst [smem:[#allocation52_spill]] %s4037_s7  ;;  %v517_v44 = vmul.f32 %v3424_v15, %v6077_v27  ;;  %v522_v9 = vstv %s4037_s7  ;;  %v513_v60 = vadd.f32 %v511_v18, %v505_v23  ;;  %v499_v18 = vadd.f32 %v497_v30, %v493_v46 }
  0xcd   : > { %6265 = sst [smem:[#allocation53_spill]] %s4044_s1  ;;  %v6082_v38 = vstv %s4044_s1  ;;  %v523_v53 = vmul.f32 %v3435_v22, %v522_v9 }
  0xce   : > { %s4069_s21 = sld [smem:[#allocation6 + $0x383]]  ;;  %v531_v27 = vmul.f32 %v6082_v38, %v3408_v7  ;;  %v536_v17 = vstv %s4054_s24  ;;  %v519_v23 = vadd.f32 %v517_v44, %v513_v60  ;;  %v1227_v44 = vmul.f32 %v1226_v54, %v3564_v49 }
  0xcf   : > { %s4077_s15 = sld [smem:[#allocation7]]  ;;  %v537_v2 = vmul.f32 %v3411_v8, %v536_v17  ;;  %v4131_v30 = vmax.f32 %v499_v18, 0.0  ;;  %v1223_v54 = vadd.f32 %v1221_v43, %v1215_v61  ;;  %v1233_v43 = vmul.f32 %v1232_v21, %v3630_v10 }
  0xd0   : > { %s4085_s25 = sld [smem:[#allocation7 + $0x1]]  ;;  %v6084_v26 = vstv %s4059_s9  ;;  %v525_v8 = vadd.f32 %v523_v53, %v519_v23 }
  0xd1   : > { %s4094_s12 = sld [smem:[#allocation7 + $0x2]]  ;;  %v543_v20 = vmul.f32 %v3424_v15, %v6084_v26  ;;  %v539_v15 = vadd.f32 %v537_v2, %v531_v27  ;;  %v1229_v61 = vadd.f32 %v1227_v44, %v1223_v54  ;;  %v1239_v44 = vmul.f32 %v1238_v24, %v3699_v28 }
  0xd2   : > { %s4101_s16 = sld [smem:[#allocation7 + $0x3]]  ;;  %v4145_v18 = vmax.f32 %v525_v8, 0.0 }
  0xd3   : > { %s4108_s8 = sld [smem:[#allocation7 + $0x4]]  ;;  %v545_v27 = vadd.f32 %v543_v20, %v539_v15  ;;  %v1235_v21 = vadd.f32 %v1233_v43, %v1229_v61 }
  0xd4   : > { %s4119_s1 = sld [smem:[#allocation7 + $0x5]]  ;;  %v548_v7 = vstv %s4069_s21 }
  0xd5   : > { %6266 = sst [smem:[#allocation54_spill]] %s4077_s15  ;;  %v6089_v38 = vstv %s4077_s15  ;;  %v549_v46 = vmul.f32 %v3435_v22, %v548_v7  ;;  %v1241_v24 = vadd.f32 %v1239_v44, %v1235_v21 }
  0xd6   : > { %6267 = sst [smem:[#allocation55_spill]] %s4085_s25  ;;  %v557_v60 = vmul.f32 %v6089_v38, %v4001_v62  ;;  %v6088_v26 = vstv %s4085_s25 }
  0xd7   : > { %6268 = sst [smem:[#allocation56_spill]] %s4094_s12  ;;  %v6086_v39 = vstv %s4094_s12  ;;  %v563_v22 = vmul.f32 %v6088_v26, %v4046_v4  ;;  %v551_v20 = vadd.f32 %v549_v46, %v545_v27 }
  0xd8   : > { %s4123_s7 = sld [smem:[#allocation7 + $0x6]]  ;;  %v569_v53 = vmul.f32 %v6086_v39, %v4061_v37  ;;  %v574_v23 = vstv %s4101_s16 }
  0xd9   : > { %6269 = sst [smem:[#allocation57_spill]] %s4108_s8  ;;  %v6091_v2 = vstv %s4108_s8  ;;  %v565_v8 = vadd.f32 %v563_v22, %v557_v60  ;;  %v575_v15 = vmul.f32 %v574_v23, %v4087_v12  ;;  %v4177_v46 = vmax.f32 %v551_v20, 0.0 }
  0xda   : > { %s4136_s18 = sld [smem:[#allocation7 + $0x7]]  ;;  %v581_v39 = vmul.f32 %v6091_v2, %v4096_v25  ;;  %v6096_v26 = vstv %s4119_s1 }
  0xdb   : > { %s4143_s6 = sld [smem:[#allocation7 + $0x100]]  ;;  %v571_v60 = vadd.f32 %v569_v53, %v565_v8  ;;  %v587_v54 = vmul.f32 %v6096_v26, %v4131_v30  ;;  %v1245_v53 = vmul.f32 %v1244_v11, %v3757_v0  ;;  %v1257_v26 = vmul.f32 %v1256_v5, %v3823_v48 }
  0xdc   : > { %s4153_s19 = sld [smem:[#allocation7 + $0x101]]  ;;  %v1315_v5 = vmul.f32 %v1314_v40, %v3467_v47  ;;  %v1321_v40 = vmul.f32 %v1320_v35, %v3506_v13 }
  0xdd   : > { %s4157_s15 = sld [smem:[#allocation7 + $0x102]]  ;;  %v577_v61 = vadd.f32 %v575_v15, %v571_v60  ;;  %v1247_v11 = vadd.f32 %v1245_v53, %v1241_v24  ;;  %v1251_v15 = vmul.f32 %v1250_v58, %v3802_v42 }
  0xde   : > { %6270 = sst [smem:[#allocation58_spill]] %s4123_s7  ;;  %v6094_v38 = vstv %s4123_s7  ;;  %v1323_v35 = vadd.f32 %v1321_v40, %v1315_v5 }
  0xdf   : > { %s4168_s12 = sld [smem:[#allocation7 + $0x103]]  ;;  %v593_v27 = vmul.f32 %v6094_v38, %v4145_v18  ;;  %v583_v60 = vadd.f32 %v581_v39, %v577_v61  ;;  %v1253_v58 = vadd.f32 %v1251_v15, %v1247_v11 }
  0xe0   : > { %6271 = sst [smem:[#allocation59_spill]] %s4136_s18  ;;  %v6093_v22 = vstv %s4136_s18 }
  0xe1   : > { %s4172_s25 = sld [smem:[#allocation7 + $0x104]]  ;;  %v656_v2 = vstv %s4143_s6  ;;  %v599_v43 = vmul.f32 %v6093_v22, %v4177_v46  ;;  %v589_v39 = vadd.f32 %v587_v54, %v583_v60  ;;  %v1259_v54 = vadd.f32 %v1257_v26, %v1253_v58 }
  0xe2   : > { %s4185_s11 = sld [smem:[#allocation7 + $0x105]]  ;;  %v657_v20 = vmul.f32 %v656_v2, %v4001_v62  ;;  %v6097_v8 = vstv %s4153_s19 }
  0xe3   : > { %s4189_s8 = sld [smem:[#allocation7 + $0x106]]  ;;  %v663_v21 = vmul.f32 %v6097_v8, %v4046_v4  ;;  %v6098_v44 = vstv %s4157_s15  ;;  %v595_v11 = vadd.f32 %v593_v27, %v589_v39  ;;  %v1261_v26 = vmax.f32 %v1259_v54, 0.0 }
  0xe4   : > { %s4201_s14 = sld [smem:[#allocation7 + $0x107]]  ;;  %v669_v22 = vmul.f32 %v6098_v44, %v4061_v37 }
  0xe5   : > { %s4207_s20 = sld [smem:[#allocation10 + $0x300]]  ;;  %v6099_v38 = vstv %s4168_s12  ;;  %v665_v8 = vadd.f32 %v663_v21, %v657_v20  ;;  %v601_v27 = vadd.f32 %v599_v43, %v595_v11  ;;  %1614 = vmatpush.msra.mxu1 %v1261_v26  ;;  %v1327_v43 = vmul.f32 %v1326_v59, %v3564_v49 }
  0xe6   : > { %s4216_s18 = sld [smem:[#allocation10 + $0x301]]  ;;  %v675_v24 = vmul.f32 %v6099_v38, %v4087_v12 }
  0xe7   : > { %6272 = sst [smem:[#allocation60_spill]] %s4172_s25  ;;  %v680_v53 = vstv %s4172_s25  ;;  %v671_v20 = vadd.f32 %v669_v22, %v665_v8  ;;  %v603_v54 = vmax.f32 %v601_v27, 0.0  ;;  %v1329_v27 = vadd.f32 %v1327_v43, %v1323_v35 }
  0xe8   : > { %s4225_s28 = sld [smem:[#allocation10 + $0x302]]  ;;  %v681_v61 = vmul.f32 %v680_v53, %v4096_v25  ;;  %v6102_v44 = vstv %s4185_s11 }
  0xe9   : > { %6273 = sst [smem:[#allocation61_spill]] %s4189_s8  ;;  %v687_v21 = vmul.f32 %v6102_v44, %v4131_v30  ;;  %v6105_v38 = vstv %s4189_s8  ;;  %v677_v22 = vadd.f32 %v675_v24, %v671_v20  ;;  %2763 = vmatmul.msk.f32.vlgmr.msra.gmra.mxu0 %vm1563_vm0, %v603_v54 }
  0xea   : > { %6274 = sst [smem:[#allocation62_spill]] %s4201_s14  ;;  %v693_v15 = vmul.f32 %v6105_v38, %v4145_v18  ;;  %v6103_v60 = vstv %s4201_s14 }
  0xeb   : > { %s4231_s26 = sld [smem:[#allocation10 + $0x303]]  ;;  %v699_v8 = vmul.f32 %v6103_v60, %v4177_v46  ;;  %v1464_v44 = vstv %s4207_s20  ;;  %v683_v24 = vadd.f32 %v681_v61, %v677_v22  ;;  %v1333_v61 = vmul.f32 %v1332_v52, %v3630_v10 }
  0xec   : > { %s4240_s7 = sld [smem:[#allocation10 + $0x304]]  ;;  %v1466_v58 = vmul.f32 %v1464_v44, %v3457_v41  ;;  %v1470_v39 = vstv %s4216_s18 }
  0xed   : > { %s4246_s25 = sld [smem:[#allocation10 + $0x305]]  ;;  %v1472_v20 = vmul.f32 %v1470_v39, %v3479_v57  ;;  %v689_v5 = vadd.f32 %v687_v21, %v683_v24  ;;  %v1339_v21 = vmul.f32 %v1338_v50, %v3699_v28  ;;  %v1345_v50 = vmul.f32 %v1344_v1, %v3757_v0 }
  0xee   : > { %6275 = sst [smem:[#allocation63_spill]] %s4225_s28  ;;  %v1476_v60 = vstv %s4225_s28  ;;  %v1357_v1 = vmul.f32 %v1356_v36, %v3823_v48 }
  0xef   : > { %s4255_s0 = sld [smem:[#allocation10 + $0x306]]  ;;  %v1478_v11 = vmul.f32 %v1476_v60, %v3509_v16  ;;  %v1474_v40 = vadd.f32 %v1472_v20, %v1466_v58  ;;  %v695_v58 = vadd.f32 %v693_v15, %v689_v5 }
  0xf0   : > { %s4261_s2 = sld [smem:[#allocation10 + $0x307]] }
  0xf1   : > { %6276 = sst [smem:[#allocation64_spill]] %s4231_s26  ;;  %v1482_v38 = vstv %s4231_s26  ;;  %v1480_v24 = vadd.f32 %v1478_v11, %v1474_v40  ;;  %v701_v15 = vadd.f32 %v699_v8, %v695_v58  ;;  %v1351_v40 = vmul.f32 %v1350_v3, %v3802_v42 }
  0xf2   : > { %6277 = sst [smem:[#allocation65_spill]] %s4240_s7  ;;  %v1484_v59 = vmul.f32 %v1482_v38, %v3537_v33  ;;  %v6109_v22 = vstv %s4240_s7 }
  0xf3   : > { %6278 = sst [smem:[#allocation66_spill]] %s4246_s25  ;;  %v1490_v26 = vmul.f32 %v6109_v22, %v3569_v51  ;;  %v1494_v52 = vstv %s4246_s25  ;;  %v1335_v22 = vadd.f32 %v1333_v61, %v1329_v27  ;;  %v703_v8 = vmax.f32 %v701_v15, 0.0 }
  0xf4   : > { %s4270_s14 = sld [smem:[#allocation7 + $0x80]]  ;;  %v1496_v20 = vmul.f32 %v1494_v52, %v3601_v14  ;;  %v1486_v11 = vadd.f32 %v1484_v59, %v1480_v24 }
  0xf5   : > { %6279 = sst [smem:[#allocation67_spill]] %s4255_s0  ;;  %v6113_v54 = vstv %s4255_s0  ;;  %v1341_v61 = vadd.f32 %v1339_v21, %v1335_v22  ;;  %2767 = vmatmul.msk.f32.vlgmr.msra.gmra.mxu2 %vm1563_vm0, %v703_v8 }
  0xf6   : > { %6280 = sst [smem:[#allocation68_spill]] %s4261_s2  ;;  %v1502_v35 = vmul.f32 %v6113_v54, %v3635_v32  ;;  %v6115_v43 = vstv %s4261_s2  ;;  %v1492_v59 = vadd.f32 %v1490_v26, %v1486_v11 }
  0xf7   : > { %s4279_s8 = sld [smem:[#allocation7 + $0x81]]  ;;  %v1508_v5 = vmul.f32 %v6115_v43, %v3667_v56  ;;  %v1347_v22 = vadd.f32 %v1345_v50, %v1341_v61 }
  0xf8   : > { %s4285_s3 = sld [smem:[#allocation7 + $0x82]]  ;;  %v1498_v15 = vadd.f32 %v1496_v20, %v1492_v59 }
  0xf9   : > { %s4295_s4 = sld [smem:[#allocation7 + $0x83]]  ;;  %v1353_v43 = vadd.f32 %v1351_v40, %v1347_v22 }
  0xfa   : > { %s4301_s7 = sld [smem:[#allocation7 + $0x84]]  ;;  %v6117_v27 = vstv %s4270_s14  ;;  %v1504_v8 = vadd.f32 %v1502_v35, %v1498_v15 }
  0xfb   : > { %s4310_s5 = sld [smem:[#allocation7 + $0x85]]  ;;  %v607_v58 = vmul.f32 %v6117_v27, %v4001_v62 }
  0xfc   : > { %s6287_s0 = sld [smem:[#allocation29_spill]]  ;;  %v1510_v35 = vadd.f32 %v1508_v5, %v1504_v8 }
  0xfd   : > { %6281 = sst [smem:[#allocation69_spill]] %s4279_s8  ;;  %v6116_v54 = vstv %s4279_s8 }
  0xfe   : > { %6282 = sst [smem:[#allocation70_spill]] %s4285_s3  ;;  %v613_v3 = vmul.f32 %v6116_v54, %v4046_v4  ;;  %v618_v36 = vstv %s4285_s3 }
  0xff   : > { %6283 = sst [smem:[#allocation71_spill]] %s4295_s4  ;;  %v6120_v21 = vstv %s4295_s4  ;;  %v619_v50 = vmul.f32 %v618_v36, %v4061_v37 }
 0x100   : > { %6285 = sst [smem:[#allocation30_spill]] %s4301_s7  ;;  %v615_v11 = vadd.f32 %v613_v3, %v607_v58  ;;  %v625_v61 = vmul.f32 %v6120_v21, %v4087_v12  ;;  %v630_v54 = vstv %s4301_s7  ;;  %v1359_v3 = vadd.f32 %v1357_v1, %v1353_v43 }
 0x101   : > { %6286 = sst [smem:[#allocation72_spill]] %s4310_s5  ;;  %v6123_v27 = vstv %s4310_s5  ;;  %v631_v58 = vmul.f32 %v630_v54, %v4096_v25 }
 0x102   : > { %s4318_s25 = sld [smem:[#allocation7 + $0x86]]  ;;  %v4340_v24 = vld [vmem:[%s6287_s0 + $0x8] sm:$0xff]  ;;  %v621_v59 = vadd.f32 %v619_v50, %v615_v11  ;;  %v637_v40 = vmul.f32 %v6123_v27, %v4131_v30  ;;  %v1361_v43 = vmax.f32 %v1359_v3, 0.0 }
 0x103   : > { %s4325_s22 = sld [smem:[#allocation7 + $0x87]]  ;;  %v350_v26 = vmul.f32 %v4340_v24, %v348_v34  ;;  %v4359_v34 = vld [vmem:[%s6287_s0 + $0x18] sm:$0xff] }
 0x104   : > { %s4333_s23 = sld [smem:[#allocation7 + $0x180]]  ;;  %v356_v20 = vmul.f32 %v4359_v34, %v354_v29  ;;  %v627_v15 = vadd.f32 %v625_v61, %v621_v59  ;;  %v1512_v61 = vmax.f32 %v1510_v35, 0.0  ;;  %1672 = vmatpush.msra.mxu3 %v1361_v43  ;;  %v4407_v35 = vld [vmem:[%s6287_s0 + $0x38] sm:$0xff] }
 0x105   : > { %s4337_s26 = sld [smem:[#allocation7 + $0x181]] }
 0x106   : > { %s4352_s2 = sld [smem:[#allocation7 + $0x182]]  ;;  %v358_v29 = vadd.f32 %v356_v20, %v350_v26  ;;  %v4389_v26 = vld [vmem:[%s6287_s0 + $0x28] sm:$0xff]  ;;  %v633_v20 = vadd.f32 %v631_v58, %v627_v15  ;;  %v368_v58 = vmul.f32 %v4407_v35, %v366_v45  ;;  %1758 = vmatpush.msrb.mxu2 %v1512_v61 }
 0x107   : > { %s4356_s28 = sld [smem:[#allocation7 + $0x183]]  ;;  %v362_v5 = vmul.f32 %v4389_v26, %v360_v31 }
 0x108   : > { %s4370_s4 = sld [smem:[#allocation7 + $0x184]]  ;;  %v6172_v22 = vstv %s4318_s25  ;;  %v639_v15 = vadd.f32 %v637_v40, %v633_v20  ;;  %v376_v40 = vmul.f32 %v4340_v24, %v374_v19 }
 0x109   : > { %6289 = sst [smem:[#allocation31_spill]] %s4325_s22  ;;  %v6126_v21 = vstv %s4325_s22  ;;  %v643_v11 = vmul.f32 %v6172_v22, %v4145_v18  ;;  %v364_v31 = vadd.f32 %v362_v5, %v358_v29 }
 0x10a   : > { %6290 = sst [smem:[#allocation73_spill]] %s4333_s23  ;;  %v649_v50 = vmul.f32 %v6126_v21, %v4177_v46  ;;  %v6128_v1 = vstv %s4333_s23 }
 0x10b   : > { %6291 = sst [smem:[#allocation74_spill]] %s4337_s26  ;;  %v6127_v27 = vstv %s4337_s26  ;;  %v707_v8 = vmul.f32 %v6128_v1, %v4001_v62  ;;  %v370_v45 = vadd.f32 %v368_v58, %v364_v31  ;;  %v645_v61 = vadd.f32 %v643_v11, %v639_v15 }
 0x10c   : > { %6292 = sst [smem:[#allocation75_spill]] %s4352_s2  ;;  %v713_v59 = vmul.f32 %v6127_v27, %v4046_v4  ;;  %v6134_v3 = vstv %s4352_s2 }
 0x10d   : > { %6293 = sst [smem:[#allocation76_spill]] %s4356_s28  ;;  %v6133_v21 = vstv %s4356_s28  ;;  %v719_v43 = vmul.f32 %v6134_v3, %v4061_v37  ;;  %v4439_v19 = vmax.f32 %v370_v45, 0.0  ;;  %v651_v11 = vadd.f32 %v649_v50, %v645_v61 }
 0x10e   : > { %6294 = sst [smem:[#allocation77_spill]] %s4370_s4  ;;  %v715_v27 = vadd.f32 %v713_v59, %v707_v8  ;;  %v725_v1 = vmul.f32 %v6133_v21, %v4087_v12  ;;  %v6171_v29 = vstv %s4370_s4 }
 0x10f   : > { %s4374_s17 = sld [smem:[#allocation7 + $0x185]]  ;;  %v731_v8 = vmul.f32 %v6171_v29, %v4096_v25  ;;  %v653_v50 = vmax.f32 %v651_v11, 0.0 }
 0x110   : > { %s4382_s5 = sld [smem:[#allocation7 + $0x186]]  ;;  %v721_v20 = vadd.f32 %v719_v43, %v715_v27  ;;  %v382_v27 = vmul.f32 %v4359_v34, %v380_v63  ;;  %v388_v63 = vmul.f32 %v4389_v26, %v386_v6  ;;  %v394_v6 = vmul.f32 %v4407_v35, %v392_v55 }
 0x111   : > { %s4386_s8 = sld [smem:[#allocation7 + $0x187]]  ;;  %2765 = vmatmul.msk.f32.vlgmr.msra.gmra.mxu1 %vm1563_vm0, %v653_v50 }
 0x112   : > { %s4400_s22 = sld [smem:[#allocation10 + $0x200]]  ;;  %v727_v31 = vadd.f32 %v725_v1, %v721_v20  ;;  %v384_v45 = vadd.f32 %v382_v27, %v376_v40 }
 0x113   : > { %s4404_s3 = sld [smem:[#allocation10 + $0x201]] }
 0x114   : > { %s4418_s23 = sld [smem:[#allocation10 + $0x202]]  ;;  %v733_v1 = vadd.f32 %v731_v8, %v727_v31  ;;  %v390_v40 = vadd.f32 %v388_v63, %v384_v45 }
 0x115   : > { %6296 = sst [smem:[#allocation32_spill]] %s4374_s17  ;;  %v6137_v5 = vstv %s4374_s17 }
 0x116   : > { %6297 = sst [smem:[#allocation78_spill]] %s4382_s5  ;;  %v737_v59 = vmul.f32 %v6137_v5, %v4131_v30  ;;  %v6141_v21 = vstv %s4382_s5  ;;  %v396_v55 = vadd.f32 %v394_v6, %v390_v40 }
 0x117   : > { %6299 = sst [smem:[#allocation33_spill]] %s4386_s8  ;;  %v6140_v3 = vstv %s4386_s8  ;;  %v743_v58 = vmul.f32 %v6141_v21, %v4145_v18 }
 0x118   : > { %6300 = sst [smem:[#allocation79_spill]] %s4400_s22  ;;  %v749_v15 = vmul.f32 %v6140_v3, %v4177_v46  ;;  %v6156_v43 = vstv %s4400_s22  ;;  %v739_v8 = vadd.f32 %v737_v59, %v733_v1  ;;  %v4502_v40 = vmax.f32 %v396_v55, 0.0 }
 0x119   : > { %6301 = sst [smem:[#allocation80_spill]] %s4404_s3  ;;  %v6148_v5 = vstv %s4404_s3  ;;  %v1366_v61 = vmul.f32 %v6156_v43, %v3457_v41 }
 0x11a   : > { %6303 = sst [smem:[#allocation34_spill]] %s4418_s23  ;;  %v1372_v20 = vmul.f32 %v6148_v5, %v3479_v57  ;;  %v6147_v3 = vstv %s4418_s23  ;;  %v745_v1 = vadd.f32 %v743_v58, %v739_v8 }
 0x11b   : > { %s4422_s7 = sld [smem:[#allocation10 + $0x203]]  ;;  %v1378_v11 = vmul.f32 %v6147_v3, %v3509_v16 }
 0x11c   : > { %s4433_s28 = sld [smem:[#allocation10 + $0x204]]  ;;  %v1374_v27 = vadd.f32 %v1372_v20, %v1366_v61  ;;  %v751_v8 = vadd.f32 %v749_v15, %v745_v1 }
 0x11d   : > { %s4437_s2 = sld [smem:[#allocation10 + $0x205]] }
 0x11e   : > { %s4450_s17 = sld [smem:[#allocation10 + $0x206]]  ;;  %v1380_v61 = vadd.f32 %v1378_v11, %v1374_v27 }
 0x11f   : > { %s4454_s4 = sld [smem:[#allocation10 + $0x207]] }
 0x120   : > { %s4465_s26 = sld [smem:[#allocation10 + $0x380]] }
 0x121   : > { %6304 = sst [smem:[#allocation81_spill]] %s4422_s7  ;;  %v6144_v21 = vstv %s4422_s7 }
 0x122   : > { %s6311_s8 = sld [smem:[#allocation37_spill]]  ;;  %v1384_v31 = vmul.f32 %v6144_v21, %v3537_v33  ;;  %v6151_v45 = vstv %s4433_s28 }
 0x123   : > { %6306 = sst [smem:[#allocation35_spill]] %s4437_s2  ;;  %v6150_v63 = vstv %s4437_s2  ;;  %v1390_v20 = vmul.f32 %v6151_v45, %v3569_v51 }
 0x124   : > { %6308 = sst [smem:[#allocation36_spill]] %s4450_s17  ;;  %v1396_v21 = vmul.f32 %v6150_v63, %v3601_v14  ;;  %v6155_v3 = vstv %s4450_s17  ;;  %v1386_v27 = vadd.f32 %v1384_v31, %v1380_v61  ;;  %v753_v31 = vmax.f32 %v751_v8, 0.0 }
 0x125   : > { %6309 = sst [smem:[#allocation82_spill]] %s4454_s4  ;;  %v6153_v5 = vstv %s4454_s4  ;;  %v1402_v11 = vmul.f32 %v6155_v3, %v3635_v32 }
 0x126   : > { %6310 = sst [smem:[#allocation83_spill]] %s4465_s26  ;;  %v6164_v63 = vstv %s4465_s26  ;;  %v1392_v1 = vadd.f32 %v1390_v20, %v1386_v27  ;;  %2769 = vmatmul.msk.f32.vlgmr.msra.gmra.mxu3 %vm1563_vm0, %v753_v31 }
 0x127   : > { %s4469_s5 = sld [smem:[#allocation10 + $0x381]]  ;;  %v1516_v61 = vmul.f32 %v6164_v63, %v3457_v41 }
 0x128   : > { %s6313_s0 = sld [smem:[#allocation38_spill]]  ;;  %v6316_v50 = vstv %s6311_s8  ;;  %v1398_v8 = vadd.f32 %v1396_v21, %v1392_v1 }
 0x129   : > { %s4481_s3 = sld [smem:[#allocation10 + $0x382]]  ;;  %v402_v59 = vmul.f32 %v4340_v24, %v6316_v50  ;;  %v1408_v50 = vmul.f32 %v6153_v5, %v3667_v56 }
 0x12a   : > { %s4485_s29 = sld [smem:[#allocation10 + $0x383]] }
 0x12b   : > { %s6317_s7 = sld [smem:[#allocation39_spill]] }
 0x12c   : > { %s4496_s23 = sld [smem:[#allocation10 + $0x384]] }
 0x12d   : > { %6312 = sst [smem:[#allocation37_spill]] %s4469_s5  ;;  %v6158_v45 = vstv %s4469_s5 }
 0x12e   : > { %s4500_s22 = sld [smem:[#allocation10 + $0x385]]  ;;  %v6319_v58 = vstv %s6313_s0  ;;  %v1522_v5 = vmul.f32 %v6158_v45, %v3479_v57 }
 0x12f   : > { %6314 = sst [smem:[#allocation38_spill]] %s4481_s3  ;;  %v408_v6 = vmul.f32 %v4359_v34, %v6319_v58  ;;  %v6163_v3 = vstv %s4481_s3 }
 0x130   : > { %6315 = sst [smem:[#allocation84_spill]] %s4485_s29  ;;  %v6160_v43 = vstv %s4485_s29  ;;  %v1524_v27 = vadd.f32 %v1522_v5, %v1516_v61  ;;  %v1404_v5 = vadd.f32 %v1402_v11, %v1398_v8 }
 0x131   : > { %s4513_s8 = sld [smem:[#allocation10 + $0x386]]  ;;  %v410_v55 = vadd.f32 %v408_v6, %v402_v59  ;;  %v6321_v58 = vstv %s6317_s7  ;;  %v6324_v6 = vstv %s3923_s30  ;;  %v1534_v45 = vmul.f32 %v6160_v43, %v3537_v33 }
 0x132   : > { %s4517_s2 = sld [smem:[#allocation10 + $0x387]]  ;;  %v414_v15 = vmul.f32 %v4389_v26, %v6321_v58  ;;  %v420_v20 = vmul.f32 %v4407_v35, %v6324_v6  ;;  %v1528_v58 = vmul.f32 %v6163_v3, %v3509_v16  ;;  %v1410_v8 = vadd.f32 %v1408_v50, %v1404_v5 }
 0x133   : > { %s4528_s0 = sld [smem:[#allocation10 + $0x280]] }
 0x134   : > { %6318 = sst [smem:[#allocation39_spill]] %s4500_s22  ;;  %v416_v59 = vadd.f32 %v414_v15, %v410_v55  ;;  %v6168_v55 = vstv %s4496_s23  ;;  %v6167_v15 = vstv %s4500_s22  ;;  %v1530_v1 = vadd.f32 %v1528_v58, %v1524_v27 }
 0x135   : > { %s6322_s4 = sld [smem:[#allocation40_spill]]  ;;  %v1540_v61 = vmul.f32 %v6168_v55, %v3569_v51  ;;  %v1546_v43 = vmul.f32 %v6167_v15, %v3601_v14  ;;  %v1412_v50 = vmax.f32 %v1410_v8, 0.0 }
 0x136   : > { %s4532_s17 = sld [smem:[#allocation10 + $0x281]]  ;;  %v422_v31 = vadd.f32 %v420_v20, %v416_v59  ;;  %v1536_v27 = vadd.f32 %v1534_v45, %v1530_v1 }
 0x137   : > { %s6325_s7 = sld [smem:[#allocation41_spill]]  ;;  %v6170_v3 = vstv %s4513_s8  ;;  %1700 = vmatpush.msrb.mxu0 %v1412_v50 }
 0x138   : > { %6320 = sst [smem:[#allocation85_spill]] %s4517_s2  ;;  %v6169_v63 = vstv %s4517_s2  ;;  %v4565_v59 = vmax.f32 %v422_v31, 0.0  ;;  %v1552_v58 = vmul.f32 %v6170_v3, %v3635_v32  ;;  %v1542_v5 = vadd.f32 %v1540_v61, %v1536_v27 }
 0x139   : > { %s4544_s5 = sld [smem:[#allocation10 + $0x282]]  ;;  %v1414_v15 = vstv %s4528_s0 }
 0x13a   : > { %s4548_s30 = sld [smem:[#allocation10 + $0x283]]  ;;  %v1416_v1 = vmul.f32 %v1414_v15, %v3457_v41 }
 0x13b   : > { %v6328_v6 = vstv %s6322_s4  ;;  %s6329_s29 = sld [smem:[#allocation42_spill]] }
 0x13c   : > { %6323 = sst [smem:[#allocation40_spill]] %s4532_s17  ;;  %v428_v21 = vmul.f32 %v4340_v24, %v6328_v6  ;;  %v1558_v6 = vmul.f32 %v6169_v63, %v3667_v56  ;;  %v1420_v31 = vstv %s4532_s17 }
 0x13d   : > { %s4559_s3 = sld [smem:[#allocation10 + $0x284]]  ;;  %v6332_v11 = vstv %s6325_s7  ;;  %v1422_v63 = vmul.f32 %v1420_v31, %v3479_v57 }
 0x13e   : > { %s4563_s26 = sld [smem:[#allocation10 + $0x285]]  ;;  %v434_v20 = vmul.f32 %v4359_v34, %v6332_v11 }
 0x13f   : > { %6326 = sst [smem:[#allocation41_spill]] %s4544_s5  ;;  %v1426_v3 = vstv %s4544_s5  ;;  %v1424_v61 = vadd.f32 %v1422_v63, %v1416_v1 }
 0x140   : > { %6327 = sst [smem:[#allocation86_spill]] %s4548_s30  ;;  %v436_v11 = vadd.f32 %v434_v20, %v428_v21  ;;  %v1432_v29 = vstv %s4548_s30  ;;  %v1428_v41 = vmul.f32 %v1426_v3, %v3509_v16 }
 0x141   : > { %s6333_s4 = sld [smem:[#allocation43_spill]]  ;;  %v6334_v55 = vstv %s6329_s29  ;;  %v1434_v57 = vmul.f32 %v1432_v29, %v3537_v33 }
 0x142   : > { %s4576_s22 = sld [smem:[#allocation10 + $0x286]]  ;;  %v440_v45 = vmul.f32 %v4389_v26, %v6334_v55  ;;  %v1548_v55 = vadd.f32 %v1546_v43, %v1542_v5  ;;  %v1430_v43 = vadd.f32 %v1428_v41, %v1424_v61 }
 0x143   : > { %6330 = sst [smem:[#allocation42_spill]] %s4559_s3  ;;  %v6180_v8 = vstv %s4559_s3 }
 0x144   : > { %6331 = sst [smem:[#allocation87_spill]] %s4563_s26  ;;  %v442_v22 = vadd.f32 %v440_v45, %v436_v11  ;;  %v6179_v27 = vstv %s4563_s26  ;;  %v6338_v45 = vstv %s3959_s10  ;;  %v1554_v50 = vadd.f32 %v1552_v58, %v1548_v55 }
 0x145   : > { %s4580_s7 = sld [smem:[#allocation10 + $0x287]]  ;;  %v1440_v63 = vmul.f32 %v6180_v8, %v3569_v51  ;;  %v1446_v16 = vmul.f32 %v6179_v27, %v3601_v14  ;;  %v1436_v55 = vadd.f32 %v1434_v57, %v1430_v43 }
 0x146   : > { %s6336_s29 = sld [smem:[#allocation44_spill]]  ;;  %v1560_v58 = vadd.f32 %v1558_v6, %v1554_v50 }
 0x147   : > { %v6335_v21 = vstv %s6333_s4  ;;  %s6337_s2 = sld [smem:[#allocation45_spill]]  ;;  %v1442_v57 = vadd.f32 %v1440_v63, %v1436_v55 }
 0x148   : > { %v446_v20 = vmul.f32 %v4407_v35, %v6335_v21  ;;  %s6339_s4 = sld [smem:[#allocation46_spill]]  ;;  %v454_v21 = vmul.f32 %v4340_v24, %v6338_v45  ;;  %v6182_v33 = vstv %s4576_s22  ;;  %v1562_v6 = vmax.f32 %v1560_v58, 0.0 }
 0x149   : > { %s6340_s17 = sld [smem:[#allocation47_spill]]  ;;  %v1452_v51 = vmul.f32 %v6182_v33, %v3635_v32  ;;  %v6351_v32 = vstv %s3991_s13  ;;  %v1448_v63 = vadd.f32 %v1446_v16, %v1442_v57 }
 0x14a   : > { %v448_v11 = vadd.f32 %v446_v20, %v442_v22  ;;  %s6341_s30 = sld [smem:[#allocation48_spill]]  ;;  %v486_v50 = vmul.f32 %v4359_v34, %v6351_v32  ;;  %1787 = vmatpush.msrb.mxu3 %v1562_v6  ;;  %v538_v6 = vmul.f32 %v4359_v34, %v536_v17 }
 0x14b   : > { %v6181_v5 = vstv %s4580_s7  ;;  %s6342_s5 = sld [smem:[#allocation49_spill]] }
 0x14c   : > { %v4615_v1 = vmax.f32 %v448_v11, 0.0  ;;  %v6343_v22 = vstv %s6336_s29  ;;  %s6344_s10 = sld [smem:[#allocation50_spill]]  ;;  %v1458_v61 = vmul.f32 %v6181_v5, %v3667_v56 }
 0x14d   : > { %v460_v20 = vmul.f32 %v4359_v34, %v6343_v22  ;;  %s6345_s26 = sld [smem:[#allocation51_spill]]  ;;  %v6346_v41 = vstv %s6337_s2 }
 0x14e   : > { %v466_v11 = vmul.f32 %v4389_v26, %v6346_v41  ;;  %v6348_v45 = vstv %s6339_s4  ;;  %s6350_s29 = sld [smem:[#allocation53_spill]] }
 0x14f   : > { %v462_v14 = vadd.f32 %v460_v20, %v454_v21  ;;  %v472_v27 = vmul.f32 %v4407_v35, %v6348_v45  ;;  %v6349_v8 = vstv %s6340_s17  ;;  %v6354_v45 = vstv %s4015_s27  ;;  %s6356_s2 = sld [smem:[#allocation54_spill]] }
 0x150   : > { %v480_v22 = vmul.f32 %v4340_v24, %v6349_v8  ;;  %v6352_v56 = vstv %s6341_s30  ;;  %v506_v5 = vmul.f32 %v4340_v24, %v6354_v45  ;;  %s6358_s13 = sld [smem:[#allocation55_spill]] }
 0x151   : > { %v492_v21 = vmul.f32 %v4389_v26, %v6352_v56  ;;  %v468_v43 = vadd.f32 %v466_v11, %v462_v14  ;;  %v6353_v20 = vstv %s6342_s5  ;;  %v524_v14 = vmul.f32 %v4407_v35, %v522_v9  ;;  %s6359_s5 = sld [smem:[#allocation56_spill]] }
 0x152   : > { %v498_v41 = vmul.f32 %v4407_v35, %v6353_v20  ;;  %v6355_v8 = vstv %s6344_s10  ;;  %v488_v55 = vadd.f32 %v486_v50, %v480_v22  ;;  %v6361_v22 = vstv %s4059_s9  ;;  %s6364_s24 = sld [smem:[#allocation57_spill]] }
 0x153   : > { %v512_v58 = vmul.f32 %v4359_v34, %v6355_v8  ;;  %v6357_v32 = vstv %s6345_s26  ;;  %v474_v11 = vadd.f32 %v472_v27, %v468_v43  ;;  %v1454_v8 = vadd.f32 %v1452_v51, %v1448_v63  ;;  %s6366_s9 = sld [smem:[#allocation58_spill]] }
 0x154   : > { %v518_v33 = vmul.f32 %v4389_v26, %v6357_v32  ;;  %v6360_v20 = vstv %s6350_s29  ;;  %v494_v16 = vadd.f32 %v492_v21, %v488_v55  ;;  %v544_v57 = vmul.f32 %v4389_v26, %v6361_v22  ;;  %s6369_s27 = sld [smem:[#allocation59_spill]] }
 0x155   : > { %v514_v56 = vadd.f32 %v512_v58, %v506_v5  ;;  %v532_v45 = vmul.f32 %v4340_v24, %v6360_v20  ;;  %v550_v50 = vmul.f32 %v4407_v35, %v548_v7  ;;  %v4668_v9 = vmax.f32 %v474_v11, 0.0  ;;  %s6371_s16 = sld [smem:[#allocation61_spill]] }
 0x156   : > { %v6362_v24 = vstv %s6356_s2  ;;  %v1460_v58 = vadd.f32 %v1458_v61, %v1454_v8  ;;  %v500_v17 = vadd.f32 %v498_v41, %v494_v16  ;;  %v6363_v34 = vstv %s6358_s13  ;;  %s6375_s6 = sld [smem:[#allocation62_spill]] }
 0x157   : > { %v520_v27 = vadd.f32 %v518_v33, %v514_v56  ;;  %v540_v5 = vadd.f32 %v538_v6, %v532_v45  ;;  %v558_v43 = vmul.f32 %v6362_v24, %v4439_v19  ;;  %v564_v51 = vmul.f32 %v6363_v34, %v4502_v40  ;;  %s6381_s26 = sld [smem:[#allocation67_spill]] }
 0x158   : > { %v6365_v26 = vstv %s6359_s5  ;;  %v576_v33 = vmul.f32 %v574_v23, %v4615_v1  ;;  %v1462_v63 = vmax.f32 %v1460_v58, 0.0  ;;  %v4682_v55 = vmax.f32 %v500_v17, 0.0  ;;  %s6388_s30 = sld [smem:[#allocation71_spill]] }
 0x159   : > { %v570_v21 = vmul.f32 %v6365_v26, %v4565_v59  ;;  %v526_v7 = vadd.f32 %v524_v14, %v520_v27  ;;  %v546_v35 = vadd.f32 %v544_v57, %v540_v5  ;;  %v566_v61 = vadd.f32 %v564_v51, %v558_v43  ;;  %s6392_s20 = sld [smem:[#allocation72_spill]] }
 0x15a   : > { %v658_v41 = vmul.f32 %v656_v2, %v4439_v19  ;;  %v6368_v14 = vstv %s4153_s19  ;;  %v6370_v23 = vstv %s4157_s15  ;;  %1729 = vmatpush.msrb.mxu1 %v1462_v63  ;;  %v6373_v6 = vstv %s6364_s24  ;;  %s6379_s15 = sld [smem:[#allocation65_spill]] }
 0x15b   : > { %v4687_v32 = vmax.f32 %v526_v7, 0.0  ;;  %v552_v11 = vadd.f32 %v550_v50, %v546_v35  ;;  %v664_v56 = vmul.f32 %v6368_v14, %v4502_v40  ;;  %v670_v20 = vmul.f32 %v6370_v23, %v4565_v59  ;;  %s6394_s4 = sld [smem:[#allocation73_spill]] }
 0x15c   : > { %v572_v45 = vadd.f32 %v570_v21, %v566_v61  ;;  %v582_v8 = vmul.f32 %v6373_v6, %v4668_v9  ;;  %v6374_v2 = vstv %s4119_s1  ;;  %v6376_v22 = vstv %s4168_s12  ;;  %s6384_s1 = sld [smem:[#allocation69_spill]] }
 0x15d   : > { %v588_v16 = vmul.f32 %v6374_v2, %v4682_v55  ;;  %v676_v57 = vmul.f32 %v6376_v22, %v4615_v1  ;;  %v4704_v50 = vmax.f32 %v552_v11, 0.0  ;;  %v6378_v27 = vstv %s6366_s9  ;;  %s6386_s12 = sld [smem:[#allocation68_spill]] }
 0x15e   : > { %v594_v5 = vmul.f32 %v6378_v27, %v4687_v32  ;;  %v666_v24 = vadd.f32 %v664_v56, %v658_v41  ;;  %v682_v43 = vmul.f32 %v680_v53, %v4668_v9  ;;  %v578_v58 = vadd.f32 %v576_v33, %v572_v45  ;;  %s6397_s10 = sld [smem:[#allocation74_spill]] }
 0x15f   : > { %v6382_v17 = vstv %s4185_s11  ;;  %v1465_v51 = vmul.f32 %v1464_v44, %v3467_v47  ;;  %v1471_v26 = vmul.f32 %v1470_v39, %v3506_v13  ;;  %v6383_v21 = vstv %s6369_s27  ;;  %s6399_s29 = sld [smem:[#allocation31_spill]] }
 0x160   : > { %v688_v34 = vmul.f32 %v6382_v17, %v4682_v55  ;;  %v600_v7 = vmul.f32 %v6383_v21, %v4704_v50  ;;  %v672_v35 = vadd.f32 %v670_v20, %v666_v24  ;;  %v6385_v63 = vstv %s6371_s16  ;;  %s6401_s2 = sld [smem:[#allocation75_spill]] }
 0x161   : > { %v694_v53 = vmul.f32 %v6385_v63, %v4687_v32  ;;  %v1477_v33 = vmul.f32 %v1476_v60, %v3564_v49  ;;  %v584_v61 = vadd.f32 %v582_v8, %v578_v58  ;;  %v6389_v44 = vstv %s6375_s6  ;;  %s6402_s13 = sld [smem:[#allocation76_spill]] }
 0x162   : > { %v700_v41 = vmul.f32 %v6389_v44, %v4704_v50  ;;  %v1473_v11 = vadd.f32 %v1471_v26, %v1465_v51  ;;  %v1483_v39 = vmul.f32 %v1482_v38, %v3630_v10  ;;  %v678_v14 = vadd.f32 %v676_v57, %v672_v35  ;;  %s6407_s5 = sld [smem:[#allocation32_spill]] }
 0x163   : > { %v6391_v56 = vstv %s6379_s15  ;;  %v1495_v20 = vmul.f32 %v1494_v52, %v3757_v0  ;;  %v6393_v60 = vstv %s6381_s26  ;;  %v590_v6 = vadd.f32 %v588_v16, %v584_v61  ;;  %s6408_s24 = sld [smem:[#allocation78_spill]] }
 0x164   : > { %v1489_v23 = vmul.f32 %v6391_v56, %v3699_v28  ;;  %v1501_v45 = vmul.f32 %v6393_v60, %v3802_v42  ;;  %v1479_v8 = vadd.f32 %v1477_v33, %v1473_v11  ;;  %v6395_v2 = vstv %s4270_s14  ;;  %s6406_s14 = sld [smem:[#allocation77_spill]] }
 0x165   : > { %v608_v22 = vmul.f32 %v6395_v2, %v4439_v19  ;;  %v6396_v38 = vstv %s6384_s1  ;;  %v684_v27 = vadd.f32 %v682_v43, %v678_v14  ;;  %v6398_v24 = vstv %s6386_s12  ;;  %s4784_s9 = sld [smem:[#allocation7 + $0x200]] }
 0x166   : > { %v614_v57 = vmul.f32 %v6396_v38, %v4502_v40  ;;  %v1507_v58 = vmul.f32 %v6398_v24, %v3823_v48  ;;  %v620_v52 = vmul.f32 %v618_v36, %v4565_v59  ;;  %v6400_v17 = vstv %s6388_s30  ;;  %s6414_s21 = sld [smem:[#allocation33_spill]] }
 0x167   : > { %v626_v16 = vmul.f32 %v6400_v17, %v4615_v1  ;;  %v596_v51 = vadd.f32 %v594_v5, %v590_v6  ;;  %v1485_v26 = vadd.f32 %v1483_v39, %v1479_v8  ;;  %v632_v35 = vmul.f32 %v630_v54, %v4668_v9  ;;  %s6415_s27 = sld [smem:[#allocation80_spill]] }
 0x168   : > { %v616_v21 = vadd.f32 %v614_v57, %v608_v22  ;;  %v690_v63 = vadd.f32 %v688_v34, %v684_v27  ;;  %v6403_v43 = vstv %s6392_s20  ;;  %v6404_v61 = vstv %s4318_s25  ;;  %s6413_s25 = sld [smem:[#allocation79_spill]] }
 0x169   : > { %v638_v33 = vmul.f32 %v6403_v43, %v4682_v55  ;;  %v644_v44 = vmul.f32 %v6404_v61, %v4687_v32  ;;  %v6405_v36 = vstv %s6394_s4  ;;  %v602_v14 = vadd.f32 %v600_v7, %v596_v51  ;;  %s6416_s16 = sld [smem:[#allocation34_spill]] }
 0x16a   : > { %v708_v11 = vmul.f32 %v6405_v36, %v4439_v19  ;;  %v1491_v56 = vadd.f32 %v1489_v23, %v1485_v26  ;;  %v622_v5 = vadd.f32 %v620_v52, %v616_v21  ;;  %v6409_v39 = vstv %s6397_s10  ;;  %s4786_s17 = sld [smem:[#allocation7 + $0x201]] }
 0x16b   : > { %v714_v60 = vmul.f32 %v6409_v39, %v4502_v40  ;;  %v696_v54 = vadd.f32 %v694_v53, %v690_v63  ;;  %v6410_v34 = vstv %s6399_s29  ;;  %v6411_v8 = vstv %s6401_s2  ;;  %s6420_s6 = sld [smem:[#allocation81_spill]] }
 0x16c   : > { %v650_v6 = vmul.f32 %v6410_v34, %v4704_v50  ;;  %v720_v2 = vmul.f32 %v6411_v8, %v4565_v59  ;;  %v6412_v22 = vstv %s6402_s13  ;;  %v604_v7 = vmax.f32 %v602_v14, 0.0  ;;  %s4797_s19 = sld [smem:[#allocation7 + $0x202]] }
 0x16d   : > { %v726_v38 = vmul.f32 %v6412_v22, %v4615_v1  ;;  %v1497_v23 = vadd.f32 %v1495_v20, %v1491_v56  ;;  %v628_v57 = vadd.f32 %v626_v16, %v622_v5  ;;  %v716_v27 = vadd.f32 %v714_v60, %v708_v11  ;;  %s6422_s15 = sld [smem:[#allocation35_spill]] }
 0x16e   : > { %v702_v53 = vadd.f32 %v700_v41, %v696_v54  ;;  %v6417_v24 = vstv %s6406_s14  ;;  %v6418_v17 = vstv %s6407_s5  ;;  %v6419_v26 = vstv %s6408_s24  ;;  %2764 = vmatmul.msk.f32.gmra.mxu0 %vm1563_vm0, %v604_v7  ;;  %s6423_s3 = sld [smem:[#allocation36_spill]] }
 0x16f   : > { %v732_v52 = vmul.f32 %v6417_v24, %v4668_v9  ;;  %v738_v51 = vmul.f32 %v6418_v17, %v4682_v55  ;;  %v744_v21 = vmul.f32 %v6419_v26, %v4687_v32  ;;  %v1503_v20 = vadd.f32 %v1501_v45, %v1497_v23  ;;  %s4803_s26 = sld [smem:[#allocation7 + $0x203]] }
 0x170   : > { %v634_v16 = vadd.f32 %v632_v35, %v628_v57  ;;  %v722_v63 = vadd.f32 %v720_v2, %v716_v27  ;;  %v6421_v41 = vstv %s6413_s25  ;;  %v704_v61 = vmax.f32 %v702_v53, 0.0  ;;  %s6427_s1 = sld [smem:[#allocation83_spill]] }
 0x171   : > { %v1365_v43 = vmul.f32 %v6421_v41, %v3467_v47  ;;  %v6424_v36 = vstv %s6414_s21  ;;  %v6425_v14 = vstv %s6415_s27  ;;  %v6426_v5 = vstv %s6416_s16  ;;  %s4814_s12 = sld [smem:[#allocation7 + $0x204]] }
 0x172   : > { %v750_v11 = vmul.f32 %v6424_v36, %v4704_v50  ;;  %v1371_v56 = vmul.f32 %v6425_v14, %v3506_v13  ;;  %v1377_v45 = vmul.f32 %v6426_v5, %v3564_v49  ;;  %v1509_v35 = vadd.f32 %v1507_v58, %v1503_v20  ;;  %s6428_s11 = sld [smem:[#allocation82_spill]]  ;;  %2768 = vmatmul.msk.f32.gmra.mxu2 %vm1563_vm0, %v704_v61 }
 0x173   : > { %v640_v39 = vadd.f32 %v638_v33, %v634_v16  ;;  %v728_v60 = vadd.f32 %v726_v38, %v722_v63  ;;  %v6429_v54 = vstv %s6420_s6  ;;  %s6430_s30 = sld [smem:[#allocation37_spill]]  ;;  %v6432_v2 = vstv %s4433_s28 }
 0x174   : > { %v1383_v34 = vmul.f32 %v6429_v54, %v3630_v10  ;;  %s6431_s18 = sld [smem:[#allocation38_spill]]  ;;  %v1373_v8 = vadd.f32 %v1371_v56, %v1365_v43  ;;  %v1389_v22 = vmul.f32 %v6432_v2, %v3699_v28  ;;  %v6433_v7 = vstv %s6422_s15 }
 0x175   : > { %s4819_s20 = sld [smem:[#allocation7 + $0x205]]  ;;  %v1395_v23 = vmul.f32 %v6433_v7, %v3757_v0  ;;  %v6434_v58 = vstv %s6423_s3  ;;  %v1511_v38 = vmax.f32 %v1509_v35, 0.0  ;;  %v646_v57 = vadd.f32 %v644_v44, %v640_v39 }
 0x176   : > { %s6435_s4 = sld [smem:[#allocation84_spill]]  ;;  %v1401_v33 = vmul.f32 %v6434_v58, %v3802_v42  ;;  %v734_v27 = vadd.f32 %v732_v52, %v728_v60  ;;  %v6436_v53 = vstv %s6427_s1  ;;  %v1379_v17 = vadd.f32 %v1377_v45, %v1373_v8 }
 0x177   : > { %s4831_s10 = sld [smem:[#allocation7 + $0x206]]  ;;  %v1515_v24 = vmul.f32 %v6436_v53, %v3467_v47  ;;  %1759 = vmatpush.msrb.mxu2 %v1511_v38  ;;  %v652_v44 = vadd.f32 %v650_v6, %v646_v57  ;;  %v6444_v14 = vstv %s4496_s23  ;;  %v6447_v60 = vstv %s4513_s8 }
 0x178   : > { %s6437_s29 = sld [smem:[#allocation39_spill]]  ;;  %v6438_v26 = vstv %s6428_s11  ;;  %v740_v52 = vadd.f32 %v738_v51, %v734_v27  ;;  %v1539_v56 = vmul.f32 %v6444_v14, %v3699_v28  ;;  %v1385_v5 = vadd.f32 %v1383_v34, %v1379_v17 }
 0x179   : > { %s4836_s28 = sld [smem:[#allocation7 + $0x207]]  ;;  %v1407_v20 = vmul.f32 %v6438_v26, %v3823_v48  ;;  %v6439_v16 = vstv %s6430_s30  ;;  %v1551_v6 = vmul.f32 %v6447_v60, %v3802_v42  ;;  %v654_v51 = vmax.f32 %v652_v44, 0.0 }
 0x17a   : > { %v1521_v63 = vmul.f32 %v6439_v16, %v3506_v13  ;;  %v6440_v41 = vstv %s6431_s18  ;;  %s4847_s13 = sld [smem:[#allocation7 + $0x300]]  ;;  %v746_v54 = vadd.f32 %v744_v21, %v740_v52  ;;  %v1415_v8 = vmul.f32 %v1414_v15, %v3467_v47 }
 0x17b   : > { %v1527_v43 = vmul.f32 %v6440_v41, %v3564_v49  ;;  %s6443_s14 = sld [smem:[#allocation85_spill]]  ;;  %v1421_v34 = vmul.f32 %v1420_v31, %v3506_v13  ;;  %v1391_v2 = vadd.f32 %v1389_v22, %v1385_v5  ;;  %v1427_v57 = vmul.f32 %v1426_v3, %v3564_v49  ;;  %2766 = vmatmul.msk.f32.gmra.mxu1 %vm1563_vm0, %v654_v51 }
 0x17c   : > { %v6442_v61 = vstv %s6435_s4  ;;  %s4855_s24 = sld [smem:[#allocation7 + $0x301]]  ;;  %v1523_v45 = vadd.f32 %v1521_v63, %v1515_v24  ;;  %v752_v47 = vadd.f32 %v750_v11, %v746_v54  ;;  %v1433_v13 = vmul.f32 %v1432_v29, %v3630_v10 }
 0x17d   : > { %v1533_v36 = vmul.f32 %v6442_v61, %v3630_v10  ;;  %s6449_s21 = sld [smem:[#allocation42_spill]]  ;;  %v1423_v15 = vadd.f32 %v1421_v34, %v1415_v8  ;;  %v1397_v22 = vadd.f32 %v1395_v23, %v1391_v2  ;;  %v6455_v53 = vstv %s4576_s22 }
 0x17e   : > { %v6446_v35 = vstv %s6437_s29  ;;  %s4863_s27 = sld [smem:[#allocation7 + $0x302]]  ;;  %v1529_v7 = vadd.f32 %v1527_v43, %v1523_v45  ;;  %v1451_v11 = vmul.f32 %v6455_v53, %v3802_v42  ;;  %v754_v10 = vmax.f32 %v752_v47, 0.0 }
 0x17f   : > { %v1545_v39 = vmul.f32 %v6446_v35, %v3757_v0  ;;  %s6450_s23 = sld [smem:[#allocation87_spill]]  ;;  %v1429_v29 = vadd.f32 %v1427_v57, %v1423_v15  ;;  %v756_v24 = vstv %s4784_s9  ;;  %v762_v17 = vstv %s4786_s17 }
 0x180   : > { %s4871_s16 = sld [smem:[#allocation7 + $0x303]]  ;;  %v1535_v27 = vadd.f32 %v1533_v36, %v1529_v7  ;;  %v763_v42 = vmul.f32 %v762_v17, %v4046_v4  ;;  %2770 = vmatmul.msk.f32.gmra.mxu3 %vm1563_vm0, %v754_v10  ;;  %v768_v16 = vstv %s4797_s19  ;;  %v774_v63 = vstv %s4803_s26 }
 0x181   : > { %v6451_v58 = vstv %s6443_s14  ;;  %s4879_s8 = sld [smem:[#allocation7 + $0x304]]  ;;  %v1435_v26 = vadd.f32 %v1433_v13, %v1429_v29  ;;  %v780_v41 = vstv %s4814_s12  ;;  %v769_v52 = vmul.f32 %v768_v16, %v4061_v37 }
 0x182   : > { %v1557_v38 = vmul.f32 %v6451_v58, %v3823_v48  ;;  %s4888_s0 = sld [smem:[#allocation7 + $0x305]]  ;;  %v1541_v23 = vadd.f32 %v1539_v56, %v1535_v27  ;;  %v6456_v36 = vstv %s4580_s7  ;;  %v775_v56 = vmul.f32 %v774_v63, %v4087_v12 }
 0x183   : > { %v6452_v31 = vstv %s6449_s21  ;;  %s4896_s6 = sld [smem:[#allocation7 + $0x306]]  ;;  %v1457_v14 = vmul.f32 %v6456_v36, %v3823_v48  ;;  %v786_v5 = vstv %s4819_s20  ;;  %v792_v51 = vstv %s4831_s10 }
 0x184   : > { %v1439_v21 = vmul.f32 %v6452_v31, %v3699_v28  ;;  %s4900_s15 = sld [smem:[#allocation7 + $0x307]]  ;;  %v1403_v28 = vadd.f32 %v1401_v33, %v1397_v22  ;;  %v1547_v43 = vadd.f32 %v1545_v39, %v1541_v23  ;;  %v781_v39 = vmul.f32 %v780_v41, %v4096_v25 }
 0x185   : > { %v6454_v49 = vstv %s6450_s23  ;;  %s4908_s22 = sld [smem:[#allocation7 + $0x280]]  ;;  %v787_v60 = vmul.f32 %v786_v5, %v4131_v30  ;;  %v856_v54 = vstv %s4847_s13  ;;  %v793_v34 = vmul.f32 %v792_v51, %v4145_v18 }
 0x186   : > { %v1445_v3 = vmul.f32 %v6454_v49, %v3757_v0  ;;  %v757_v0 = vmul.f32 %v756_v24, %v4001_v62  ;;  %s4914_s3 = sld [smem:[#allocation7 + $0x281]]  ;;  %v1409_v33 = vadd.f32 %v1407_v20, %v1403_v28  ;;  %v1441_v61 = vadd.f32 %v1439_v21, %v1435_v26 }
 0x187   : > { %s4919_s1 = sld [smem:[#allocation7 + $0x282]]  ;;  %v1553_v45 = vadd.f32 %v1551_v6, %v1547_v43  ;;  %v798_v2 = vstv %s4836_s28  ;;  %v857_v58 = vmul.f32 %v856_v54, %v4001_v62  ;;  %v862_v57 = vstv %s4855_s24 }
 0x188   : > { %6453 = sst [smem:[#allocation43_spill]] %s4888_s0  ;;  %v765_v44 = vadd.f32 %v763_v42, %v757_v0  ;;  %v1411_v20 = vmax.f32 %v1409_v33, 0.0  ;;  %v1447_v48 = vadd.f32 %v1445_v3, %v1441_v61  ;;  %v868_v47 = vstv %s4863_s27 }
 0x189   : > { %s4928_s11 = sld [smem:[#allocation7 + $0x283]]  ;;  %v1559_v6 = vadd.f32 %v1557_v38, %v1553_v45  ;;  %v863_v13 = vmul.f32 %v862_v57, %v4046_v4  ;;  %v869_v31 = vmul.f32 %v868_v47, %v4061_v37  ;;  %v874_v22 = vstv %s4871_s16 }
 0x18a   : > { %v771_v35 = vadd.f32 %v769_v52, %v765_v44  ;;  %s4933_s30 = sld [smem:[#allocation7 + $0x284]]  ;;  %1701 = vmatpush.msrb.mxu0 %v1411_v20  ;;  %v1453_v7 = vadd.f32 %v1451_v11, %v1447_v48  ;;  %v880_v27 = vstv %s4879_s8  ;;  %v886_v49 = vstv %s4888_s0 }
 0x18b   : > { %s4940_s7 = sld [smem:[#allocation7 + $0x285]]  ;;  %v1561_v38 = vmax.f32 %v1559_v6, 0.0  ;;  %v799_v53 = vmul.f32 %v798_v2, %v4177_v46  ;;  %v865_v11 = vadd.f32 %v863_v13, %v857_v58  ;;  %v875_v10 = vmul.f32 %v874_v22, %v4087_v12 }
 0x18c   : > { %v777_v8 = vadd.f32 %v775_v56, %v771_v35  ;;  %s4946_s18 = sld [smem:[#allocation7 + $0x286]]  ;;  %v1459_v21 = vadd.f32 %v1457_v14, %v1453_v7  ;;  %v881_v28 = vmul.f32 %v880_v27, %v4096_v25  ;;  %v887_v23 = vmul.f32 %v886_v49, %v4131_v30 }
 0x18d   : > { %s4953_s4 = sld [smem:[#allocation7 + $0x287]]  ;;  %1788 = vmatpush.msrb.mxu3 %v1561_v38  ;;  %v871_v42 = vadd.f32 %v869_v31, %v865_v11  ;;  %v892_v26 = vstv %s4896_s6  ;;  %v898_v33 = vstv %s4900_s15  ;;  %v806_v43 = vstv %s4908_s22 }
 0x18e   : > { %v783_v15 = vadd.f32 %v781_v39, %v777_v8  ;;  %s4961_s29 = sld [smem:[#allocation7 + $0x380]]  ;;  %v1461_v29 = vmax.f32 %v1459_v21, 0.0  ;;  %v812_v44 = vstv %s4914_s3  ;;  %v818_v52 = vstv %s4919_s1 }
 0x18f   : > { %s4966_s2 = sld [smem:[#allocation7 + $0x381]]  ;;  %v824_v61 = vstv %s4928_s11  ;;  %v877_v14 = vadd.f32 %v875_v10, %v871_v42  ;;  %v807_v56 = vmul.f32 %v806_v43, %v4001_v62  ;;  %v813_v20 = vmul.f32 %v812_v44, %v4046_v4 }
 0x190   : > { %v789_v3 = vadd.f32 %v787_v60, %v783_v15  ;;  %s4974_s14 = sld [smem:[#allocation7 + $0x382]]  ;;  %1730 = vmatpush.msrb.mxu1 %v1461_v29  ;;  %v893_v45 = vmul.f32 %v892_v26, %v4145_v18  ;;  %v819_v35 = vmul.f32 %v818_v52, %v4061_v37  ;;  %v830_v39 = vstv %s4933_s30 }
 0x191   : > { %s4982_s5 = sld [smem:[#allocation7 + $0x383]]  ;;  %v836_v48 = vstv %s4940_s7  ;;  %v883_v6 = vadd.f32 %v881_v28, %v877_v14  ;;  %v815_v8 = vadd.f32 %v813_v20, %v807_v56  ;;  %v899_v7 = vmul.f32 %v898_v33, %v4177_v46 }
 0x192   : > { %v795_v0 = vadd.f32 %v793_v34, %v789_v3  ;;  %s4986_s25 = sld [smem:[#allocation7 + $0x384]]  ;;  %v825_v34 = vmul.f32 %v824_v61, %v4087_v12  ;;  %v831_v58 = vmul.f32 %v830_v39, %v4096_v25  ;;  %v837_v38 = vmul.f32 %v836_v48, %v4131_v30 }
 0x193   : > { %s4992_s21 = sld [smem:[#allocation7 + $0x385]]  ;;  %v889_v13 = vadd.f32 %v887_v23, %v883_v6  ;;  %v821_v31 = vadd.f32 %v819_v35, %v815_v8  ;;  %v842_v21 = vstv %s4946_s18  ;;  %v848_v3 = vstv %s4953_s4 }
 0x194   : > { %v801_v36 = vadd.f32 %v799_v53, %v795_v0  ;;  %s5000_s23 = sld [smem:[#allocation7 + $0x386]]  ;;  %v906_v15 = vstv %s4961_s29  ;;  %v758_v6 = vmul.f32 %v756_v24, %v4439_v19  ;;  %v770_v24 = vmul.f32 %v768_v16, %v4565_v59 }
 0x195   : > { %s5010_s0 = sld [smem:[#allocation7 + $0x387]]  ;;  %v907_v53 = vmul.f32 %v906_v15, %v4001_v62  ;;  %v912_v11 = vstv %s4966_s2  ;;  %v895_v28 = vadd.f32 %v893_v45, %v889_v13  ;;  %v827_v0 = vadd.f32 %v825_v34, %v821_v31 }
 0x196   : > { %v803_v60 = vmax.f32 %v801_v36, 0.0  ;;  %v918_v10 = vstv %s4974_s14  ;;  %v913_v42 = vmul.f32 %v912_v11, %v4046_v4  ;;  %v843_v36 = vmul.f32 %v842_v21, %v4145_v18  ;;  %s5168_s17 = sld [smem:[#allocation12 + $0x4]] }
 0x197   : > { %v924_v29 = vstv %s4982_s5  ;;  %v919_v23 = vmul.f32 %v918_v10, %v4061_v37  ;;  %v901_v20 = vadd.f32 %v899_v7, %v895_v28  ;;  %v833_v45 = vadd.f32 %v831_v58, %v827_v0  ;;  %s5170_s19 = sld [smem:[#allocation12 + $0x84]] }
 0x198   : > { %2771 = vmatmul.msk.f32.vlgmr.msrb.gmra.mxu0 %vm1563_vm0, %v803_v60  ;;  %v925_v62 = vmul.f32 %v924_v29, %v4087_v12  ;;  %v930_v14 = vstv %s4986_s25  ;;  %v915_v35 = vadd.f32 %v913_v42, %v907_v53  ;;  %v849_v37 = vmul.f32 %v848_v3, %v4177_v46  ;;  %s5172_s26 = sld [smem:[#allocation12 + $0x104]] }
 0x199   : > { %v936_v56 = vstv %s4992_s21  ;;  %v903_v12 = vmax.f32 %v901_v20, 0.0  ;;  %v839_v8 = vadd.f32 %v837_v38, %v833_v45  ;;  %v931_v7 = vmul.f32 %v930_v14, %v4096_v25  ;;  %s5174_s12 = sld [smem:[#allocation12 + $0x184]] }
 0x19a   : > { %v942_v4 = vstv %s5000_s23  ;;  %v921_v34 = vadd.f32 %v919_v23, %v915_v35  ;;  %v937_v58 = vmul.f32 %v936_v56, %v4131_v30  ;;  %v764_v31 = vmul.f32 %v762_v17, %v4502_v40  ;;  %s5176_s20 = sld [smem:[#allocation12 + $0x204]] }
 0x19b   : > { %v948_v60 = vstv %s5010_s0  ;;  %v943_v13 = vmul.f32 %v942_v4, %v4145_v18  ;;  %2775 = vmatmul.msk.f32.vlgmr.msrb.gmra.mxu2 %vm1563_vm0, %v903_v12  ;;  %v845_v38 = vadd.f32 %v843_v36, %v839_v8  ;;  %v776_v30 = vmul.f32 %v774_v63, %v4615_v1  ;;  %s5178_s10 = sld [smem:[#allocation12 + $0x284]] }
 0x19c   : > { %v927_v25 = vadd.f32 %v925_v62, %v921_v34  ;;  %v949_v53 = vmul.f32 %v948_v60, %v4177_v46  ;;  %v766_v18 = vadd.f32 %v764_v31, %v758_v6  ;;  %v782_v17 = vmul.f32 %v780_v41, %v4668_v9  ;;  %s5180_s28 = sld [smem:[#allocation12 + $0x304]] }
 0x19d   : > { %v858_v16 = vmul.f32 %v856_v54, %v4439_v19  ;;  %v864_v28 = vmul.f32 %v862_v57, %v4502_v40  ;;  %v851_v0 = vadd.f32 %v849_v37, %v845_v38  ;;  %v788_v46 = vmul.f32 %v786_v5, %v4682_v55  ;;  %s5182_s13 = sld [smem:[#allocation12 + $0x384]] }
 0x19e   : > { %v933_v42 = vadd.f32 %v931_v7, %v927_v25  ;;  %v870_v63 = vmul.f32 %v868_v47, %v4565_v59  ;;  %v772_v23 = vadd.f32 %v770_v24, %v766_v18  ;;  %v794_v41 = vmul.f32 %v792_v51, %v4687_v32  ;;  %s5184_s24 = sld [smem:[#allocation12 + $0x5]] }
 0x19f   : > { %v866_v54 = vadd.f32 %v864_v28, %v858_v16  ;;  %v876_v57 = vmul.f32 %v874_v22, %v4615_v1  ;;  %v853_v36 = vmax.f32 %v851_v0, 0.0  ;;  %v800_v5 = vmul.f32 %v798_v2, %v4704_v50  ;;  %s5186_s27 = sld [smem:[#allocation12 + $0x85]] }
 0x1a0   : > { %v939_v62 = vadd.f32 %v937_v58, %v933_v42  ;;  %v882_v47 = vmul.f32 %v880_v27, %v4668_v9  ;;  %v778_v20 = vadd.f32 %v776_v30, %v772_v23  ;;  %v808_v51 = vmul.f32 %v806_v43, %v4439_v19  ;;  %s5188_s16 = sld [smem:[#allocation12 + $0x105]] }
 0x1a1   : > { %v872_v45 = vadd.f32 %v870_v63, %v866_v54  ;;  %v814_v22 = vmul.f32 %v812_v44, %v4502_v40  ;;  %2773 = vmatmul.msk.f32.vlgmr.msrb.gmra.mxu1 %vm1563_vm0, %v853_v36  ;;  %v888_v2 = vmul.f32 %v886_v49, %v4682_v55  ;;  %v894_v27 = vmul.f32 %v892_v26, %v4687_v32  ;;  %s5190_s8 = sld [smem:[#allocation12 + $0x185]] }
 0x1a2   : > { %v945_v35 = vadd.f32 %v943_v13, %v939_v62  ;;  %v820_v37 = vmul.f32 %v818_v52, %v4565_v59  ;;  %v784_v43 = vadd.f32 %v782_v17, %v778_v20  ;;  %v826_v44 = vmul.f32 %v824_v61, %v4615_v1  ;;  %s5192_s0 = sld [smem:[#allocation12 + $0x205]] }
 0x1a3   : > { %v878_v6 = vadd.f32 %v876_v57, %v872_v45  ;;  %v816_v12 = vadd.f32 %v814_v22, %v808_v51  ;;  %v900_v34 = vmul.f32 %v898_v33, %v4704_v50  ;;  %v832_v49 = vmul.f32 %v830_v39, %v4668_v9  ;;  %6458 = sst [smem:[#allocation44_spill]] %s5182_s13  ;;  %v1587_v57 = vpop.f32.mrf.mxu0 }
 0x1a4   : > { %v951_v8 = vadd.f32 %v949_v53, %v945_v35  ;;  %v908_v26 = vmul.f32 %v906_v15, %v4439_v19  ;;  %v790_v52 = vadd.f32 %v788_v46, %v784_v43  ;;  %v914_v13 = vmul.f32 %v912_v11, %v4502_v40  ;;  %s5194_s6 = sld [smem:[#allocation12 + $0x285]] }
 0x1a5   : > { %v884_v7 = vadd.f32 %v882_v47, %v878_v6  ;;  %v822_v58 = vadd.f32 %v820_v37, %v816_v12  ;;  %v838_v33 = vmul.f32 %v836_v48, %v4682_v55  ;;  %v920_v31 = vmul.f32 %v918_v10, %v4565_v59  ;;  %s5196_s15 = sld [smem:[#allocation12 + $0x305]] }
 0x1a6   : > { %v953_v61 = vmax.f32 %v951_v8, 0.0  ;;  %v926_v39 = vmul.f32 %v924_v29, %v4615_v1  ;;  %v796_v24 = vadd.f32 %v794_v41, %v790_v52  ;;  %v916_v38 = vadd.f32 %v914_v13, %v908_v26  ;;  %s5198_s22 = sld [smem:[#allocation12 + $0x385]]  ;;  %v1645_v26 = vpop.f32.mrf.mxu2 }
 0x1a7   : > { %v890_v19 = vadd.f32 %v888_v2, %v884_v7  ;;  %v828_v15 = vadd.f32 %v826_v44, %v822_v58  ;;  %v844_v40 = vmul.f32 %v842_v21, %v4687_v32  ;;  %v932_v11 = vmul.f32 %v930_v14, %v4668_v9  ;;  %s5200_s3 = sld [smem:[#allocation12 + $0x6]] }
 0x1a8   : > { %2777 = vmatmul.msk.f32.vlgmr.msrb.gmra.mxu3 %vm1563_vm0, %v953_v61  ;;  %v802_v48 = vadd.f32 %v800_v5, %v796_v24  ;;  %v922_v59 = vadd.f32 %v920_v31, %v916_v38  ;;  %v850_v1 = vmul.f32 %v848_v3, %v4704_v50  ;;  %v938_v10 = vmul.f32 %v936_v56, %v4682_v55  ;;  %s5202_s1 = sld [smem:[#allocation12 + $0x86]] }
 0x1a9   : > { %v896_v25 = vadd.f32 %v894_v27, %v890_v19  ;;  %v834_v53 = vadd.f32 %v832_v49, %v828_v15  ;;  %v944_v14 = vmul.f32 %v942_v4, %v4687_v32  ;;  %v950_v3 = vmul.f32 %v948_v60, %v4704_v50  ;;  %s5204_s11 = sld [smem:[#allocation12 + $0x106]]  ;;  %v1616_v27 = vpop.f32.mrf.mxu1 }
 0x1aa   : > { %v804_v29 = vmax.f32 %v802_v48, 0.0  ;;  %v928_v17 = vadd.f32 %v926_v39, %v922_v59  ;;  %s5206_s30 = sld [smem:[#allocation12 + $0x186]]  ;;  %v1821_v32 = vstv %s5168_s17  ;;  %v1897_v50 = vstv %s5170_s19 }
 0x1ab   : > { %v902_v30 = vadd.f32 %v900_v34, %v896_v25  ;;  %v840_v18 = vadd.f32 %v838_v33, %v834_v53  ;;  %s5208_s7 = sld [smem:[#allocation12 + $0x206]]  ;;  %v1974_v4 = vstv %s5172_s26  ;;  %v2051_v60 = vstv %s5174_s12 }
 0x1ac   : > { %2772 = vmatmul.msk.f32.gmra.mxu0 %vm1563_vm0, %v804_v29  ;;  %v934_v9 = vadd.f32 %v932_v11, %v928_v17  ;;  %s5210_s18 = sld [smem:[#allocation12 + $0x286]]  ;;  %v2128_v63 = vstv %s5176_s20  ;;  %v2205_v23 = vstv %s5178_s10  ;;  %v2282_v41 = vstv %s5180_s28 }
 0x1ad   : > { %v904_v21 = vmax.f32 %v902_v30, 0.0  ;;  %v846_v16 = vadd.f32 %v844_v40, %v840_v18  ;;  %s5212_s4 = sld [smem:[#allocation12 + $0x306]]  ;;  %v2359_v54 = vstv %s5182_s13  ;;  %v1827_v36 = vstv %s5184_s24 }
 0x1ae   : > { %v940_v0 = vadd.f32 %v938_v10, %v934_v9  ;;  %s5218_s29 = sld [smem:[#allocation12 + $0x386]]  ;;  %v1903_v62 = vstv %s5186_s27  ;;  %v1822_v5 = vmul.f32 %v1821_v32, %v1587_v57  ;;  %v1898_v47 = vmul.f32 %v1897_v50, %v1587_v57 }
 0x1af   : > { %2776 = vmatmul.msk.f32.gmra.mxu2 %vm1563_vm0, %v904_v21  ;;  %v852_v28 = vadd.f32 %v850_v1, %v846_v16  ;;  %6459 = sst [smem:[#allocation45_spill]] %s5204_s11  ;;  %v1975_v20 = vmul.f32 %v1974_v4, %v1587_v57  ;;  %v2052_v45 = vmul.f32 %v2051_v60, %v1587_v57  ;;  %v2129_v51 = vmul.f32 %v2128_v63, %v1587_v57 }
 0x1b0   : > { %v946_v56 = vadd.f32 %v944_v14, %v940_v0  ;;  %s5234_s2 = sld [smem:[#allocation12 + $0x7]]  ;;  %v2206_v22 = vmul.f32 %v2205_v23, %v1587_v57  ;;  %v2283_v35 = vmul.f32 %v2282_v41, %v1587_v57  ;;  %v2360_v2 = vmul.f32 %v2359_v54, %v1587_v57 }
 0x1b1   : > { %v854_v55 = vmax.f32 %v852_v28, 0.0  ;;  %s5244_s14 = sld [smem:[#allocation12 + $0x87]]  ;;  %v1980_v37 = vstv %s5188_s16  ;;  %v2057_v43 = vstv %s5190_s8  ;;  %v2134_v6 = vstv %s5192_s0 }
 0x1b2   : > { %v952_v42 = vadd.f32 %v950_v3, %v946_v56  ;;  %6460 = sst [smem:[#allocation46_spill]] %s5210_s18  ;;  %v2211_v12 = vstv %s5194_s6  ;;  %v2288_v44 = vstv %s5196_s15  ;;  %v2365_v8 = vstv %s5198_s22  ;;  %v1674_v56 = vpop.f32.mrf.mxu3 }
 0x1b3   : > { %2774 = vmatmul.msk.f32.gmra.mxu1 %vm1563_vm0, %v854_v55  ;;  %s5250_s5 = sld [smem:[#allocation12 + $0x107]]  ;;  %v1833_v34 = vstv %s5200_s3  ;;  %v1909_v49 = vstv %s5202_s1  ;;  %v1986_v52 = vstv %s5204_s11  ;;  %v2063_v7 = vstv %s5206_s30 }
 0x1b4   : > { %v954_v46 = vmax.f32 %v952_v42, 0.0  ;;  %6461 = sst [smem:[#allocation47_spill]] %s5218_s29  ;;  %v2140_v58 = vstv %s5208_s7  ;;  %v2217_v13 = vstv %s5210_s18  ;;  %v1828_v61 = vmul.f32 %v1827_v36, %v1616_v27 }
 0x1b5   : > { %s5256_s25 = sld [smem:[#allocation12 + $0x187]]  ;;  %v1904_v33 = vmul.f32 %v1903_v62, %v1616_v27  ;;  %v2294_v31 = vstv %s5212_s4  ;;  %v2371_v39 = vstv %s5218_s29  ;;  %v1981_v24 = vmul.f32 %v1980_v37, %v1616_v27 }
 0x1b6   : > { %2778 = vmatmul.msk.f32.gmra.mxu3 %vm1563_vm0, %v954_v46  ;;  %s5262_s21 = sld [smem:[#allocation12 + $0x207]]  ;;  %v2058_v19 = vmul.f32 %v2057_v43, %v1616_v27  ;;  %v2135_v15 = vmul.f32 %v2134_v6, %v1616_v27  ;;  %v2212_v38 = vmul.f32 %v2211_v12, %v1616_v27  ;;  %v2289_v40 = vmul.f32 %v2288_v44, %v1616_v27 }
 0x1b7   : > { %s5270_s23 = sld [smem:[#allocation12 + $0x287]]  ;;  %v2366_v11 = vmul.f32 %v2365_v8, %v1616_v27  ;;  %v1834_v48 = vmul.f32 %v1833_v34, %v1645_v26  ;;  %v1910_v25 = vmul.f32 %v1909_v49, %v1645_v26  ;;  %v1987_v53 = vmul.f32 %v1986_v52, %v1645_v26 }
 0x1b8   : > { %s5288_s9 = sld [smem:[#allocation12 + $0x307]]  ;;  %v2064_v59 = vmul.f32 %v2063_v7, %v1645_v26  ;;  %v2141_v1 = vmul.f32 %v2140_v58, %v1645_v26  ;;  %v2218_v10 = vmul.f32 %v2217_v13, %v1645_v26  ;;  %v1830_v29 = vadd.f32 %v1828_v61, %v1822_v5 }
 0x1b9   : > { %s5298_s13 = sld [smem:[#allocation12 + $0x387]]  ;;  %v1906_v30 = vadd.f32 %v1904_v33, %v1898_v47  ;;  %v2295_v18 = vmul.f32 %v2294_v31, %v1645_v26  ;;  %v2372_v17 = vmul.f32 %v2371_v39, %v1645_v26  ;;  %v1983_v21 = vadd.f32 %v1981_v24, %v1975_v20 }
 0x1ba   : > { %s5304_s11 = sld [smem:[#allocation12 + $0x8]]  ;;  %v2060_v16 = vadd.f32 %v2058_v19, %v2052_v45  ;;  %v2137_v9 = vadd.f32 %v2135_v15, %v2129_v51  ;;  %v2214_v14 = vadd.f32 %v2212_v38, %v2206_v22  ;;  %v2291_v28 = vadd.f32 %v2289_v40, %v2283_v35 }
 0x1bb   : > { %s5306_s18 = sld [smem:[#allocation12 + $0x88]]  ;;  %v2368_v0 = vadd.f32 %v2366_v11, %v2360_v2  ;;  %v5308_v3 = vadd.f32 %v1834_v48, %v1830_v29  ;;  %v5310_v55 = vadd.f32 %v1910_v25, %v1906_v30  ;;  %v1839_v42 = vstv %s5234_s2 }
 0x1bc   : > { %s5312_s29 = sld [smem:[#allocation12 + $0x108]]  ;;  %v1915_v46 = vstv %s5244_s14  ;;  %v1992_v57 = vstv %s5250_s5  ;;  %v2069_v5 = vstv %s5256_s25  ;;  %v5320_v47 = vadd.f32 %v1987_v53, %v1983_v21 }
 0x1bd   : > { %v5322_v20 = vadd.f32 %v2064_v59, %v2060_v16  ;;  %v2146_v45 = vstv %s5262_s21  ;;  %v2223_v51 = vstv %s5270_s23  ;;  %v5328_v22 = vadd.f32 %v2141_v1, %v2137_v9  ;;  %s5374_s17 = sld [smem:[#allocation12 + $0x89]] }
 0x1be   : > { %v5330_v35 = vadd.f32 %v2218_v10, %v2214_v14  ;;  %v5332_v2 = vadd.f32 %v2295_v18, %v2291_v28  ;;  %v5334_v27 = vadd.f32 %v2372_v17, %v2368_v0  ;;  %v1840_v26 = vmul.f32 %v1839_v42, %v1674_v56  ;;  %s5384_s26 = sld [smem:[#allocation12 + $0x109]] }
 0x1bf   : > { %v1916_v61 = vmul.f32 %v1915_v46, %v1674_v56  ;;  %v1993_v33 = vmul.f32 %v1992_v57, %v1674_v56  ;;  %v2070_v24 = vmul.f32 %v2069_v5, %v1674_v56  ;;  %v2147_v38 = vmul.f32 %v2146_v45, %v1674_v56  ;;  %s5394_s12 = sld [smem:[#allocation12 + $0x189]] }
 0x1c0   : > { %6462 = sst [smem:[#allocation48_spill]] %s5304_s11  ;;  %v2224_v40 = vmul.f32 %v2223_v51, %v1674_v56  ;;  %v2300_v11 = vstv %s5288_s9  ;;  %v2377_v48 = vstv %s5298_s13 }
 0x1c1   : > { %6463 = sst [smem:[#allocation49_spill]] %s5306_s18 }
 0x1c2   : > { %6464 = sst [smem:[#allocation50_spill]] %s5312_s29 }
 0x1c3   : > { %s5318_s11 = sld [smem:[#allocation12 + $0x188]] }
 0x1c4   : > { %s5326_s29 = sld [smem:[#allocation12 + $0x208]] }
 0x1c5   : > { %s5364_s18 = sld [smem:[#allocation12 + $0x9]] }
 0x1c6   : > { %s5404_s10 = sld [smem:[#allocation12 + $0x209]] }
 0x1c7   : > { %s5410_s24 = sld [smem:[#allocation12 + $0x289]] }
 0x1c8   : > { %s5412_s27 = sld [smem:[#allocation12 + $0x309]] }
 0x1c9   : > { %6465 = sst [smem:[#allocation51_spill]] %s5318_s11 }
 0x1ca   : > { %6466 = sst [smem:[#allocation52_spill]] %s5326_s29 }
 0x1cb   : > { %s5336_s11 = sld [smem:[#allocation12 + $0x288]] }
 0x1cc   : > { %s5346_s29 = sld [smem:[#allocation12 + $0x308]] }
 0x1cd   : > { %s5418_s16 = sld [smem:[#allocation12 + $0x389]] }
 0x1ce   : > { %s5430_s8 = sld [smem:[#allocation12 + $0xa]] }
 0x1cf   : > { %s6474_s0 = sld [smem:[#allocation48_spill]] }
 0x1d0   : > { %s5444_s6 = sld [smem:[#allocation12 + $0x8a]] }
 0x1d1   : > { %6467 = sst [smem:[#allocation53_spill]] %s5336_s11 }
 0x1d2   : > { %6468 = sst [smem:[#allocation54_spill]] %s5346_s29 }
 0x1d3   : > { %s5354_s11 = sld [smem:[#allocation12 + $0x388]] }
 0x1d4   : > { %s6475_s15 = sld [smem:[#allocation49_spill]] }
 0x1d5   : > { %s5456_s22 = sld [smem:[#allocation12 + $0x10a]] }
 0x1d6   : > { %s6476_s3 = sld [smem:[#allocation50_spill]] }
 0x1d7   : > { %s6477_s1 = sld [smem:[#allocation51_spill]] }
 0x1d8   : > { %s5466_s30 = sld [smem:[#allocation12 + $0x18a]] }
 0x1d9   : > { %6469 = sst [smem:[#allocation55_spill]] %s5354_s11 }
 0x1da   : > { %s6478_s7 = sld [smem:[#allocation52_spill]] }
 0x1db   : > { %s5473_s4 = sld [smem:[#allocation12 + $0x20a]] }
 0x1dc   : > { %s6479_s29 = sld [smem:[#allocation53_spill]] }
 0x1dd   : > { %s5476_s2 = sld [smem:[#allocation12 + $0x28a]] }
 0x1de   : > { %s6480_s14 = sld [smem:[#allocation54_spill]] }
 0x1df   : > { %s5480_s13 = sld [smem:[#allocation12 + $0x30a]] }
 0x1e0   : > { %s5489_s5 = sld [smem:[#allocation12]] }
 0x1e1   : > { %s5496_s25 = sld [smem:[#allocation12 + $0x1]] }
 0x1e2   : > { %s5502_s21 = sld [smem:[#allocation12 + $0x2]] }
 0x1e3   : > { %s5509_s23 = sld [smem:[#allocation12 + $0x3]] }
 0x1e4   : > { %s5516_s9 = sld [smem:[#allocation12 + $0x38a]] }
 0x1e5   : > { %s5526_s19 = sld [smem:[#allocation12 + $0x80]] }
 0x1e6   : > { %s5536_s20 = sld [smem:[#allocation12 + $0x81]] }
 0x1e7   : > { %s5546_s28 = sld [smem:[#allocation12 + $0x82]] }
 0x1eb   : > { %v1590_v15 = vpop.f32.mrf.mxu0 }
 0x1ec   : > { %v1823_v25 = vmul.f32 %v1821_v32, %v1590_v15  ;;  %v1899_v53 = vmul.f32 %v1897_v50, %v1590_v15  ;;  %v1976_v59 = vmul.f32 %v1974_v4, %v1590_v15  ;;  %v2053_v1 = vmul.f32 %v2051_v60, %v1590_v15 }
 0x1ed   : > { %v2130_v10 = vmul.f32 %v2128_v63, %v1590_v15  ;;  %v2207_v29 = vmul.f32 %v2205_v23, %v1590_v15 }
 0x1f5   : > { %v1648_v30 = vpop.f32.mrf.mxu2 }
 0x1f6   : > { %v2142_v28 = vmul.f32 %v2140_v58, %v1648_v30  ;;  %v2219_v0 = vmul.f32 %v2217_v13, %v1648_v30  ;;  %v5433_v58 = vadd.f32 %v1993_v33, %v5320_v47  ;;  %v5436_v13 = vadd.f32 %v2070_v24, %v5322_v20 }
 0x1f8   : > { %v1619_v19 = vpop.f32.mrf.mxu1 }
 0x1f9   : > { %v1829_v32 = vmul.f32 %v1827_v36, %v1619_v19  ;;  %v1905_v50 = vmul.f32 %v1903_v62, %v1619_v19  ;;  %v1982_v4 = vmul.f32 %v1980_v37, %v1619_v19  ;;  %v2059_v60 = vmul.f32 %v2057_v43, %v1619_v19 }
 0x1fa   : > { %v2136_v63 = vmul.f32 %v2134_v6, %v1619_v19  ;;  %v2213_v23 = vmul.f32 %v2211_v12, %v1619_v19  ;;  %v2284_v36 = vmul.f32 %v2282_v41, %v1590_v15  ;;  %v2361_v62 = vmul.f32 %v2359_v54, %v1590_v15 }
 0x1fb   : > { %v2290_v18 = vmul.f32 %v2288_v44, %v1619_v19  ;;  %v2367_v17 = vmul.f32 %v2365_v8, %v1619_v19  ;;  %v2301_v37 = vmul.f32 %v2300_v11, %v1674_v56  ;;  %v2378_v43 = vmul.f32 %v2377_v48, %v1674_v56 }
 0x1fc   : > { %v1835_v6 = vmul.f32 %v1833_v34, %v1648_v30  ;;  %v1911_v12 = vmul.f32 %v1909_v49, %v1648_v30  ;;  %v1831_v41 = vadd.f32 %v1829_v32, %v1823_v25  ;;  %v1907_v54 = vadd.f32 %v1905_v50, %v1899_v53 }
 0x1fd   : > { %v1988_v44 = vmul.f32 %v1986_v52, %v1648_v30  ;;  %v2065_v8 = vmul.f32 %v2063_v7, %v1648_v30  ;;  %v1984_v21 = vadd.f32 %v1982_v4, %v1976_v59  ;;  %v2061_v16 = vadd.f32 %v2059_v60, %v2053_v1 }
 0x1fe   : > { %v2138_v9 = vadd.f32 %v2136_v63, %v2130_v10  ;;  %v2215_v14 = vadd.f32 %v2213_v23, %v2207_v29  ;;  %v2292_v34 = vadd.f32 %v2290_v18, %v2284_v36  ;;  %v2369_v49 = vadd.f32 %v2367_v17, %v2361_v62 }
 0x1ff   : > { %v2296_v52 = vmul.f32 %v2294_v31, %v1648_v30  ;;  %v2373_v7 = vmul.f32 %v2371_v39, %v1648_v30  ;;  %v5425_v19 = vadd.f32 %v1840_v26, %v5308_v3  ;;  %v5428_v15 = vadd.f32 %v1916_v61, %v5310_v55 }
 0x200   : > { %v5439_v31 = vadd.f32 %v2147_v38, %v5328_v22  ;;  %v5442_v39 = vadd.f32 %v2224_v40, %v5330_v35  ;;  %v5451_v47 = vadd.f32 %v2301_v37, %v5332_v2  ;;  %v5454_v20 = vadd.f32 %v2378_v43, %v5334_v27 }
 0x201   : > { %v1837_v27 = vadd.f32 %v1835_v6, %v1831_v41  ;;  %v1845_v61 = vstv %s6474_s0  ;;  %v1913_v33 = vadd.f32 %v1911_v12, %v1907_v54  ;;  %v1990_v24 = vadd.f32 %v1988_v44, %v1984_v21  ;;  %s5740_s0 = sld [smem:[#allocation12 + $0x10b]] }
 0x202   : > { %v2144_v38 = vadd.f32 %v2142_v28, %v2138_v9  ;;  %v2221_v40 = vadd.f32 %v2219_v0, %v2215_v14  ;;  %v6202_v53 = vstv %s6478_s7  ;;  %v6201_v10 = vstv %s6479_s29  ;;  %s5570_s29 = sld [smem:[#allocation12 + $0x83]] }
 0x203   : > { %v1677_v56 = vpop.f32.mrf.mxu3  ;;  %v2298_v29 = vadd.f32 %v2296_v52, %v2292_v34  ;;  %v6200_v50 = vstv %s6480_s14  ;;  %v2375_v30 = vadd.f32 %v2373_v7, %v2369_v49  ;;  %v6199_v4 = vstv %s5354_s11  ;;  %s6481_s11 = sld [smem:[#allocation29_spill]] }
 0x204   : > { %v1841_v3 = vmul.f32 %v1839_v42, %v1677_v56  ;;  %v1917_v55 = vmul.f32 %v1915_v46, %v1677_v56  ;;  %v1994_v22 = vmul.f32 %v1992_v57, %v1677_v56  ;;  %v2071_v35 = vmul.f32 %v2069_v5, %v1677_v56  ;;  %s5560_s14 = sld [smem:[#allocation12 + $0xb]] }
 0x205   : > { %v2148_v26 = vmul.f32 %v2146_v45, %v1677_v56  ;;  %v2225_v42 = vmul.f32 %v2223_v51, %v1677_v56  ;;  %v2302_v46 = vmul.f32 %v2300_v11, %v1677_v56  ;;  %v2379_v2 = vmul.f32 %v2377_v48, %v1677_v56  ;;  %s5576_s7 = sld [smem:[#allocation12 + $0x8b]] }
 0x206   : > { %v1921_v57 = vstv %s6475_s15  ;;  %v2067_v5 = vadd.f32 %v2065_v8, %v2061_v16  ;;  %v1998_v45 = vstv %s6476_s3  ;;  %v2075_v51 = vstv %s6477_s1  ;;  %s5746_s15 = sld [smem:[#allocation12 + $0x180]] }
 0x207   : > { %v5482_v11 = vadd.f32 %v1841_v3, %v1837_v27  ;;  %v5484_v48 = vadd.f32 %v1917_v55, %v1913_v33  ;;  %v5486_v25 = vadd.f32 %v1994_v22, %v1990_v24  ;;  %v5493_v1 = vadd.f32 %v2148_v26, %v2144_v38  ;;  %s5756_s3 = sld [smem:[#allocation12 + $0x181]] }
 0x208   : > { %v5491_v59 = vadd.f32 %v2071_v35, %v2067_v5  ;;  %v5498_v32 = vadd.f32 %v2225_v42, %v2221_v40  ;;  %v5504_v60 = vadd.f32 %v2302_v46, %v2298_v29  ;;  %v1851_v63 = vstv %s5364_s18  ;;  %s5766_s18 = sld [smem:[#allocation12 + $0x182]] }
 0x209   : > { %v6205_v23 = vstv %s5374_s17  ;;  %v6204_v36 = vstv %s5384_s26  ;;  %v5511_v18 = vadd.f32 %v2379_v2, %v2375_v30  ;;  %v6203_v17 = vstv %s5394_s12  ;;  %v5583_v35 = vld [vmem:[%s6481_s11] sm:$0xff]  ;;  %s5842_s1 = sld [smem:[#allocation12 + $0x280]] }
 0x20a   : > { %v6206_v37 = vstv %s5404_s10  ;;  %v6207_v43 = vstv %s5410_s24  ;;  %v2312_v34 = vstv %s5412_s27  ;;  %v2389_v49 = vstv %s5418_s16  ;;  %s5815_s27 = sld [smem:[#allocation12 + $0x201]] }
 0x20b   : > { %v2241_v3 = vstv %s5476_s2  ;;  %v1797_v55 = vstv %s5489_s5  ;;  %v1815_v22 = vstv %s5509_s23  ;;  %v5587_v42 = vld [vmem:[%s6481_s11 + $0x8] sm:$0xff]  ;;  %s5642_s5 = sld [smem:[#allocation12 + $0x101]] }
 0x20c   : > { %v1798_v26 = vmul.f32 %v5583_v35, %v1797_v55  ;;  %v1799_v46 = vmul.f32 %v5587_v42, %v1797_v55  ;;  %v5591_v2 = vld [vmem:[%s6481_s11 + $0x10] sm:$0xff]  ;;  %v5595_v33 = vld [vmem:[%s6481_s11 + $0x18] sm:$0xff]  ;;  %v6208_v5 = vstv %s5480_s13  ;;  %v5600_v38 = vld [vmem:[%s6481_s11 + $0x20] sm:$0xff]  ;;  %s6483_s23 = sld [smem:[#allocation53_spill]] }
 0x20d   : > { %v5604_v29 = vld [vmem:[%s6481_s11 + $0x28] sm:$0xff]  ;;  %v1879_v55 = vstv %s5536_s20  ;;  %s6485_s20 = sld [smem:[#allocation55_spill]] }
 0x20e   : > { %s5825_s16 = sld [smem:[#allocation12 + $0x202]] }
 0x20f   : > { %s5878_s2 = sld [smem:[#allocation12 + $0x28b]] }
 0x215   : > { %v1703_v62 = vpop.f32.mrf.mxu0 }
 0x216   : > { %v1846_v6 = vmul.f32 %v1845_v61, %v1703_v62  ;;  %v1922_v12 = vmul.f32 %v1921_v57, %v1703_v62  ;;  %v1999_v41 = vmul.f32 %v1998_v45, %v1703_v62  ;;  %v2076_v54 = vmul.f32 %v2075_v51, %v1703_v62 }
 0x217   : > { %v2153_v44 = vmul.f32 %v6202_v53, %v1703_v62  ;;  %v2230_v8 = vmul.f32 %v6201_v10, %v1703_v62  ;;  %v2307_v21 = vmul.f32 %v6200_v50, %v1703_v62  ;;  %v2384_v16 = vmul.f32 %v6199_v4, %v1703_v62  ;;  %v5608_v62 = vld [vmem:[%s6481_s11 + $0x30] sm:$0xff] }
 0x218   : > { %v5539_v9 = vadd.f32 %v1846_v6, %v5425_v19  ;;  %v5542_v14 = vadd.f32 %v1922_v12, %v5428_v15  ;;  %v5549_v28 = vadd.f32 %v1999_v41, %v5433_v58  ;;  %v5552_v0 = vadd.f32 %v2076_v54, %v5436_v13  ;;  %v5612_v54 = vld [vmem:[%s6481_s11 + $0x38] sm:$0xff]  ;;  %s5632_s11 = sld [smem:[#allocation12 + $0x100]] }
 0x219   : > { %v5555_v52 = vadd.f32 %v2153_v44, %v5439_v31  ;;  %v5558_v7 = vadd.f32 %v2230_v8, %v5442_v39  ;;  %v5563_v56 = vadd.f32 %v2307_v21, %v5451_v47  ;;  %v5566_v19 = vadd.f32 %v2384_v16, %v5454_v20 }
 0x21a   : > { %v1857_v15 = vstv %s5430_s8  ;;  %v1933_v58 = vstv %s5444_s6  ;;  %v2010_v13 = vstv %s5456_s22  ;;  %v2087_v31 = vstv %s5466_s30  ;;  %s5829_s8 = sld [smem:[#allocation12 + $0x203]] }
 0x21b   : > { %v2164_v39 = vstv %s5473_s4  ;;  %v1803_v47 = vstv %s5496_s25  ;;  %v1809_v20 = vstv %s5502_s21  ;;  %v1816_v6 = vmul.f32 %v5608_v62, %v1815_v22  ;;  %s5656_s25 = sld [smem:[#allocation12 + $0x103]] }
 0x21c   : > { %v1804_v27 = vmul.f32 %v5591_v2, %v1803_v47  ;;  %v1805_v24 = vmul.f32 %v5595_v33, %v1803_v47  ;;  %v1810_v40 = vmul.f32 %v5600_v38, %v1809_v20  ;;  %v1811_v30 = vmul.f32 %v5604_v29, %v1809_v20  ;;  %s6482_s21 = sld [smem:[#allocation52_spill]] }
 0x21d   : > { %v1817_v44 = vmul.f32 %v5612_v54, %v1815_v22  ;;  %v1873_v8 = vstv %s5526_s19  ;;  %v1885_v47 = vstv %s5546_s28  ;;  %v6210_v22 = vstv %s5516_s9  ;;  %s6484_s19 = sld [smem:[#allocation54_spill]] }
 0x21e   : > { %v1806_v12 = vadd.f32 %v1804_v27, %v1798_v26  ;;  %v1807_v41 = vadd.f32 %v1805_v24, %v1799_v46  ;;  %v1874_v21 = vmul.f32 %v5583_v35, %v1873_v8  ;;  %v1875_v16 = vmul.f32 %v5587_v42, %v1873_v8  ;;  %v1732_v50 = vpop.f32.mrf.mxu1  ;;  %s5837_s22 = sld [smem:[#allocation12 + $0x20b]] }
 0x21f   : > { %v1880_v26 = vmul.f32 %v5591_v2, %v1879_v55  ;;  %v1881_v46 = vmul.f32 %v5595_v33, %v1879_v55  ;;  %v1886_v24 = vmul.f32 %v5600_v38, %v1885_v47  ;;  %v1887_v8 = vmul.f32 %v5604_v29, %v1885_v47  ;;  %s5854_s30 = sld [smem:[#allocation12 + $0x281]] }
 0x220   : > { %v1812_v20 = vadd.f32 %v1810_v40, %v1806_v12  ;;  %v1813_v4 = vadd.f32 %v1811_v30, %v1807_v41  ;;  %v1891_v40 = vstv %s5570_s29  ;;  %v6209_v30 = vstv %s5576_s7  ;;  %s5648_s29 = sld [smem:[#allocation12 + $0x102]] }
 0x221   : > { %v1852_v12 = vmul.f32 %v1851_v63, %v1732_v50  ;;  %v1928_v41 = vmul.f32 %v6205_v23, %v1732_v50  ;;  %v2005_v55 = vmul.f32 %v6204_v36, %v1732_v50  ;;  %v2082_v27 = vmul.f32 %v6203_v17, %v1732_v50  ;;  %s5874_s4 = sld [smem:[#allocation12 + $0x283]] }
 0x222   : > { %v5626_v10 = vadd.f32 %v1816_v6, %v1812_v20  ;;  %v5628_v53 = vadd.f32 %v1817_v44, %v1813_v4  ;;  %v1761_v6 = vpop.f32.mrf.mxu2  ;;  %v2159_v4 = vmul.f32 %v6206_v37, %v1732_v50  ;;  %v2236_v44 = vmul.f32 %v6207_v43, %v1732_v50  ;;  %s5908_s28 = sld [smem:[#allocation12 + $0x303]] }
 0x223   : > { %v1882_v47 = vadd.f32 %v1880_v26, %v1874_v21  ;;  %v1883_v20 = vadd.f32 %v1881_v46, %v1875_v16  ;;  %v1854_v17 = vadd.f32 %v1852_v12, %v5539_v9  ;;  %v1930_v36 = vadd.f32 %v1928_v41, %v5542_v14 }
 0x224   : > { %v2313_v23 = vmul.f32 %v2312_v34, %v1732_v50  ;;  %v2390_v37 = vmul.f32 %v2389_v49, %v1732_v50  ;;  %v2007_v43 = vadd.f32 %v2005_v55, %v5549_v28  ;;  %v2084_v21 = vadd.f32 %v2082_v27, %v5552_v0 }
 0x225   : > { %v2161_v16 = vadd.f32 %v2159_v4, %v5555_v52  ;;  %v2238_v26 = vadd.f32 %v2236_v44, %v5558_v7  ;;  %v1858_v46 = vmul.f32 %v1857_v15, %v1761_v6  ;;  %v1934_v9 = vmul.f32 %v1933_v58, %v1761_v6 }
 0x226   : > { %v2011_v14 = vmul.f32 %v2010_v13, %v1761_v6  ;;  %v2088_v12 = vmul.f32 %v2087_v31, %v1761_v6  ;;  %v2165_v50 = vmul.f32 %v2164_v39, %v1761_v6  ;;  %v2242_v41 = vmul.f32 %v2241_v3, %v1761_v6 }
 0x227   : > { %v2319_v28 = vmul.f32 %v6208_v5, %v1761_v6  ;;  %v2396_v0 = vmul.f32 %v6210_v22, %v1761_v6  ;;  %v2315_v52 = vadd.f32 %v2313_v23, %v5563_v56  ;;  %v2392_v7 = vadd.f32 %v2390_v37, %v5566_v19 }
 0x228   : > { %v5680_v27 = vadd.f32 %v1858_v46, %v1854_v17  ;;  %v5682_v55 = vadd.f32 %v1934_v9, %v1930_v36  ;;  %v5684_v4 = vadd.f32 %v2011_v14, %v2007_v43  ;;  %v5686_v44 = vadd.f32 %v2088_v12, %v2084_v21 }
 0x229   : > { %v5688_v5 = vadd.f32 %v2165_v50, %v2161_v16  ;;  %v5690_v6 = vadd.f32 %v2242_v41, %v2238_v26  ;;  %v1888_v23 = vadd.f32 %v1886_v24, %v1882_v47  ;;  %v1889_v37 = vadd.f32 %v1887_v8, %v1883_v20  ;;  %v1706_v16 = vpop.f32.mrf.mxu0 }
 0x22a   : > { %v1892_v36 = vmul.f32 %v5608_v62, %v1891_v40  ;;  %v1893_v17 = vmul.f32 %v5612_v54, %v1891_v40  ;;  %v5694_v43 = vadd.f32 %v2319_v28, %v2315_v52  ;;  %v5696_v56 = vadd.f32 %v2396_v0, %v2392_v7 }
 0x22b   : > { %v1950_v19 = vstv %s5632_s11  ;;  %v1956_v21 = vstv %s5642_s5  ;;  %v1962_v8 = vstv %s5648_s29  ;;  %v1968_v47 = vstv %s5656_s25  ;;  %s5912_s11 = sld [smem:[#allocation12 + $0x30b]] }
 0x22c   : > { %v5700_v26 = vadd.f32 %v1892_v36, %v1888_v23  ;;  %v5702_v24 = vadd.f32 %v1893_v17, %v1889_v37  ;;  %v1847_v20 = vmul.f32 %v1845_v61, %v1706_v16  ;;  %v1923_v46 = vmul.f32 %v1921_v57, %v1706_v16  ;;  %v5722_v23 = vpop.f32.mrf.mxu3  ;;  %s5916_s5 = sld [smem:[#allocation12 + $0x380]] }
 0x22d   : > { %v2000_v40 = vmul.f32 %v1998_v45, %v1706_v16  ;;  %v2077_v9 = vmul.f32 %v2075_v51, %v1706_v16  ;;  %v6486_v14 = vstv %s6482_s21  ;;  %v6487_v50 = vstv %s6483_s23  ;;  %s5920_s29 = sld [smem:[#allocation12 + $0x381]] }
 0x22e   : > { %v2154_v12 = vmul.f32 %v6486_v14, %v1706_v16  ;;  %v2231_v41 = vmul.f32 %v6487_v50, %v1706_v16  ;;  %v6488_v28 = vstv %s6484_s19  ;;  %v6489_v52 = vstv %s6485_s20  ;;  %s5924_s25 = sld [smem:[#allocation12 + $0x382]] }
 0x22f   : > { %v2308_v0 = vmul.f32 %v6488_v28, %v1706_v16  ;;  %v2385_v7 = vmul.f32 %v6489_v52, %v1706_v16  ;;  %v1849_v61 = vadd.f32 %v1847_v20, %v5482_v11  ;;  %v1925_v57 = vadd.f32 %v1923_v46, %v5484_v48  ;;  %s5933_s21 = sld [smem:[#allocation12 + $0x383]] }
 0x230   : > { %v1951_v45 = vmul.f32 %v5583_v35, %v1950_v19  ;;  %v1952_v51 = vmul.f32 %v5587_v42, %v1950_v19  ;;  %v2002_v37 = vadd.f32 %v2000_v40, %v5486_v25  ;;  %v2079_v36 = vadd.f32 %v2077_v9, %v5491_v59  ;;  %v1735_v59 = vpop.f32.mrf.mxu1  ;;  %s5939_s23 = sld [smem:[#allocation12 + $0x38b]] }
 0x231   : > { %v2156_v17 = vadd.f32 %v2154_v12, %v5493_v1  ;;  %v2233_v16 = vadd.f32 %v2231_v41, %v5498_v32  ;;  %v2310_v11 = vadd.f32 %v2308_v0, %v5504_v60  ;;  %v2387_v48 = vadd.f32 %v2385_v7, %v5511_v18  ;;  %s6501_s19 = sld [smem:[#allocation23_spill]] }
 0x232   : > { %v6490_v20 = vstv %s5560_s14  ;;  %v1940_v25 = vmul.f32 %v6209_v30, %v5722_v23  ;;  %v1957_v1 = vmul.f32 %v5591_v2, %v1956_v21  ;;  %v1958_v32 = vmul.f32 %v5595_v33, %v1956_v21  ;;  %v1764_v7 = vpop.f32.mrf.mxu2 }
 0x233   : > { %v1864_v19 = vmul.f32 %v6490_v20, %v5722_v23  ;;  %v1963_v60 = vmul.f32 %v5600_v38, %v1962_v8  ;;  %v1964_v18 = vmul.f32 %v5604_v29, %v1962_v8  ;;  %v1853_v46 = vmul.f32 %v1851_v63, %v1735_v59 }
 0x234   : > { %v6491_v40 = vstv %s5374_s17  ;;  %v6492_v14 = vstv %s5384_s26  ;;  %v6493_v50 = vstv %s5394_s12  ;;  %v6494_v28 = vstv %s5404_s10  ;;  %s6496_s17 = sld [smem:[#allocation28_spill]] }
 0x235   : > { %v1929_v9 = vmul.f32 %v6491_v40, %v1735_v59  ;;  %v2006_v12 = vmul.f32 %v6492_v14, %v1735_v59  ;;  %v2083_v41 = vmul.f32 %v6493_v50, %v1735_v59  ;;  %v2160_v21 = vmul.f32 %v6494_v28, %v1735_v59  ;;  %s5795_s12 = sld [smem:[#allocation12 + $0x183]] }
 0x236   : > { %v6495_v0 = vstv %s5410_s24  ;;  %v2314_v8 = vmul.f32 %v2312_v34, %v1735_v59  ;;  %v2391_v63 = vmul.f32 %v2389_v49, %v1735_v59  ;;  %v1855_v20 = vadd.f32 %v1853_v46, %v1849_v61  ;;  %s5803_s10 = sld [smem:[#allocation12 + $0x18b]] }
 0x237   : > { %v2237_v52 = vmul.f32 %v6495_v0, %v1735_v59  ;;  %v1931_v40 = vadd.f32 %v1929_v9, %v1925_v57  ;;  %v1969_v14 = vmul.f32 %v5608_v62, %v1968_v47  ;;  %v1970_v50 = vmul.f32 %v5612_v54, %v1968_v47  ;;  %s5807_s24 = sld [smem:[#allocation12 + $0x200]]  ;;  %s2894_s20 = sshll.u32 %s6501_s19, 7 }
 0x238   : > { %v2008_v28 = vadd.f32 %v2006_v12, %v2002_v37  ;;  %v2085_v0 = vadd.f32 %v2083_v41, %v2079_v36  ;;  %v2162_v30 = vadd.f32 %v2160_v21, %v2156_v17  ;;  %v1859_v49 = vmul.f32 %v1857_v15, %v1764_v7 }
 0x239   : > { %v2239_v34 = vadd.f32 %v2237_v52, %v2233_v16  ;;  %v1935_v59 = vmul.f32 %v1933_v58, %v1764_v7  ;;  %v2012_v22 = vmul.f32 %v2010_v13, %v1764_v7  ;;  %v2089_v61 = vmul.f32 %v2087_v31, %v1764_v7  ;;  %v5809_v21 = vpop.f32.mrf.mxu3 }
 0x23a   : > { %v5778_v57 = vadd.f32 %v2314_v8, %v2310_v11  ;;  %v5780_v46 = vadd.f32 %v2391_v63, %v2387_v48  ;;  %v2166_v47 = vmul.f32 %v2164_v39, %v1764_v7  ;;  %v2243_v37 = vmul.f32 %v2241_v3, %v1764_v7  ;;  %s2568_s26 = sshll.u32 %s6496_s17, 7 }
 0x23b   : > { %v1861_v9 = vadd.f32 %v1859_v49, %v1855_v20  ;;  %v1937_v36 = vadd.f32 %v1935_v59, %v1931_v40  ;;  %v6497_v17 = vstv %s5480_s13  ;;  %v6498_v15 = vstv %s5516_s9  ;;  %s5831_s6 = scalar_lea.vmem [#allocation13], %s2568_s26  ;;  %s5886_s13 = sld [smem:[#allocation12 + $0x301]] }
 0x23c   : > { %v5788_v16 = vmul.f32 %v6497_v17, %v1764_v7  ;;  %v5792_v58 = vmul.f32 %v6498_v15, %v1764_v7  ;;  %v2014_v13 = vadd.f32 %v2012_v22, %v2008_v28  ;;  %v5797_v31 = vadd.f32 %v2089_v61, %v2085_v0  ;;  %s5892_s9 = sld [smem:[#allocation12 + $0x302]] }
 0x23d   : > { %v5799_v39 = vadd.f32 %v2166_v47, %v2162_v30  ;;  %v5801_v3 = vadd.f32 %v2243_v37, %v2239_v34  ;;  %v1866_v11 = vadd.f32 %v1864_v19, %v5680_v27  ;;  %v1942_v48 = vadd.f32 %v1940_v25, %v5682_v55 }
 0x23e   : > { %v1959_v12 = vadd.f32 %v1957_v1, %v1951_v45  ;;  %v1960_v41 = vadd.f32 %v1958_v32, %v1952_v51  ;;  %v2016_v22 = vstv %s5740_s0  ;;  %v2027_v52 = vstv %s5746_s15 }
 0x23f   : > { %v2033_v8 = vstv %s5756_s3  ;;  %v2039_v30 = vstv %s5766_s18  ;;  %v6499_v63 = vstv %s5560_s14  ;;  %v1868_v20 = vadd.f32 %v1866_v11, %v5626_v10  ;;  %s5884_s14 = sld [smem:[#allocation12 + $0x300]] }
 0x240   : > { %v1865_v7 = vmul.f32 %v6499_v63, %v5809_v21  ;;  %v6500_v27 = vstv %s5576_s7  ;;  %v1944_v45 = vadd.f32 %v1942_v48, %v5700_v26  ;;  %v1965_v51 = vadd.f32 %v1963_v60, %v1959_v12  ;;  %s5862_s7 = sld [smem:[#allocation12 + $0x282]] }
 0x241   : > { %v1941_v55 = vmul.f32 %v6500_v27, %v5809_v21  ;;  %v1966_v19 = vadd.f32 %v1964_v18, %v1960_v41  ;;  %v2017_v25 = vmul.f32 %v2016_v22, %v5722_v23  ;;  %v2018_v1 = vmul.f32 %v2016_v22, %v5809_v21  ;;  %1870 = vst.msk [vmem:[%s5831_s6] sm:$0xff] %vm1563_vm0, %v1868_v20  ;;  %s6502_s3 = sld [smem:[#allocation94_spill]] }
 0x242   : > { %v1867_v32 = vadd.f32 %v1865_v7, %v1861_v9  ;;  %v2028_v26 = vmul.f32 %v5583_v35, %v2027_v52  ;;  %v2029_v40 = vmul.f32 %v5587_v42, %v2027_v52  ;;  %2802 = vst.msk [vmem:[%s5831_s6 + $0x10] sm:$0xff] %vm1563_vm0, %v1944_v45  ;;  %v1971_v60 = vadd.f32 %v1969_v14, %v1965_v51 }
 0x243   : > { %v1943_v10 = vadd.f32 %v1941_v55, %v1937_v36  ;;  %v1972_v18 = vadd.f32 %v1970_v50, %v1966_v19  ;;  %v2019_v28 = vadd.f32 %v2017_v25, %v5684_v4  ;;  %v2020_v0 = vadd.f32 %v2018_v1, %v2014_v13 }
 0x244   : > { %v1869_v34 = vadd.f32 %v1867_v32, %v5628_v53  ;;  %v2034_v59 = vmul.f32 %v5591_v2, %v2033_v8  ;;  %v2035_v61 = vmul.f32 %v5595_v33, %v2033_v8  ;;  %v2040_v50 = vmul.f32 %v5600_v38, %v2039_v30 }
 0x245   : > { %v1945_v49 = vadd.f32 %v1943_v10, %v5702_v24  ;;  %v2021_v47 = vadd.f32 %v2019_v28, %v1971_v60  ;;  %v2022_v14 = vadd.f32 %v2020_v0, %v1972_v18  ;;  %v2041_v37 = vmul.f32 %v5604_v29, %v2039_v30 }
 0x246   : > { %1871 = vst.msk [vmem:[%s5831_s6 + $0x8] sm:$0xff] %vm1563_vm0, %v1869_v34  ;;  %v2036_v4 = vadd.f32 %v2034_v59, %v2028_v26  ;;  %v2037_v53 = vadd.f32 %v2035_v61, %v2029_v40  ;;  %v2045_v9 = vstv %s5795_s12  ;;  %v2093_v24 = vstv %s5803_s10  ;;  %s2424_s12 = sshll.u32 %s5831_s6, 4  ;;  %s2425_s12 = int_to_ptr.vmem [resolvable:$true] %s2424_s12 }
 0x247   : > { %2803 = vst.msk [vmem:[%s5831_s6 + $0x18] sm:$0xff] %vm1563_vm0, %v1945_v49  ;;  %v2046_v36 = vmul.f32 %v5608_v62, %v2045_v9  ;;  %v2047_v17 = vmul.f32 %v5612_v54, %v2045_v9  ;;  %v2094_v15 = vmul.f32 %v2093_v24, %v5722_v23  ;;  %v2095_v13 = vmul.f32 %v2093_v24, %v5809_v21  ;;  %s2423_s18 = scalar_lea.hbm %s6502_s3, %s2894_s20 }
 0x248   : > { %2816 = vst.msk [vmem:[%s5831_s6 + $0x20] sm:$0xff] %vm1563_vm0, %v2021_v47  ;;  %v2042_v11 = vadd.f32 %v2040_v50, %v2036_v4  ;;  %v2043_v48 = vadd.f32 %v2041_v37, %v2037_v53  ;;  %v2104_v12 = vstv %s5807_s24  ;;  %v2110_v41 = vstv %s5815_s27  ;;  %s2426_s10 = sshll.u32 %s2423_s18, 4  ;;  %s2412_s24 = scalar_lea.sflag [#allocation4], %s6496_s17  ;;  %s2427_s10 = int_to_ptr.hbm [resolvable:$true] %s2426_s10 }
 0x249   : > { %2817 = vst.msk [vmem:[%s5831_s6 + $0x28] sm:$0xff] %vm1563_vm0, %v2022_v14  ;;  %v2096_v22 = vadd.f32 %v2094_v15, %v5686_v44  ;;  %v2097_v52 = vadd.f32 %v2095_v13, %v5797_v31  ;;  %v2105_v8 = vmul.f32 %v5583_v35, %v2104_v12  ;;  %v2106_v30 = vmul.f32 %v5587_v42, %v2104_v12  ;;  %s3127_s27 = sshra.s32 %s2427_s10, 4  ;;  %s3128_s27 = int_to_ptr.hbm [resolvable:$true] %s3127_s27 }
 0x24a   : > { %v2048_v63 = vadd.f32 %v2046_v36, %v2042_v11  ;;  %v2049_v7 = vadd.f32 %v2047_v17, %v2043_v48  ;;  %v2111_v20 = vmul.f32 %v5591_v2, %v2110_v41  ;;  %v2112_v27 = vmul.f32 %v5595_v33, %v2110_v41  ;;  %p3134_p13 = scmp.lt.s32.totalorder %s3128_s27, %s6502_s3 }
 0x24b   : > { %v2116_v55 = vstv %s5825_s16  ;;  %v2122_v45 = vstv %s5829_s8  ;;  %v2170_v44 = vstv %s5837_s22  ;;  %v2181_v51 = vstv %s5842_s1  ;;  %s3129_s16 = scalar_lea.hbm %s3128_s27, 128  ;;  %s3133_s1 = scalar_lea.hbm %s6502_s3, 256 }
 0x24c   : > { %v2098_v31 = vadd.f32 %v2096_v22, %v2048_v63  ;;  %v2099_v19 = vadd.f32 %v2097_v52, %v2049_v7  ;;  %v2113_v25 = vadd.f32 %v2111_v20, %v2105_v8  ;;  %v2114_v1 = vadd.f32 %v2112_v27, %v2106_v30  ;;  %p3130_p1 = scmp.ne.s32.totalorder %s3128_s27, %s3129_s16  ;;  %p3135_p7 = scmp.lt.s32.totalorder %s3133_s1, %s3129_s16 }
 0x24d   : > { %v2117_v32 = vmul.f32 %v5600_v38, %v2116_v55  ;;  %v2118_v10 = vmul.f32 %v5604_v29, %v2116_v55  ;;  %v2123_v26 = vmul.f32 %v5608_v62, %v2122_v45  ;;  %v2124_v40 = vmul.f32 %v5612_v54, %v2122_v45 }
 0x24e   : > { %2830 = vst.msk [vmem:[%s5831_s6 + $0x30] sm:$0xff] %vm1563_vm0, %v2098_v31  ;;  %v2171_v60 = vmul.f32 %v2170_v44, %v5722_v23  ;;  %v2172_v18 = vmul.f32 %v2170_v44, %v5809_v21  ;;  %v2182_v28 = vmul.f32 %v5583_v35, %v2181_v51  ;;  %v2183_v0 = vmul.f32 %v5587_v42, %v2181_v51  ;;  %p3131_p3 = pnand %p3130_p1, %p3327_p0  ;;  %p3136_p8 = por %p3135_p7, %p3134_p13 }
 0x24f   : > { %2831 = vst.msk [vmem:[%s5831_s6 + $0x38] sm:$0xff] %vm1563_vm0, %v2099_v19  ;;  %v2119_v34 = vadd.f32 %v2117_v32, %v2113_v25  ;;  %v2120_v49 = vadd.f32 %v2118_v10, %v2114_v1  ;;  %v2187_v59 = vstv %s5854_s30  ;;  %v2193_v61 = vstv %s5862_s7 }
 0x250   : > { %v2173_v47 = vadd.f32 %v2171_v60, %v5688_v5  ;;  %v2174_v14 = vadd.f32 %v2172_v18, %v5799_v39  ;;  %v2188_v50 = vmul.f32 %v5591_v2, %v2187_v59  ;;  %v2189_v37 = vmul.f32 %v5595_v33, %v2187_v59  ;;  %p3132_p4 = pneg %p3131_p3 }
 0x251   : > { %v2125_v4 = vadd.f32 %v2123_v26, %v2119_v34  ;;  %v2126_v53 = vadd.f32 %v2124_v40, %v2120_v49  ;;  %v2194_v9 = vmul.f32 %v5600_v38, %v2193_v61  ;;  %v2195_v24 = vmul.f32 %v5604_v29, %v2193_v61 }
 0x252   : > { %v2190_v36 = vadd.f32 %v2188_v50, %v2182_v28  ;;  %v2191_v17 = vadd.f32 %v2189_v37, %v2183_v0  ;;  %v2199_v5 = vstv %s5874_s4  ;;  %v2247_v39 = vstv %s5878_s2  ;;  %p3137_p9 = pnand %p3136_p8, %p3132_p4 }
 0x253   : > { %v2175_v15 = vadd.f32 %v2173_v47, %v2125_v4  ;;  %v2176_v13 = vadd.f32 %v2174_v14, %v2126_v53  ;;  %v2200_v11 = vmul.f32 %v5608_v62, %v2199_v5  ;;  %v2201_v48 = vmul.f32 %v5612_v54, %v2199_v5 }
 0x254   : > { %v2196_v12 = vadd.f32 %v2194_v9, %v2190_v36  ;;  %v2197_v41 = vadd.f32 %v2195_v24, %v2191_v17  ;;  %v2248_v22 = vmul.f32 %v2247_v39, %v5722_v23  ;;  %v2249_v52 = vmul.f32 %v2247_v39, %v5809_v21 }
 0x255   : > { %v2322_v8 = vadd.f32 %v5788_v16, %v5778_v57  ;;  %2844 = vst.msk [vmem:[%s5831_s6 + $0x40] sm:$0xff] %vm1563_vm0, %v2175_v15  ;;  %v2258_v30 = vstv %s5884_s14  ;;  %v2264_v63 = vstv %s5886_s13  ;;  %v2270_v7 = vstv %s5892_s9 }
 0x256   : > { %2845 = vst.msk [vmem:[%s5831_s6 + $0x48] sm:$0xff] %vm1563_vm0, %v2176_v13  ;;  %v2202_v20 = vadd.f32 %v2200_v11, %v2196_v12  ;;  %v2203_v27 = vadd.f32 %v2201_v48, %v2197_v41  ;;  %v2250_v55 = vadd.f32 %v2248_v22, %v5690_v6  ;;  %v2251_v45 = vadd.f32 %v2249_v52, %v5801_v3 }
 0x257   : > { %v2259_v57 = vmul.f32 %v5583_v35, %v2258_v30  ;;  %v2260_v16 = vmul.f32 %v5587_v42, %v2258_v30  ;;  %v2265_v44 = vmul.f32 %v5591_v2, %v2264_v63  ;;  %v2266_v51 = vmul.f32 %v5595_v33, %v2264_v63 }
 0x258   : > { %v2252_v31 = vadd.f32 %v2250_v55, %v2202_v20  ;;  %v2253_v19 = vadd.f32 %v2251_v45, %v2203_v27  ;;  %v2271_v25 = vmul.f32 %v5600_v38, %v2270_v7  ;;  %v2272_v6 = vmul.f32 %v5604_v29, %v2270_v7 }
 0x259   : > { %v2267_v3 = vadd.f32 %v2265_v44, %v2259_v57  ;;  %v2268_v1 = vadd.f32 %v2266_v51, %v2260_v16  ;;  %v2276_v32 = vstv %s5908_s28  ;;  %v2324_v10 = vstv %s5912_s11 }
 0x25a   : > { %2858 = vst.msk [vmem:[%s5831_s6 + $0x50] sm:$0xff] %vm1563_vm0, %v2252_v31  ;;  %v2277_v26 = vmul.f32 %v5608_v62, %v2276_v32  ;;  %v2278_v40 = vmul.f32 %v5612_v54, %v2276_v32  ;;  %v2325_v60 = vmul.f32 %v2324_v10, %v5722_v23  ;;  %v2326_v18 = vmul.f32 %v2324_v10, %v5809_v21 }
 0x25b   : > { %2859 = vst.msk [vmem:[%s5831_s6 + $0x58] sm:$0xff] %vm1563_vm0, %v2253_v19  ;;  %v2273_v28 = vadd.f32 %v2271_v25, %v2267_v3  ;;  %v2274_v0 = vadd.f32 %v2272_v6, %v2268_v1  ;;  %v2335_v34 = vstv %s5916_s5  ;;  %v2341_v49 = vstv %s5920_s29 }
 0x25c   : > { %v2327_v59 = vadd.f32 %v2325_v60, %v5694_v43  ;;  %v2328_v61 = vadd.f32 %v2326_v18, %v2322_v8  ;;  %v2336_v47 = vmul.f32 %v5583_v35, %v2335_v34  ;;  %v2337_v14 = vmul.f32 %v5587_v42, %v2335_v34 }
 0x25d   : > { %v2279_v50 = vadd.f32 %v2277_v26, %v2273_v28  ;;  %v2280_v37 = vadd.f32 %v2278_v40, %v2274_v0  ;;  %v2342_v4 = vmul.f32 %v5591_v2, %v2341_v49  ;;  %v2343_v53 = vmul.f32 %v5595_v33, %v2341_v49 }
 0x25e   : > { %v2399_v9 = vadd.f32 %v5792_v58, %v5780_v46  ;;  %v2347_v24 = vstv %s5924_s25  ;;  %v2353_v36 = vstv %s5933_s21  ;;  %v2401_v43 = vstv %s5939_s23 }
 0x25f   : > { %v2329_v17 = vadd.f32 %v2327_v59, %v2279_v50  ;;  %v2330_v5 = vadd.f32 %v2328_v61, %v2280_v37  ;;  %v2344_v35 = vadd.f32 %v2342_v4, %v2336_v47  ;;  %v2345_v42 = vadd.f32 %v2343_v53, %v2337_v14 }
 0x260   : > { %v2348_v39 = vmul.f32 %v5600_v38, %v2347_v24  ;;  %v2349_v2 = vmul.f32 %v5604_v29, %v2347_v24  ;;  %v2354_v15 = vmul.f32 %v5608_v62, %v2353_v36  ;;  %v2355_v33 = vmul.f32 %v5612_v54, %v2353_v36 }
 0x261   : > { %2872 = vst.msk [vmem:[%s5831_s6 + $0x60] sm:$0xff] %vm1563_vm0, %v2329_v17  ;;  %v2402_v46 = vmul.f32 %v2401_v43, %v5722_v23  ;;  %v2403_v58 = vmul.f32 %v2401_v43, %v5809_v21 }
 0x262   : > { %2873 = vst.msk [vmem:[%s5831_s6 + $0x68] sm:$0xff] %vm1563_vm0, %v2330_v5  ;;  %v2350_v38 = vadd.f32 %v2348_v39, %v2344_v35  ;;  %v2351_v29 = vadd.f32 %v2349_v2, %v2345_v42 }
 0x263   : > { %v2404_v62 = vadd.f32 %v2402_v46, %v5696_v56  ;;  %v2405_v54 = vadd.f32 %v2403_v58, %v2399_v9 }
 0x264   : > { %v2356_v13 = vadd.f32 %v2354_v15, %v2350_v38  ;;  %v2357_v11 = vadd.f32 %v2355_v33, %v2351_v29 }
 0x266   : > { %v2406_v48 = vadd.f32 %v2404_v62, %v2356_v13  ;;  %v2407_v12 = vadd.f32 %v2405_v54, %v2357_v11 }
 0x268   : > { %2886 = vst.msk [vmem:[%s5831_s6 + $0x70] sm:$0xff] %vm1563_vm0, %v2406_v48 }
 0x269   : > { %2887 = vst.msk [vmem:[%s5831_s6 + $0x78] sm:$0xff] %vm1563_vm0, %v2407_v12 }
 0x26a   : > { %3140 = shalt.err (!%p3137_p9)
}
 0x26b   : > { %s3200_s17 = smov 128   ;;  %s3201_s6 = smov 8  }
 0x26c   : > { %2917 = dma.vmem_to_hbm [thread:$0]  (%p3327_p0), %s2425_s12, 2048, %s2427_s10, %s2412_s24, %s3200_s17, %s3200_s17, %s3201_s6  }
 0x26d PF: > { %s6504_s4 = sld [smem:[#allocation19_spill]] }
 0x26e   : > { %s6506_s14 = sld [smem:[#allocation22_spill]] }
 0x273   : > { %s2441_s13 = sand.u32 1, %s6504_s4  }
 0x274   : > { %p6507_p10 = scmp.ge.s32.totalorder %s6506_s14, 2  ;;  %s2442_s9 = scalar_lea.sflag [#allocation4], %s2441_s13 }
 0x276   : > { %p2940_p11 = pnand %p6507_p10, %p3333_p6 }
 0x278   : > { %p2941_p12 = pneg %p2940_p11 }
 0x27a   : > { %3174 = dma.done.wait (%p2941_p12), %s2442_s9, 2048  }
 0x27b   : > { %3176 = vsyncadd (%p2941_p12), %s2442_s9, 4294965248  ;;  %s6508_s24 = sld [smem:[#allocation24_spill]] }
 0x27c   : > { %s6509_s21 = sld [smem:[#allocation20_spill]] }
 0x27d   : > { %s6510_s22 = sld [smem:[#allocation21_spill]] }
 0x27e   : > { %s6511_s23 = sld [smem:[#allocation25_spill]] }
 0x281   : > { %p22_p2 = scmp.ge.s32.totalorder %s6508_s24, 4  }
 0x283   :  { %24 = sbr.rel (!%p22_p2) target bundleno = 16 (0x10), region = 120 }
 0x288   :  { %2448 = vsyncpa [#allocation3], 1 }
 0x289   :  { %2450 = vsyncpa [#allocation3 + $0x1], 1 }
 0x28a   :  { %2451 = vsyncpa [#allocation4], 1 }
 0x28b   :  { %2453 = vsyncpa [#allocation4 + $0x1], 1 }
 0x28c   :  { %2454 = vsyncpa [#allocation5], 1 }
 0x28d   :  { %2456 = vsyncpa [#allocation5 + $0x1], 1 }
 0x28e   :  { %2457 = vsyncpa [#allocation8], 1 }
 0x28f   :  { %2458 = vsyncpa [#allocation11], 1 }

</bundles_post_ra>
